<compile_context>
chip_gen: v7x
topology: tpu7x:2x2x1
jax: 0.10.0
libtpu: 0.0.40
codegen_flags: <defaults>
</compile_context>

<pallas_src>
import functools

import jax
import jax.numpy as jnp
from jax.experimental import pallas as pl
from jax.experimental.pallas import tpu as pltpu

HIDDEN = 1024  # Sharedfc output width, fixed by the module.


def _round_up(x, m):
    return ((x + m - 1) // m) * m


def _regressor_kernel(s_ref, u_ref, wsh_ref, bsh_ref, w1_ref, b1_ref,
                      w2_ref, b2_ref, os_ref, ou_ref):
    wsh = wsh_ref[...]
    cd = wsh.dtype  # MXU compute dtype (bf16 by default; f32 for the tight-check path)

    # Shared layer for both streams against the same resident W_sh.
    # Inputs cast to the MXU dtype on the VPU (hidden under the matmul);
    # accumulation is f32 via preferred_element_type.
    h_s = jnp.dot(s_ref[...].astype(cd), wsh,
                  preferred_element_type=jnp.float32) + bsh_ref[...]
    h_u = jnp.dot(u_ref[...].astype(cd), wsh,
                  preferred_element_type=jnp.float32) + bsh_ref[...]

    # LeakyReLU(0.2) in f32 on the VPU (v5e VPU has no bf16 ALU).
    h_s = jnp.where(h_s > 0, h_s, 0.2 * h_s)
    h_u = jnp.where(h_u > 0, h_u, 0.2 * h_u)

    # Separate heads: (B,1024) @ (1024,Np) + bias, then ReLU.
    # (At block_b >= 256 fusing the two shared-layer dots along M buys little,
    #  so the two streams are kept separate for simplicity.)
    o_s = jnp.dot(h_s.astype(cd), w1_ref[...],
                  preferred_element_type=jnp.float32) + b1_ref[...]
    o_u = jnp.dot(h_u.astype(cd), w2_ref[...],
                  preferred_element_type=jnp.float32) + b2_ref[...]

    os_ref[...] = jnp.maximum(o_s, 0.0).astype(os_ref.dtype)
    ou_ref[...] = jnp.maximum(o_u, 0.0).astype(ou_ref.dtype)


def prepare_params(w_sh, b_sh, w1, b1, w2, b2, compute_dtype=jnp.bfloat16):
    """One-time weight prep (hoisted out of the per-call path).

    Weights are stored (in, out); heads' output dim is zero-padded to a
    lane-dense multiple of 128 (exact through the trailing ReLU: pad lanes
    produce ReLU(0 + 0) = 0) and everything destined for the MXU is cast to
    `compute_dtype`.  Biases stay f32.
    """
    att = w1.shape[1]
    np_ = _round_up(att, 128)
    cd = jnp.dtype(compute_dtype)

    def padcols(a, cols):
        return jnp.pad(a, ((0, 0), (0, cols - a.shape[1])))

    wsh_p = w_sh.astype(cd)
    w1_p = padcols(w1, np_).astype(cd)
    w2_p = padcols(w2, np_).astype(cd)
    bsh_p = b_sh.reshape(1, -1).astype(jnp.float32)
    b1_p = padcols(b1.reshape(1, -1).astype(jnp.float32), np_)
    b2_p = padcols(b2.reshape(1, -1).astype(jnp.float32), np_)
    return (wsh_p, bsh_p, w1_p, b1_p, w2_p, b2_p), att


@functools.partial(
    jax.jit,
    static_argnames=("att", "block_b", "out_dtype", "single_buffer_weights"))
def _forward_impl(s, u, wsh_p, bsh_p, w1_p, b1_p, w2_p, b2_p, *, att,
                  block_b, out_dtype, single_buffer_weights):
    B, res = s.shape
    hidden = wsh_p.shape[1]
    np_ = w1_p.shape[1]

    # Batch tile: fat tiles amortize the ~0.35us/grid-step overhead.  256-row
    # tiles when B >= 512 match the 256-wide MXU (v6e/v7x, also a multiple of
    # v5e's 128) and keep >= 2 "parallel" grid steps for v7x's 2 TensorCores.
    if block_b is None:
        block_b = 256 if B >= 512 else _round_up(B, 16)
    block_b = max(8, min(_round_up(block_b, 8), 512))
    if block_b >= B:
        block_b = B  # full-extent block; (8,128) divisibility waived.

    grid = (pl.cdiv(B, block_b),)

    # --- VMEM budget -------------------------------------------------------
    wdtb = jnp.dtype(wsh_p.dtype).itemsize
    xdtb = jnp.dtype(s.dtype).itemsize
    odtb = jnp.dtype(out_dtype).itemsize
    wbuf = 1 if single_buffer_weights else 2
    weight_bytes = wbuf * ((res * hidden + 2 * hidden * np_) * wdtb
                           + (hidden + 2 * np_) * 4)
    x_bytes = 2 * 2 * block_b * res * xdtb          # s,u tiles, double-buffered
    out_bytes = 2 * 2 * block_b * np_ * odtb        # two output tiles, double-buffered
    h_bytes = 2 * block_b * hidden * (4 + wdtb)     # f32 h_s/h_u + MXU-dtype copies
    o_tmp = 2 * block_b * np_ * 4                   # f32 head outputs pre-store
    est = weight_bytes + x_bytes + out_bytes + h_bytes + o_tmp

    try:
        phys = int(pltpu.get_tpu_info().vmem_capacity_bytes)
    except Exception:
        phys = 64 << 20  # conservative fallback: v7x per-TC VMEM
    cap = max(phys - (8 << 20), 24 << 20)           # leave compiler headroom
    vmem_limit = int(min(max(est * 3 // 2 + (4 << 20), 32 << 20), cap))

    # --- specs ---------------------------------------------------------------
    def resident(shape):
        # Grid-invariant operand: single-buffer it when supported to halve its
        # resident VMEM footprint.
        if single_buffer_weights:
            return pl.BlockSpec(shape, lambda i: (0, 0),
                                pipeline_mode=pl.Buffered(1))
        return pl.BlockSpec(shape, lambda i: (0, 0))

    in_specs = [
        pl.BlockSpec((block_b, res), lambda i: (i, 0)),   # s tile
        pl.BlockSpec((block_b, res), lambda i: (i, 0)),   # u tile
        resident((res, hidden)),                          # W_shared
        resident((1, hidden)),                            # b_shared
        resident((hidden, np_)),                          # W1
        resident((1, np_)),                               # b1
        resident((hidden, np_)),                          # W2
        resident((1, np_)),                               # b2
    ]
    out_specs = (
        pl.BlockSpec((block_b, np_), lambda i: (i, 0)),
        pl.BlockSpec((block_b, np_), lambda i: (i, 0)),
    )

    out_s, out_u = pl.pallas_call(
        _regressor_kernel,
        out_shape=(
            jax.ShapeDtypeStruct((B, np_), out_dtype),
            jax.ShapeDtypeStruct((B, np_), out_dtype),
        ),
        grid_spec=pltpu.PrefetchScalarGridSpec(
            num_scalar_prefetch=0,
            grid=grid,
            in_specs=in_specs,
            out_specs=out_specs,
        ),
        compiler_params=pltpu.CompilerParams(
            dimension_semantics=("parallel",),
            vmem_limit_bytes=vmem_limit,
        ),
    )(s, u, wsh_p, bsh_p, w1_p, b1_p, w2_p, b2_p)

    if np_ != att:
        out_s = out_s[:, :att]
        out_u = out_u[:, :att]
    return out_s, out_u


def regressor_forward(s, u, prepared_params, att, *, block_b=None,
                      out_dtype=jnp.float32):
    """s, u: (B, resSize) arrays; prepared_params from prepare_params()."""
    args = (s, u) + tuple(prepared_params)
    try:
        return _forward_impl(*args, att=att, block_b=block_b,
                             out_dtype=out_dtype, single_buffer_weights=True)
    except Exception:
        # pl.Buffered(1) single-buffering not accepted by this build; fall back
        # to default double-buffered resident weights.
        return _forward_impl(*args, att=att, block_b=block_b,
                             out_dtype=out_dtype, single_buffer_weights=False)


def init_params(key, res_size, att_size, dtype=jnp.float32):
    """weights_init-style weights (normal 0, 0.02); small random biases to
    exercise the bias path.  Weights stored pre-transposed as (in, out)."""
    k1, k2, k3, k4, k5, k6 = jax.random.split(key, 6)
    w_sh = 0.02 * jax.random.normal(k1, (res_size, HIDDEN), dtype)
    b_sh = 0.01 * jax.random.normal(k2, (HIDDEN,), dtype)
    w1 = 0.02 * jax.random.normal(k3, (HIDDEN, att_size), dtype)
    b1 = 0.01 * jax.random.normal(k4, (att_size,), dtype)
    w2 = 0.02 * jax.random.normal(k5, (HIDDEN, att_size), dtype)
    b2 = 0.01 * jax.random.normal(k6, (att_size,), dtype)
    return w_sh, b_sh, w1, b1, w2, b2


def reference(s, u, w_sh, b_sh, w1, b1, w2, b2):
    def lrelu(x):
        return jnp.where(x > 0, x, 0.2 * x)
    h_s = lrelu(s @ w_sh + b_sh)
    h_u = lrelu(u @ w_sh + b_sh)
    out_s = jnp.maximum(h_s @ w1 + b1, 0.0)
    out_u = jnp.maximum(h_u @ w2 + b2, 0.0)
    return out_s, out_u


if __name__ == "__main__":
    key = jax.random.PRNGKey(0)
    ks, ku, kp = jax.random.split(key, 3)

    # Small shapes consistent with the module (resSize -> 1024 -> attSize),
    # chosen so the grid has >= 2 steps with a ragged last block.
    batch, res_size, att_size = 48, 256, 40
    s = jax.random.normal(ks, (batch, res_size), jnp.float32)
    u = jax.random.normal(ku, (batch, res_size), jnp.float32)
    params = init_params(kp, res_size, att_size)
    ref_s, ref_u = reference(s, u, *params)

    # 1) Default bf16 MXU path (loose tolerance vs f32 reference).
    prep_bf16, att = prepare_params(*params)  # compute_dtype=bfloat16
    out_s, out_u = regressor_forward(s, u, prep_bf16, att, block_b=32)
    out_s, out_u = jax.block_until_ready((out_s, out_u))
    assert out_s.shape == (batch, att_size), out_s.shape
    assert out_u.shape == (batch, att_size), out_u.shape
    assert jnp.allclose(out_s, ref_s, atol=3e-2, rtol=3e-2), (
        float(jnp.max(jnp.abs(out_s - ref_s))))
    assert jnp.allclose(out_u, ref_u, atol=3e-2, rtol=3e-2), (
        float(jnp.max(jnp.abs(out_u - ref_u))))

    # 2) f32 MXU path (tight numeric check), default block_b.
    prep_f32, att = prepare_params(*params, compute_dtype=jnp.float32)
    out_s32, out_u32 = regressor_forward(s, u, prep_f32, att)
    out_s32, out_u32 = jax.block_until_ready((out_s32, out_u32))
    assert jnp.allclose(out_s32, ref_s, atol=1e-4, rtol=1e-4), (
        float(jnp.max(jnp.abs(out_s32 - ref_s))))
    assert jnp.allclose(out_u32, ref_u, atol=1e-4, rtol=1e-4), (
        float(jnp.max(jnp.abs(out_u32 - ref_u))))

    print("KERNEL_OK")
</pallas_src>

<mosaic_0001>
module attributes {stable_mosaic.version = 11 : i64} {
  func.func @_regressor_kernel(%arg0: i32, %arg1: memref<32x256xf32, #tpu.memory_space<vmem>>, %arg2: memref<32x256xf32, #tpu.memory_space<vmem>>, %arg3: memref<256x1024xbf16, #tpu.memory_space<vmem>>, %arg4: memref<1x1024xf32, #tpu.memory_space<vmem>>, %arg5: memref<1024x128xbf16, #tpu.memory_space<vmem>>, %arg6: memref<1x128xf32, #tpu.memory_space<vmem>>, %arg7: memref<1024x128xbf16, #tpu.memory_space<vmem>>, %arg8: memref<1x128xf32, #tpu.memory_space<vmem>>, %arg9: memref<32x128xf32, #tpu.memory_space<vmem>>, %arg10: memref<32x128xf32, #tpu.memory_space<vmem>>) attributes {dimension_semantics = [#tpu.dimension_semantics<parallel>], iteration_bounds = array<i64: 2>, scalar_prefetch = 0 : i64, scratch_operands = 0 : i64, tpu.core_type = #tpu.core_type<tc>, window_params = [{transform_indices = @transform_0, window_bounds = array<i64: 32, 256>}, {transform_indices = @transform_1, window_bounds = array<i64: 32, 256>}, {pipeline_mode = #tpu.pipeline_mode<synchronous>, transform_indices = @transform_2, window_bounds = array<i64: 256, 1024>}, {pipeline_mode = #tpu.pipeline_mode<synchronous>, transform_indices = @transform_3, window_bounds = array<i64: 1, 1024>}, {pipeline_mode = #tpu.pipeline_mode<synchronous>, transform_indices = @transform_4, window_bounds = array<i64: 1024, 128>}, {pipeline_mode = #tpu.pipeline_mode<synchronous>, transform_indices = @transform_5, window_bounds = array<i64: 1, 128>}, {pipeline_mode = #tpu.pipeline_mode<synchronous>, transform_indices = @transform_6, window_bounds = array<i64: 1024, 128>}, {pipeline_mode = #tpu.pipeline_mode<synchronous>, transform_indices = @transform_7, window_bounds = array<i64: 1, 128>}, {transform_indices = @transform_8, window_bounds = array<i64: 32, 128>}, {transform_indices = @transform_9, window_bounds = array<i64: 32, 128>}]} {
    %c0 = arith.constant 0 : index
    %c0_0 = arith.constant 0 : index
    %0 = vector.load %arg3[%c0, %c0_0] : memref<256x1024xbf16, #tpu.memory_space<vmem>>, vector<256x1024xbf16>
    %c0_1 = arith.constant 0 : index
    %c0_2 = arith.constant 0 : index
    %1 = vector.load %arg1[%c0_1, %c0_2] : memref<32x256xf32, #tpu.memory_space<vmem>>, vector<32x256xf32>
    %2 = arith.truncf %1 : vector<32x256xf32> to vector<32x256xbf16>
    %cst = arith.constant dense<0.000000e+00> : vector<32x1024xf32>
    %3 = tpu.matmul %2, %0, %cst {dimension_numbers = #tpu.dot_dimension_numbers<[1], [0], [0], [1], [0, 0, 1, 1], [], []>} : vector<32x256xbf16>, vector<256x1024xbf16>, vector<32x1024xf32> -> vector<32x1024xf32>
    %c0_3 = arith.constant 0 : index
    %c0_4 = arith.constant 0 : index
    %4 = vector.load %arg4[%c0_3, %c0_4] : memref<1x1024xf32, #tpu.memory_space<vmem>>, vector<1x1024xf32>
    %5 = vector.broadcast %4 : vector<1x1024xf32> to vector<32x1024xf32>
    %6 = arith.addf %3, %5 : vector<32x1024xf32>
    %c0_5 = arith.constant 0 : index
    %c0_6 = arith.constant 0 : index
    %7 = vector.load %arg2[%c0_5, %c0_6] : memref<32x256xf32, #tpu.memory_space<vmem>>, vector<32x256xf32>
    %8 = arith.truncf %7 : vector<32x256xf32> to vector<32x256xbf16>
    %cst_7 = arith.constant dense<0.000000e+00> : vector<32x1024xf32>
    %9 = tpu.matmul %8, %0, %cst_7 {dimension_numbers = #tpu.dot_dimension_numbers<[1], [0], [0], [1], [0, 0, 1, 1], [], []>} : vector<32x256xbf16>, vector<256x1024xbf16>, vector<32x1024xf32> -> vector<32x1024xf32>
    %c0_8 = arith.constant 0 : index
    %c0_9 = arith.constant 0 : index
    %10 = vector.load %arg4[%c0_8, %c0_9] : memref<1x1024xf32, #tpu.memory_space<vmem>>, vector<1x1024xf32>
    %11 = vector.broadcast %10 : vector<1x1024xf32> to vector<32x1024xf32>
    %12 = arith.addf %9, %11 : vector<32x1024xf32>
    %cst_10 = arith.constant 0.000000e+00 : f32
    %13 = vector.broadcast %cst_10 : f32 to vector<32x1024xf32>
    %14 = arith.cmpf ogt, %6, %13 : vector<32x1024xf32>
    %cst_11 = arith.constant 2.000000e-01 : f32
    %15 = vector.broadcast %cst_11 : f32 to vector<32x1024xf32>
    %16 = arith.mulf %15, %6 : vector<32x1024xf32>
    %17 = arith.select %14, %6, %16 : vector<32x1024xi1>, vector<32x1024xf32>
    %cst_12 = arith.constant 0.000000e+00 : f32
    %18 = vector.broadcast %cst_12 : f32 to vector<32x1024xf32>
    %19 = arith.cmpf ogt, %12, %18 : vector<32x1024xf32>
    %cst_13 = arith.constant 2.000000e-01 : f32
    %20 = vector.broadcast %cst_13 : f32 to vector<32x1024xf32>
    %21 = arith.mulf %20, %12 : vector<32x1024xf32>
    %22 = arith.select %19, %12, %21 : vector<32x1024xi1>, vector<32x1024xf32>
    %23 = arith.truncf %17 : vector<32x1024xf32> to vector<32x1024xbf16>
    %c0_14 = arith.constant 0 : index
    %c0_15 = arith.constant 0 : index
    %24 = vector.load %arg5[%c0_14, %c0_15] : memref<1024x128xbf16, #tpu.memory_space<vmem>>, vector<1024x128xbf16>
    %cst_16 = arith.constant dense<0.000000e+00> : vector<32x128xf32>
    %25 = tpu.matmul %23, %24, %cst_16 {dimension_numbers = #tpu.dot_dimension_numbers<[1], [0], [0], [1], [0, 0, 1, 1], [], []>} : vector<32x1024xbf16>, vector<1024x128xbf16>, vector<32x128xf32> -> vector<32x128xf32>
    %c0_17 = arith.constant 0 : index
    %c0_18 = arith.constant 0 : index
    %26 = vector.load %arg6[%c0_17, %c0_18] : memref<1x128xf32, #tpu.memory_space<vmem>>, vector<1x128xf32>
    %27 = vector.broadcast %26 : vector<1x128xf32> to vector<32x128xf32>
    %28 = arith.addf %25, %27 : vector<32x128xf32>
    %29 = arith.truncf %22 : vector<32x1024xf32> to vector<32x1024xbf16>
    %c0_19 = arith.constant 0 : index
    %c0_20 = arith.constant 0 : index
    %30 = vector.load %arg7[%c0_19, %c0_20] : memref<1024x128xbf16, #tpu.memory_space<vmem>>, vector<1024x128xbf16>
    %cst_21 = arith.constant dense<0.000000e+00> : vector<32x128xf32>
    %31 = tpu.matmul %29, %30, %cst_21 {dimension_numbers = #tpu.dot_dimension_numbers<[1], [0], [0], [1], [0, 0, 1, 1], [], []>} : vector<32x1024xbf16>, vector<1024x128xbf16>, vector<32x128xf32> -> vector<32x128xf32>
    %c0_22 = arith.constant 0 : index
    %c0_23 = arith.constant 0 : index
    %32 = vector.load %arg8[%c0_22, %c0_23] : memref<1x128xf32, #tpu.memory_space<vmem>>, vector<1x128xf32>
    %33 = vector.broadcast %32 : vector<1x128xf32> to vector<32x128xf32>
    %34 = arith.addf %31, %33 : vector<32x128xf32>
    %cst_24 = arith.constant 0.000000e+00 : f32
    %35 = vector.broadcast %cst_24 : f32 to vector<32x128xf32>
    %36 = arith.maximumf %28, %35 : vector<32x128xf32>
    %c0_25 = arith.constant 0 : index
    %c0_26 = arith.constant 0 : index
    %37 = vector.load %arg9[%c0_25, %c0_26] : memref<32x128xf32, #tpu.memory_space<vmem>>, vector<32x128xf32>
    tpu.vector_store %arg9[%c0_25, %c0_26], %36 {strides = array<i32>} : memref<32x128xf32, #tpu.memory_space<vmem>>, vector<32x128xf32>,
    %cst_27 = arith.constant 0.000000e+00 : f32
    %38 = vector.broadcast %cst_27 : f32 to vector<32x128xf32>
    %39 = arith.maximumf %34, %38 : vector<32x128xf32>
    %c0_28 = arith.constant 0 : index
    %c0_29 = arith.constant 0 : index
    %40 = vector.load %arg10[%c0_28, %c0_29] : memref<32x128xf32, #tpu.memory_space<vmem>>, vector<32x128xf32>
    tpu.vector_store %arg10[%c0_28, %c0_29], %39 {strides = array<i32>} : memref<32x128xf32, #tpu.memory_space<vmem>>, vector<32x128xf32>,
    return
  }
  func.func @transform_0(%arg0: i32) -> (i32, i32) {
    %c0_i32 = arith.constant 0 : i32
    %c0_i32_0 = arith.constant 0 : i32
    return %arg0, %c0_i32 : i32, i32
  }
  func.func @transform_1(%arg0: i32) -> (i32, i32) {
    %c0_i32 = arith.constant 0 : i32
    %c0_i32_0 = arith.constant 0 : i32
    return %arg0, %c0_i32 : i32, i32
  }
  func.func @transform_2(%arg0: i32) -> (i32, i32) {
    %c0_i32 = arith.constant 0 : i32
    %c0_i32_0 = arith.constant 0 : i32
    %c0_i32_1 = arith.constant 0 : i32
    return %c0_i32, %c0_i32_0 : i32, i32
  }
  func.func @transform_3(%arg0: i32) -> (i32, i32) {
    %c0_i32 = arith.constant 0 : i32
    %c0_i32_0 = arith.constant 0 : i32
    %c0_i32_1 = arith.constant 0 : i32
    return %c0_i32, %c0_i32_0 : i32, i32
  }
  func.func @transform_4(%arg0: i32) -> (i32, i32) {
    %c0_i32 = arith.constant 0 : i32
    %c0_i32_0 = arith.constant 0 : i32
    %c0_i32_1 = arith.constant 0 : i32
    return %c0_i32, %c0_i32_0 : i32, i32
  }
  func.func @transform_5(%arg0: i32) -> (i32, i32) {
    %c0_i32 = arith.constant 0 : i32
    %c0_i32_0 = arith.constant 0 : i32
    %c0_i32_1 = arith.constant 0 : i32
    return %c0_i32, %c0_i32_0 : i32, i32
  }
  func.func @transform_6(%arg0: i32) -> (i32, i32) {
    %c0_i32 = arith.constant 0 : i32
    %c0_i32_0 = arith.constant 0 : i32
    %c0_i32_1 = arith.constant 0 : i32
    return %c0_i32, %c0_i32_0 : i32, i32
  }
  func.func @transform_7(%arg0: i32) -> (i32, i32) {
    %c0_i32 = arith.constant 0 : i32
    %c0_i32_0 = arith.constant 0 : i32
    %c0_i32_1 = arith.constant 0 : i32
    return %c0_i32, %c0_i32_0 : i32, i32
  }
  func.func @transform_8(%arg0: i32) -> (i32, i32) {
    %c0_i32 = arith.constant 0 : i32
    %c0_i32_0 = arith.constant 0 : i32
    return %arg0, %c0_i32 : i32, i32
  }
  func.func @transform_9(%arg0: i32) -> (i32, i32) {
    %c0_i32 = arith.constant 0 : i32
    %c0_i32_0 = arith.constant 0 : i32
    return %arg0, %c0_i32 : i32, i32
  }
}

module attributes {stable_mosaic.version = 11 : i64} {
  func.func @_regressor_kernel(%arg0: i32, %arg1: memref<32x256xf32, #tpu.memory_space<vmem>>, %arg2: memref<32x256xf32, #tpu.memory_space<vmem>>, %arg3: memref<256x1024xbf16, #tpu.memory_space<vmem>>, %arg4: memref<1x1024xf32, #tpu.memory_space<vmem>>, %arg5: memref<1024x128xbf16, #tpu.memory_space<vmem>>, %arg6: memref<1x128xf32, #tpu.memory_space<vmem>>, %arg7: memref<1024x128xbf16, #tpu.memory_space<vmem>>, %arg8: memref<1x128xf32, #tpu.memory_space<vmem>>, %arg9: memref<32x128xf32, #tpu.memory_space<vmem>>, %arg10: memref<32x128xf32, #tpu.memory_space<vmem>>) attributes {dimension_semantics = [#tpu.dimension_semantics<parallel>], iteration_bounds = array<i64: 2>, scalar_prefetch = 0 : i64, scratch_operands = 0 : i64, tpu.core_type = #tpu.core_type<tc>, window_params = [{transform_indices = @transform_0, window_bounds = array<i64: 32, 256>}, {transform_indices = @transform_1, window_bounds = array<i64: 32, 256>}, {pipeline_mode = #tpu.pipeline_mode<synchronous>, transform_indices = @transform_2, window_bounds = array<i64: 256, 1024>}, {pipeline_mode = #tpu.pipeline_mode<synchronous>, transform_indices = @transform_3, window_bounds = array<i64: 1, 1024>}, {pipeline_mode = #tpu.pipeline_mode<synchronous>, transform_indices = @transform_4, window_bounds = array<i64: 1024, 128>}, {pipeline_mode = #tpu.pipeline_mode<synchronous>, transform_indices = @transform_5, window_bounds = array<i64: 1, 128>}, {pipeline_mode = #tpu.pipeline_mode<synchronous>, transform_indices = @transform_6, window_bounds = array<i64: 1024, 128>}, {pipeline_mode = #tpu.pipeline_mode<synchronous>, transform_indices = @transform_7, window_bounds = array<i64: 1, 128>}, {transform_indices = @transform_8, window_bounds = array<i64: 32, 128>}, {transform_indices = @transform_9, window_bounds = array<i64: 32, 128>}]} {
    %c0 = arith.constant 0 : index
    %c0_0 = arith.constant 0 : index
    %0 = vector.load %arg3[%c0, %c0_0] : memref<256x1024xbf16, #tpu.memory_space<vmem>>, vector<256x1024xbf16>
    %c0_1 = arith.constant 0 : index
    %c0_2 = arith.constant 0 : index
    %1 = vector.load %arg1[%c0_1, %c0_2] : memref<32x256xf32, #tpu.memory_space<vmem>>, vector<32x256xf32>
    %2 = arith.truncf %1 : vector<32x256xf32> to vector<32x256xbf16>
    %cst = arith.constant dense<0.000000e+00> : vector<32x1024xf32>
    %3 = tpu.matmul %2, %0, %cst {dimension_numbers = #tpu.dot_dimension_numbers<[1], [0], [0], [1], [0, 0, 1, 1], [], []>} : vector<32x256xbf16>, vector<256x1024xbf16>, vector<32x1024xf32> -> vector<32x1024xf32>
    %c0_3 = arith.constant 0 : index
    %c0_4 = arith.constant 0 : index
    %4 = vector.load %arg4[%c0_3, %c0_4] : memref<1x1024xf32, #tpu.memory_space<vmem>>, vector<1x1024xf32>
    %5 = vector.broadcast %4 : vector<1x1024xf32> to vector<32x1024xf32>
    %6 = arith.addf %3, %5 : vector<32x1024xf32>
    %c0_5 = arith.constant 0 : index
    %c0_6 = arith.constant 0 : index
    %7 = vector.load %arg2[%c0_5, %c0_6] : memref<32x256xf32, #tpu.memory_space<vmem>>, vector<32x256xf32>
    %8 = arith.truncf %7 : vector<32x256xf32> to vector<32x256xbf16>
    %cst_7 = arith.constant dense<0.000000e+00> : vector<32x1024xf32>
    %9 = tpu.matmul %8, %0, %cst_7 {dimension_numbers = #tpu.dot_dimension_numbers<[1], [0], [0], [1], [0, 0, 1, 1], [], []>} : vector<32x256xbf16>, vector<256x1024xbf16>, vector<32x1024xf32> -> vector<32x1024xf32>
    %c0_8 = arith.constant 0 : index
    %c0_9 = arith.constant 0 : index
    %10 = vector.load %arg4[%c0_8, %c0_9] : memref<1x1024xf32, #tpu.memory_space<vmem>>, vector<1x1024xf32>
    %11 = vector.broadcast %10 : vector<1x1024xf32> to vector<32x1024xf32>
    %12 = arith.addf %9, %11 : vector<32x1024xf32>
    %cst_10 = arith.constant 0.000000e+00 : f32
    %13 = vector.broadcast %cst_10 : f32 to vector<32x1024xf32>
    %14 = arith.cmpf ogt, %6, %13 : vector<32x1024xf32>
    %cst_11 = arith.constant 2.000000e-01 : f32
    %15 = vector.broadcast %cst_11 : f32 to vector<32x1024xf32>
    %16 = arith.mulf %15, %6 : vector<32x1024xf32>
    %17 = arith.select %14, %6, %16 : vector<32x1024xi1>, vector<32x1024xf32>
    %cst_12 = arith.constant 0.000000e+00 : f32
    %18 = vector.broadcast %cst_12 : f32 to vector<32x1024xf32>
    %19 = arith.cmpf ogt, %12, %18 : vector<32x1024xf32>
    %cst_13 = arith.constant 2.000000e-01 : f32
    %20 = vector.broadcast %cst_13 : f32 to vector<32x1024xf32>
    %21 = arith.mulf %20, %12 : vector<32x1024xf32>
    %22 = arith.select %19, %12, %21 : vector<32x1024xi1>, vector<32x1024xf32>
    %23 = arith.truncf %17 : vector<32x1024xf32> to vector<32x1024xbf16>
    %c0_14 = arith.constant 0 : index
    %c0_15 = arith.constant 0 : index
    %24 = vector.load %arg5[%c0_14, %c0_15] : memref<1024x128xbf16, #tpu.memory_space<vmem>>, vector<1024x128xbf16>
    %cst_16 = arith.constant dense<0.000000e+00> : vector<32x128xf32>
    %25 = tpu.matmul %23, %24, %cst_16 {dimension_numbers = #tpu.dot_dimension_numbers<[1], [0], [0], [1], [0, 0, 1, 1], [], []>} : vector<32x1024xbf16>, vector<1024x128xbf16>, vector<32x128xf32> -> vector<32x128xf32>
    %c0_17 = arith.constant 0 : index
    %c0_18 = arith.constant 0 : index
    %26 = vector.load %arg6[%c0_17, %c0_18] : memref<1x128xf32, #tpu.memory_space<vmem>>, vector<1x128xf32>
    %27 = vector.broadcast %26 : vector<1x128xf32> to vector<32x128xf32>
    %28 = arith.addf %25, %27 : vector<32x128xf32>
    %29 = arith.truncf %22 : vector<32x1024xf32> to vector<32x1024xbf16>
    %c0_19 = arith.constant 0 : index
    %c0_20 = arith.constant 0 : index
    %30 = vector.load %arg7[%c0_19, %c0_20] : memref<1024x128xbf16, #tpu.memory_space<vmem>>, vector<1024x128xbf16>
    %cst_21 = arith.constant dense<0.000000e+00> : vector<32x128xf32>
    %31 = tpu.matmul %29, %30, %cst_21 {dimension_numbers = #tpu.dot_dimension_numbers<[1], [0], [0], [1], [0, 0, 1, 1], [], []>} : vector<32x1024xbf16>, vector<1024x128xbf16>, vector<32x128xf32> -> vector<32x128xf32>
    %c0_22 = arith.constant 0 : index
    %c0_23 = arith.constant 0 : index
    %32 = vector.load %arg8[%c0_22, %c0_23] : memref<1x128xf32, #tpu.memory_space<vmem>>, vector<1x128xf32>
    %33 = vector.broadcast %32 : vector<1x128xf32> to vector<32x128xf32>
    %34 = arith.addf %31, %33 : vector<32x128xf32>
    %cst_24 = arith.constant 0.000000e+00 : f32
    %35 = vector.broadcast %cst_24 : f32 to vector<32x128xf32>
    %36 = arith.maximumf %28, %35 : vector<32x128xf32>
    %c0_25 = arith.constant 0 : index
    %c0_26 = arith.constant 0 : index
    %37 = vector.load %arg9[%c0_25, %c0_26] : memref<32x128xf32, #tpu.memory_space<vmem>>, vector<32x128xf32>
    tpu.vector_store %arg9[%c0_25, %c0_26], %36 {strides = array<i32>} : memref<32x128xf32, #tpu.memory_space<vmem>>, vector<32x128xf32>,
    %cst_27 = arith.constant 0.000000e+00 : f32
    %38 = vector.broadcast %cst_27 : f32 to vector<32x128xf32>
    %39 = arith.maximumf %34, %38 : vector<32x128xf32>
    %c0_28 = arith.constant 0 : index
    %c0_29 = arith.constant 0 : index
    %40 = vector.load %arg10[%c0_28, %c0_29] : memref<32x128xf32, #tpu.memory_space<vmem>>, vector<32x128xf32>
    tpu.vector_store %arg10[%c0_28, %c0_29], %39 {strides = array<i32>} : memref<32x128xf32, #tpu.memory_space<vmem>>, vector<32x128xf32>,
    return
  }
  func.func @transform_0(%arg0: i32) -> (i32, i32) {
    %c0_i32 = arith.constant 0 : i32
    %c0_i32_0 = arith.constant 0 : i32
    return %arg0, %c0_i32 : i32, i32
  }
  func.func @transform_1(%arg0: i32) -> (i32, i32) {
    %c0_i32 = arith.constant 0 : i32
    %c0_i32_0 = arith.constant 0 : i32
    return %arg0, %c0_i32 : i32, i32
  }
  func.func @transform_2(%arg0: i32) -> (i32, i32) {
    %c0_i32 = arith.constant 0 : i32
    %c0_i32_0 = arith.constant 0 : i32
    %c0_i32_1 = arith.constant 0 : i32
    return %c0_i32, %c0_i32_0 : i32, i32
  }
  func.func @transform_3(%arg0: i32) -> (i32, i32) {
    %c0_i32 = arith.constant 0 : i32
    %c0_i32_0 = arith.constant 0 : i32
    %c0_i32_1 = arith.constant 0 : i32
    return %c0_i32, %c0_i32_0 : i32, i32
  }
  func.func @transform_4(%arg0: i32) -> (i32, i32) {
    %c0_i32 = arith.constant 0 : i32
    %c0_i32_0 = arith.constant 0 : i32
    %c0_i32_1 = arith.constant 0 : i32
    return %c0_i32, %c0_i32_0 : i32, i32
  }
  func.func @transform_5(%arg0: i32) -> (i32, i32) {
    %c0_i32 = arith.constant 0 : i32
    %c0_i32_0 = arith.constant 0 : i32
    %c0_i32_1 = arith.constant 0 : i32
    return %c0_i32, %c0_i32_0 : i32, i32
  }
  func.func @transform_6(%arg0: i32) -> (i32, i32) {
    %c0_i32 = arith.constant 0 : i32
    %c0_i32_0 = arith.constant 0 : i32
    %c0_i32_1 = arith.constant 0 : i32
    return %c0_i32, %c0_i32_0 : i32, i32
  }
  func.func @transform_7(%arg0: i32) -> (i32, i32) {
    %c0_i32 = arith.constant 0 : i32
    %c0_i32_0 = arith.constant 0 : i32
    %c0_i32_1 = arith.constant 0 : i32
    return %c0_i32, %c0_i32_0 : i32, i32
  }
  func.func @transform_8(%arg0: i32) -> (i32, i32) {
    %c0_i32 = arith.constant 0 : i32
    %c0_i32_0 = arith.constant 0 : i32
    return %arg0, %c0_i32 : i32, i32
  }
  func.func @transform_9(%arg0: i32) -> (i32, i32) {
    %c0_i32 = arith.constant 0 : i32
    %c0_i32_0 = arith.constant 0 : i32
    return %arg0, %c0_i32 : i32, i32
  }
}

</mosaic_0001>

<bundles_post_ra>
// kernel: _forward_impl.1
= control target key start
LH: loop header
LB: loop body
LE: loop exit
PB: predicated region body
PF: predicated region fallthrough
CT: control target
= control target key end

     0   :  { %s6257_s0 = inlined_call_operand.hbm [shape: f32[48,256], index: 0, kind: input, shape index: {}]   ;;  %s6258_s1 = inlined_call_operand.hbm [shape: f32[48,256], index: 1, kind: input, shape index: {}]   ;;  %s6259_s2 = inlined_call_operand.hbm [shape: bf16[256,1024], index: 2, kind: input, shape index: {}]   ;;  %s6260_s3 = inlined_call_operand.vmem [shape: f32[1,1024], index: 3, kind: input, shape index: {}]   ;;  %s6261_s4 = inlined_call_operand.hbm [shape: bf16[1024,128], index: 4, kind: input, shape index: {}]   ;;  %s6262_s5 = inlined_call_operand.vmem [shape: f32[1,128], index: 5, kind: input, shape index: {}]   ;;  %s6263_s6 = inlined_call_operand.hbm [shape: bf16[1024,128], index: 6, kind: input, shape index: {}]   ;;  %s6264_s7 = inlined_call_operand.vmem [shape: f32[1,128], index: 7, kind: input, shape index: {}]   ;;  %s6265_s8 = inlined_call_operand.vmem [shape: f32[48,128], index: 8, kind: output, shape index: {0}]   ;;  %s6266_s9 = inlined_call_operand.vmem [shape: f32[48,128], index: 9, kind: output, shape index: {1}]  }
   0x1   :  { %6348 = sst [smem:[#allocation92_spill]] %s6261_s4 }
   0x2   :  { %6349 = sst [smem:[#allocation93_spill]] %s6265_s8 }
   0x3   :  { %6350 = sst [smem:[#allocation94_spill]] %s6266_s9 }
   0x4   :  { %15 = vsyncpa [#allocation3], 0 }
   0x5   :  { %17 = vsyncpa [#allocation3 + $0x1], 0 }
   0x6   :  { %18 = vsyncpa [#allocation5], 0 }
   0x7   :  { %20 = vsyncpa [#allocation5 + $0x1], 0 }
   0x8   :  { %21 = vsyncpa [#allocation8], 0  ;;  %s5163_s30 = smov 0   ;;  %s5165_s10 = smov 0  }
   0x9   :  { %s5167_s11 = smov 0   ;;  %s5169_s12 = smov 0  }
   0xa LB: > { %s5182_s13 = sadd.s32 4294967295, %s5034_s12   ;;  %s5185_s14 = sadd.s32 1, %s5034_s12   ;;  %s5034_s12 = sphi %s5169_s12, %s6528_s12   ;;  %s5030_s11 = sphi %s5167_s11, %s6532_s11   ;;  %s5026_s10 = sphi %s5165_s10, %s6531_s10   ;;  %s5022_s30 = sphi %s5163_s30, %s6530_s30  }
   0xb   : > { %6351 = sst [smem:[#allocation16_spill]] %s5185_s14  ;;  %s31_s15 = ssub.s32 %s5034_s12, %s5185_s14 }
   0xc   : > { %s34_s16 = sadd.s32 1, %s5030_s11  ;;  %p32_p0 = scmp.eq.s32.totalorder %s31_s15, 0 }
   0xd   : > { %p41_p1 = scmp.ne.s32.totalorder %s5030_s11, %s5026_s10  ;;  %p42_p2 = scmp.eq.s32.totalorder %s5034_s12, 0 }
   0xe   : > { %p47_p3 = scmp.ne.s32.totalorder %s5026_s10, %s5022_s30  ;;  %p6267_p5 = scmp.eq.s32.totalorder %s5182_s13, 0 }
   0xf   : > { %s5195_s17 = scalar_select %p32_p0, %s5030_s11, %s34_s16  }
  0x10   : > { %p5197_p4 = por %p42_p2, %p41_p1  ;;  %p223_p6 = scmp.eq.s32.totalorder %s5182_s13, 1 }
  0x11   : > { %6352 = sst [smem:[#allocation17_spill]] %s5195_s17  ;;  %p3898_p7 = scmp.ge.s32.totalorder %s5034_s12, 1 }
  0x12   : > { %s6353_s18 = scalar_select %p5197_p4, 1, 0 }
  0x13   : > { %p5206_p8 = por %p6267_p5, %p47_p3  ;;  %p262_p9 = scmp.lt.s32.totalorder %s5034_s12, 3 }
  0x14   : > { %p5211_p10 = por %p223_p6, %p41_p1  ;;  %s5100_s22 = smov [#allocation7]  }
  0x15   : > { %s6354_s19 = scalar_select %p5206_p8, 1, 0 }
  0x16   : > { %s6355_s20 = scalar_select %p5211_p10, 1, 0 }
  0x17   : > { %p5215_p11 = pnand %p3898_p7, %p262_p9  ;;  %s290_s23 = sshll.u32 %s5100_s22, 4  ;;  %s291_s23 = int_to_ptr.vmem [resolvable:$true] %s290_s23 }
  0x18   : > { %s5101_s25 = smov [#allocation6]   ;;  %s6358_s4 = sld [smem:[#allocation92_spill]] }
  0x19   : > { %s6356_s21 = scalar_select %p5215_p11, 1, 0 }
  0x1a   : > { %p4469_p12 = pneg %p5215_p11  ;;  %s274_s26 = sshll.u32 %s5101_s25, 4  ;;  %s5227_s26 = int_to_ptr.vmem [resolvable:$true] %s274_s26 }
  0x1c   : > { %p5223_p13 = pnand %p4469_p12, %p6267_p5 }
  0x1e   : > { %s4784_s29 = scalar_lea.hbm %s6358_s4, 8192  ;;  %p5237_p1 = pneg %p5223_p13 }
  0x1f   : > { %p4785_p0 = scmp.ne.s32.totalorder %s6358_s4, %s4784_s29  ;;  %p4791_p6 = scmp.lt.u32.totalorder %s4784_s29, %s6358_s4 }
  0x21   : > { %p4787_p2 = pnand %p5237_p1, %p4785_p0 }
  0x23   : > { %p4788_p3 = pneg %p4787_p2 }
  0x25   : > { %p4793_p7 = pnand %p4791_p6, %p4788_p3 }
  0x27   : > { %4796 = shalt.err (!%p4793_p7)
}
  0x28   : > { %s4797_s27 = scalar_lea.vmem %s291_s23, 8192  ;;  %p4805_p10 = scmp.lt.s32.totalorder %s291_s23, %s291_s23 }
  0x29   : > { %p4798_p9 = scmp.ne.s32.totalorder %s291_s23, %s4797_s27  ;;  %p4806_p8 = scmp.lt.s32.totalorder %s4797_s27, %s4797_s27 }
  0x2b   : > { %p4800_p12 = pnand %p4798_p9, %p5237_p1  ;;  %p4807_p11 = por %p4806_p8, %p4805_p10 }
  0x2d   : > { %p4801_p5 = pneg %p4800_p12 }
  0x2f   : > { %p4808_p4 = pnand %p4807_p11, %p4801_p5 }
  0x31   : > { %4811 = shalt.err (!%p4808_p4)
}
  0x32   : > { %s6272_s28 = smov 64   ;;  %s6273_s30 = smov 4  }
  0x33   : > { %4475 = dma.hbm_to_vmem [thread:$0]  (!%p5223_p13), %s6358_s4, 8192, %s291_s23, [#allocation8], %s6272_s28, %s6272_s28, %s6273_s30  }
  0x34   : > { %s4812_s17 = scalar_lea.hbm %s6259_s2, 16384 }
  0x35   : > { %p4813_p4 = scmp.ne.s32.totalorder %s6259_s2, %s4812_s17  ;;  %p4819_p10 = scmp.lt.u32.totalorder %s4812_s17, %s6259_s2 }
  0x37   : > { %p4815_p5 = pnand %p4813_p4, %p5237_p1 }
  0x39   : > { %p4816_p8 = pneg %p4815_p5 }
  0x3b   : > { %p4821_p11 = pnand %p4819_p10, %p4816_p8 }
  0x3d   : > { %4824 = shalt.err (!%p4821_p11)
}
  0x3e   : > { %s4825_s23 = scalar_lea.vmem %s5227_s26, 16384  ;;  %p4833_p6 = scmp.lt.s32.totalorder %s5227_s26, %s5227_s26 }
  0x3f   : > { %p4826_p0 = scmp.ne.s32.totalorder %s5227_s26, %s4825_s23  ;;  %p4834_p7 = scmp.lt.s32.totalorder %s4825_s23, %s4825_s23 }
  0x41   : > { %p4828_p2 = pnand %p4826_p0, %p5237_p1  ;;  %p4835_p9 = por %p4834_p7, %p4833_p6 }
  0x43   : > { %p4829_p3 = pneg %p4828_p2 }
  0x45   : > { %p4836_p12 = pnand %p4835_p9, %p4829_p3 }
  0x47   : > { %4839 = shalt.err (!%p4836_p12)
}
  0x48   : > { %s5104_s14 = smov 512   ;;  %s5105_s8 = smov 32  }
  0x49   : > { %4472 = dma.hbm_to_vmem [thread:$0]  (!%p5223_p13), %s6259_s2, 16384, %s5227_s26, [#allocation5], %s5104_s14, %s5104_s14, %s5105_s8  }
  0x4a   : > { %s5106_s29 = smov [#allocation9]   ;;  %s4840_s27 = scalar_lea.hbm %s6263_s6, 8192 }
  0x4b   : > { %s306_s15 = sshll.u32 %s5106_s29, 4  ;;  %p4841_p4 = scmp.ne.s32.totalorder %s6263_s6, %s4840_s27  ;;  %s307_s15 = int_to_ptr.vmem [resolvable:$true] %s306_s15 }
  0x4c   : > { %p4847_p10 = scmp.lt.u32.totalorder %s4840_s27, %s6263_s6 }
  0x4d   : > { %p4843_p5 = pnand %p4841_p4, %p5237_p1 }
  0x4f   : > { %p4844_p8 = pneg %p4843_p5 }
  0x51   : > { %p4849_p11 = pnand %p4847_p10, %p4844_p8 }
  0x53   : > { %4852 = shalt.err (!%p4849_p11)
}
  0x54   : > { %s4853_s26 = scalar_lea.vmem %s307_s15, 8192  ;;  %p4861_p6 = scmp.lt.s32.totalorder %s307_s15, %s307_s15 }
  0x55   : > { %p4854_p0 = scmp.ne.s32.totalorder %s307_s15, %s4853_s26  ;;  %p4862_p7 = scmp.lt.s32.totalorder %s4853_s26, %s4853_s26 }
  0x57   : > { %p4856_p2 = pnand %p4854_p0, %p5237_p1  ;;  %p4863_p9 = por %p4862_p7, %p4861_p6 }
  0x59   : > { %p4857_p3 = pneg %p4856_p2 }
  0x5b   : > { %p4864_p12 = pnand %p4863_p9, %p4857_p3 }
  0x5d   : > { %4867 = shalt.err (!%p4864_p12)
}
  0x5e   : > { %s6360_s28 = smov 4   ;;  %s6361_s14 = smov 64  }
  0x5f   : > { %4478 = dma.hbm_to_vmem [thread:$0]  (!%p5223_p13), %s6263_s6, 8192, %s307_s15, [#allocation8], %s6361_s14, %s6361_s14, %s6360_s28  }
  0x60   : > { %p3902_p4 = scmp.ge.s32.totalorder %s5034_s12, 2 }
  0x61   : > { %p6362_p1 = scmp.ne.s32.totalorder (!%p3902_p4), %s6353_s18, 0 }
  0x62   : > { %319 = sbr.rel (%p3902_p4) target bundleno = 177 (0xb1), region = 40 }
  0x69   : > { %322 = sbr.rel (!%p6362_p1) target bundleno = 140 (0x8c), region = 44  ;;  %s323_s16 = sand.u32 (%p6362_p1), 1, %s5030_s11  }
  0x6a   : > { %s3904_s8 = sshll.u32 (%p6362_p1), %s5034_s12, 2  ;;  %s3903_s9 = sshll.u32 (%p6362_p1), %s323_s16, 6 }
  0x6b   : > { %s329_s17 = ssub.s32 (%p6362_p1), 6, %s3904_s8  ;;  %s5308_s22 = scalar_lea.sflag (%p6362_p1), [#allocation3], %s323_s16 }
  0x6c   : > { %p330_p5 = scmp.lt.s32.totalorder (%p6362_p1), %s329_s17, 4  ;;  %s327_s15 = scalar_lea.vmem (%p6362_p1), [#allocation2], %s3903_s9 }
  0x70   : > { %s6534_s17 = smov (!%p330_p5, %s329_s17), 4 }
  0x71   : > { %s5305_s24 = sshll.u32 %s6534_s17, 8 }
  0x72   : > { %s335_s29 = ssub.s32 1024, %s5305_s24 }
  0x73   : > { %336 = vsyncadd %s5308_s22, %s335_s29  ;;  %p3907_p13 = scmp.ne.s32.totalorder %s5305_s24, 0  ;;  %s4221_s25 = sshll.u32 %s5034_s12, 10 }
  0x74   : > { %s5316_s26 = scalar_lea.hbm %s6257_s0, %s4221_s25  ;;  %s342_s28 = sshll.u32 %s327_s15, 4  ;;  %s5318_s28 = int_to_ptr.vmem [resolvable:$true] %s342_s28 }
  0x75   : > { %s4868_s14 = scalar_lea.hbm %s5316_s26, %s5305_s24  ;;  %s4872_s16 = scalar_lea.hbm %s6257_s0, 1536 }
  0x76   : > { %p4869_p8 = scmp.ne.s32.totalorder %s5316_s26, %s4868_s14  ;;  %p4873_p0 = scmp.lt.u32.totalorder %s5316_s26, %s6257_s0 }
  0x77   : > { %p4874_p2 = scmp.lt.u32.totalorder %s4872_s16, %s4868_s14  ;;  %p4876_p6 = scmp.lt.u32.totalorder %s4868_s14, %s5316_s26 }
  0x78   : > { %p4870_p10 = pnand %p4869_p8, %p3907_p13 }
  0x79   : > { %p4875_p3 = por %p4874_p2, %p4873_p0 }
  0x7a   : > { %p4871_p11 = pneg %p4870_p10 }
  0x7b   : > { %p4877_p7 = por %p4876_p6, %p4875_p3 }
  0x7d   : > { %p4878_p9 = pnand %p4877_p7, %p4871_p11 }
  0x7f   : > { %4881 = shalt.err (!%p4878_p9)
}
  0x80   : > { %s4882_s17 = scalar_lea.vmem %s5318_s28, %s5305_s24  ;;  %s5107_s29 = smov [#allocation2]  }
  0x81   : > { %p4883_p12 = scmp.ne.s32.totalorder %s5318_s28, %s4882_s17  ;;  %s4886_s15 = sshll.u32 %s5107_s29, 4  ;;  %s4887_s15 = int_to_ptr.vmem [resolvable:$false] %s4886_s15 }
  0x82   : > { %s4888_s25 = scalar_lea.vmem %s4887_s15, 2048  ;;  %p4889_p5 = scmp.lt.s32.totalorder %s5318_s28, %s4887_s15 }
  0x83   : > { %p4884_p4 = pnand %p4883_p12, %p3907_p13  ;;  %p4890_p8 = scmp.lt.s32.totalorder %s4888_s25, %s4882_s17 }
  0x85   : > { %p4885_p1 = pneg %p4884_p4  ;;  %p4891_p10 = por %p4890_p8, %p4889_p5 }
  0x87   : > { %p4892_p0 = pnand %p4891_p10, %p4885_p1 }
  0x89   : > { %4895 = shalt.err (!%p4892_p0)
}
  0x8a   : > { %s5108_s27 = smov 256   ;;  %s5109_s23 = smov 16  }
  0x8b   : > { %348 = dma.hbm_to_vmem [thread:$0]  (%p3907_p13), %s5316_s26, %s5305_s24, %s5318_s28, %s5308_s22, %s5108_s27, %s5108_s27, %s5109_s23  }
  0x8c PF: > { %p6363_p11 = scmp.ne.s32.totalorder %s6353_s18, 0 }
  0x8d   : > { %s352_s14 = sand.u32 (%p6363_p11), 1, %s5034_s12   ;;  %s354_s4 = sand.u32 (%p6363_p11), 1, %s5030_s11  }
  0x8e   : > { %351 = sbr.rel (!%p6363_p11) target bundleno = 177 (0xb1), region = 48  ;;  %s3912_s30 = sshll.u32 (%p6363_p11), %s354_s4, 6 }
  0x8f   : > { %s3913_s16 = sshll.u32 (%p6363_p11), %s5034_s12, 2  ;;  %s5353_s29 = scalar_lea.sflag (%p6363_p11), [#allocation5], %s352_s14 }
  0x90   : > { %s358_s8 = ssub.s32 (%p6363_p11), 6, %s3913_s16  ;;  %s356_s24 = scalar_lea.vmem (%p6363_p11), [#allocation4], %s3912_s30 }
  0x91   : > { %p359_p2 = scmp.lt.s32.totalorder (%p6363_p11), %s358_s8, 4 }
  0x95   : > { %s6536_s8 = smov (!%p359_p2, %s358_s8), 4 }
  0x96   : > { %s5350_s9 = sshll.u32 %s6536_s8, 8 }
  0x97   : > { %s364_s17 = ssub.s32 1024, %s5350_s9 }
  0x98   : > { %365 = vsyncadd %s5353_s29, %s364_s17  ;;  %p3916_p13 = scmp.ne.s32.totalorder %s5350_s9, 0  ;;  %s4224_s18 = sshll.u32 %s5034_s12, 10 }
  0x99   : > { %s5361_s28 = scalar_lea.hbm %s6258_s1, %s4224_s18  ;;  %s371_s15 = sshll.u32 %s356_s24, 4  ;;  %s5363_s15 = int_to_ptr.vmem [resolvable:$true] %s371_s15 }
  0x9a   : > { %s4896_s25 = scalar_lea.hbm %s5361_s28, %s5350_s9  ;;  %s4900_s12 = scalar_lea.hbm %s6258_s1, 1536 }
  0x9b   : > { %p4897_p3 = scmp.ne.s32.totalorder %s5361_s28, %s4896_s25  ;;  %p4901_p9 = scmp.lt.u32.totalorder %s5361_s28, %s6258_s1 }
  0x9c   : > { %p4902_p12 = scmp.lt.u32.totalorder %s4900_s12, %s4896_s25  ;;  %p4904_p1 = scmp.lt.u32.totalorder %s4896_s25, %s5361_s28 }
  0x9d   : > { %p4898_p6 = pnand %p4897_p3, %p3916_p13 }
  0x9e   : > { %p4903_p4 = por %p4902_p12, %p4901_p9 }
  0x9f   : > { %p4899_p7 = pneg %p4898_p6 }
  0xa0   : > { %p4905_p5 = por %p4904_p1, %p4903_p4 }
  0xa2   : > { %p4906_p8 = pnand %p4905_p5, %p4899_p7 }
  0xa4   : > { %4909 = shalt.err (!%p4906_p8)
}
  0xa5   : > { %s4910_s30 = scalar_lea.vmem %s5363_s15, %s5350_s9  ;;  %s5110_s16 = smov [#allocation4]  }
  0xa6   : > { %p4911_p10 = scmp.ne.s32.totalorder %s5363_s15, %s4910_s30  ;;  %s4914_s8 = sshll.u32 %s5110_s16, 4  ;;  %s4915_s8 = int_to_ptr.vmem [resolvable:$false] %s4914_s8 }
  0xa7   : > { %s4916_s17 = scalar_lea.vmem %s4915_s8, 2048  ;;  %p4917_p2 = scmp.lt.s32.totalorder %s5363_s15, %s4915_s8 }
  0xa8   : > { %p4912_p0 = pnand %p4911_p10, %p3916_p13  ;;  %p4918_p3 = scmp.lt.s32.totalorder %s4916_s17, %s4910_s30 }
  0xaa   : > { %p4913_p11 = pneg %p4912_p0  ;;  %p4919_p6 = por %p4918_p3, %p4917_p2 }
  0xac   : > { %p4920_p9 = pnand %p4919_p6, %p4913_p11 }
  0xae   : > { %4923 = shalt.err (!%p4920_p9)
}
  0xaf   : > { %s5111_s24 = smov 256   ;;  %s5112_s18 = smov 16  }
  0xb0   : > { %377 = dma.hbm_to_vmem [thread:$0]  (%p3916_p13), %s5361_s28, %s5350_s9, %s5363_s15, %s5353_s29, %s5111_s24, %s5111_s24, %s5112_s18  }
  0xb1 PF: > { %p6364_p7 = scmp.ne.s32.totalorder %s6356_s21, 0 }
  0xb3   : > { %383 = sbr.rel (%p6364_p7) target bundleno = 1026 (0x402), region = 52 }
  0xba   : > { %s5393_s22 = sand.u32 1, %s5026_s10   ;;  %p6365_p12 = scmp.ne.s32.totalorder %s6354_s19, 0 }
  0xbb   : > { %s3922_s26 = sshll.u32 %s5393_s22, 6  ;;  %s386_s25 = scalar_lea.sflag [#allocation3], %s5393_s22 }
  0xbc   : > { %s5397_s27 = scalar_lea.vmem [#allocation2], %s3922_s26 }
  0xbd   : > { %5005 = dma.done.wait (%p6365_p12), %s386_s25, 1024  }
  0xbe   : > { %5007 = vsyncadd (%p6365_p12), %s386_s25, 4294966272  ;;  %s394_s9 = sand.u32 1, %s5182_s13   ;;  %s5404_s29 = scalar_lea.vmem [#allocation4], %s3922_s26 }
  0xbf   : > { %s395_s21 = scalar_lea.sflag [#allocation5], %s394_s9 }
  0xc0   : > { %5009 = dma.done.wait (%p6365_p12), %s395_s21, 1024  }
  0xc1   : > { %5011 = vsyncadd (%p6365_p12), %s395_s21, 4294966272  ;;  %p6366_p13 = scmp.eq.s32.totalorder %s5182_s13, 0 }
  0xc3   : > { %5013 = dma.done.wait (%p6366_p13), [#allocation5], 16384   ;;  %p6367_p4 = pmov %p6366_p13 }
  0xc5   : > { %5015 = vsyncadd (%p6367_p4), [#allocation5], 4294950912  ;;  %p6368_p1 = pmov %p6367_p4 }
  0xc7   : > { %5017 = dma.done.wait (%p6368_p1), [#allocation8], 16384   ;;  %p6369_p5 = pmov %p6368_p1 }
  0xc8   : > { %v476_v0 = vld [vmem:[#allocation6] sm:$0xff]  ;;  %v477_v2 = vld [vmem:[#allocation6 + $0x8] sm:$0xff]  ;;  %v607_v54 = vld [vmem:[%s5397_s27 + $0x18] sm:$0xff]  ;;  %s3927_s12 = sshll.u32 %s5393_s22, 5  ;;  %p6518_p8 = scmp.ne.s32.totalorder %s6355_s20, 0 }
  0xc9   : > { %5019 = vsyncadd (%p6369_p5), [#allocation8], 4294950912  ;;  %v480_v1 = vld [vmem:[#allocation6 + $0x20] sm:$0xff]  ;;  %v481_v4 = vld [vmem:[#allocation6 + $0x28] sm:$0xff]  ;;  %s6135_s14 = scalar_lea.vmem [#allocation10], %s3927_s12   ;;  %s6146_s16 = scalar_lea.vmem [#allocation11], %s3927_s12  }
  0xca   : > { %v5418_v3 = vcombine.high %v476_v0, %v480_v1  ;;  %v5420_v5 = vcombine.low %v476_v0, %v480_v1  ;;  %v484_v6 = vld [vmem:[#allocation6 + $0x40] sm:$0xff]  ;;  %v5422_v8 = vcombine.high %v477_v2, %v481_v4  ;;  %v5424_v9 = vcombine.low %v477_v2, %v481_v4  ;;  %v485_v11 = vld [vmem:[#allocation6 + $0x48] sm:$0xff]  ;;  %s4189_s8 = sshll.u32 (%p6518_p8), %s5182_s13, 2  ;;  %s4225_s17 = sshll.u32 (%p6518_p8), %s5182_s13, 5 }
  0xcb   : > { %v488_v7 = vld [vmem:[#allocation6 + $0x60] sm:$0xff]  ;;  %v489_v12 = vld [vmem:[#allocation6 + $0x68] sm:$0xff]  ;;  %s3416_s24 = ssub.s32 (%p6518_p8), 6, %s4189_s8  ;;  %s6519_s26 = sld [smem:[#allocation93_spill]] (%p6518_p8) }
  0xcc   : > { %v5426_v10 = vcombine.high %v484_v6, %v488_v7  ;;  %v492_v13 = vld [vmem:[#allocation6 + $0x80] sm:$0xff]  ;;  %1298 = vmatprep.subr.bf16.mxu0 %v5418_v3  ;;  %v5429_v14 = vcombine.high %v485_v11, %v489_v12  ;;  %v493_v16 = vld [vmem:[#allocation6 + $0x88] sm:$0xff]  ;;  %1351 = vmatprep.subr.bf16.mxu1 %v5422_v8  ;;  %v5433_v18 = vcombine.low %v484_v6, %v488_v7  ;;  %p3417_p10 = scmp.lt.s32.totalorder (%p6518_p8), %s3416_s24, 4 }
  0xcd   : > { %v496_v15 = vld [vmem:[#allocation6 + $0xa0] sm:$0xff]  ;;  %v497_v17 = vld [vmem:[#allocation6 + $0xa8] sm:$0xff]  ;;  %1299 = vmatpush1.bf16.msra.mxu0 %v5420_v5  ;;  %1352 = vmatpush1.bf16.msra.mxu1 %v5424_v9  ;;  %v5437_v19 = vcombine.low %v485_v11, %v489_v12 }
  0xce   : > { %1300 = vmatprep.subr.bf16.mxu0 %v5426_v10  ;;  %v5439_v20 = vcombine.high %v492_v13, %v496_v15  ;;  %1353 = vmatprep.subr.bf16.mxu1 %v5429_v14  ;;  %v5442_v21 = vcombine.high %v493_v16, %v497_v17  ;;  %v500_v22 = vld [vmem:[#allocation6 + $0xc0] sm:$0xff]  ;;  %v501_v24 = vld [vmem:[#allocation6 + $0xc8] sm:$0xff]  ;;  %v5445_v26 = vcombine.low %v492_v13, %v496_v15 }
  0xcf   : > { %v504_v23 = vld [vmem:[#allocation6 + $0xe0] sm:$0xff]  ;;  %v505_v25 = vld [vmem:[#allocation6 + $0xe8] sm:$0xff]  ;;  %v5449_v27 = vcombine.low %v493_v16, %v497_v17 }
  0xd0   : > { %v5451_v28 = vcombine.high %v500_v22, %v504_v23  ;;  %v5454_v29 = vcombine.high %v501_v24, %v505_v25  ;;  %v508_v30 = vld [vmem:[#allocation6 + $0x100] sm:$0xff]  ;;  %v509_v32 = vld [vmem:[#allocation6 + $0x108] sm:$0xff]  ;;  %v5457_v34 = vcombine.low %v500_v22, %v504_v23  ;;  %v5461_v35 = vcombine.low %v501_v24, %v505_v25 }
  0xd1   : > { %1301 = vmatpush1.bf16.msra.mxu0 %v5433_v18  ;;  %1354 = vmatpush1.bf16.msra.mxu1 %v5437_v19  ;;  %v512_v31 = vld [vmem:[#allocation6 + $0x120] sm:$0xff]  ;;  %v513_v33 = vld [vmem:[#allocation6 + $0x128] sm:$0xff]  ;;  %s6159_s25 = scalar_lea.vmem (%p6518_p8), %s6519_s26, %s4225_s17  }
  0xd2   : > { %1302 = vmatprep.subr.bf16.mxu0 %v5439_v20  ;;  %1355 = vmatprep.subr.bf16.mxu1 %v5442_v21  ;;  %v5463_v36 = vcombine.high %v508_v30, %v512_v31  ;;  %v5466_v37 = vcombine.high %v509_v32, %v513_v33  ;;  %v516_v38 = vld [vmem:[#allocation6 + $0x140] sm:$0xff]  ;;  %v517_v40 = vld [vmem:[#allocation6 + $0x148] sm:$0xff]  ;;  %v5469_v42 = vcombine.low %v508_v30, %v512_v31 }
  0xd3   : > { %v520_v39 = vld [vmem:[#allocation6 + $0x160] sm:$0xff]  ;;  %v521_v41 = vld [vmem:[#allocation6 + $0x168] sm:$0xff]  ;;  %v5473_v43 = vcombine.low %v509_v32, %v513_v33 }
  0xd4   : > { %v5475_v44 = vcombine.high %v516_v38, %v520_v39  ;;  %v5478_v45 = vcombine.high %v517_v40, %v521_v41  ;;  %v524_v46 = vld [vmem:[#allocation6 + $0x180] sm:$0xff]  ;;  %v525_v48 = vld [vmem:[#allocation6 + $0x188] sm:$0xff]  ;;  %v5481_v50 = vcombine.low %v516_v38, %v520_v39  ;;  %v5485_v51 = vcombine.low %v517_v40, %v521_v41 }
  0xd5   : > { %1303 = vmatpush1.bf16.msra.mxu0 %v5445_v26  ;;  %1356 = vmatpush1.bf16.msra.mxu1 %v5449_v27  ;;  %v528_v47 = vld [vmem:[#allocation6 + $0x1a0] sm:$0xff]  ;;  %v529_v49 = vld [vmem:[#allocation6 + $0x1a8] sm:$0xff] }
  0xd6   : > { %1304 = vmatprep.subr.bf16.mxu0 %v5451_v28  ;;  %1357 = vmatprep.subr.bf16.mxu1 %v5454_v29  ;;  %v5487_v52 = vcombine.high %v524_v46, %v528_v47  ;;  %v605_v53 = vld [vmem:[%s5397_s27 + $0x8] sm:$0xff]  ;;  %v5492_v55 = vcombine.high %v525_v48, %v529_v49  ;;  %v532_v56 = vld [vmem:[#allocation6 + $0x1c0] sm:$0xff]  ;;  %v5497_v61 = vcombine.low %v524_v46, %v528_v47 }
  0xd7   : > { %v536_v57 = vld [vmem:[#allocation6 + $0x1e0] sm:$0xff]  ;;  %v5494_v58 = vpack.c.bf16 %v607_v54, %v605_v53  ;;  %v533_v59 = vld [vmem:[#allocation6 + $0x1c8] sm:$0xff]  ;;  %v5502_v62 = vcombine.low %v525_v48, %v529_v49 }
  0xd8   : > { %v537_v60 = vld [vmem:[#allocation6 + $0x1e8] sm:$0xff]  ;;  %v5504_v63 = vcombine.high %v532_v56, %v536_v57  ;;  %v540_v1 = vld [vmem:[#allocation6 + $0x200] sm:$0xff]  ;;  %v5511_v7 = vcombine.low %v532_v56, %v536_v57 }
  0xd9   : > { %1305 = vmatpush1.bf16.msra.mxu0 %v5457_v34  ;;  %1358 = vmatpush1.bf16.msra.mxu1 %v5461_v35  ;;  %v5507_v0 = vcombine.high %v533_v59, %v537_v60  ;;  %v544_v2 = vld [vmem:[#allocation6 + $0x220] sm:$0xff]  ;;  %v541_v4 = vld [vmem:[#allocation6 + $0x208] sm:$0xff]  ;;  %v5515_v11 = vcombine.low %v533_v59, %v537_v60 }
  0xda   : > { %1306 = vmatprep.subr.bf16.mxu0 %v5463_v36  ;;  %1359 = vmatprep.subr.bf16.mxu1 %v5466_v37  ;;  %v545_v6 = vld [vmem:[#allocation6 + $0x228] sm:$0xff]  ;;  %v5517_v12 = vcombine.high %v540_v1, %v544_v2  ;;  %v548_v15 = vld [vmem:[#allocation6 + $0x240] sm:$0xff]  ;;  %v5523_v23 = vcombine.low %v540_v1, %v544_v2 }
  0xdb   : > { %1330 = vmatprep.mubr.bf16.mxu0 %v5494_v58  ;;  %1383 = vmatprep.mubr.bf16.mxu1 %v5494_v58  ;;  %v5520_v13 = vcombine.high %v541_v4, %v545_v6  ;;  %v552_v16 = vld [vmem:[#allocation6 + $0x260] sm:$0xff]  ;;  %v549_v17 = vld [vmem:[#allocation6 + $0x248] sm:$0xff]  ;;  %v5527_v24 = vcombine.low %v541_v4, %v545_v6 }
  0xdc   : > { %v553_v22 = vld [vmem:[#allocation6 + $0x268] sm:$0xff]  ;;  %v5529_v25 = vcombine.high %v548_v15, %v552_v16  ;;  %v556_v31 = vld [vmem:[#allocation6 + $0x280] sm:$0xff]  ;;  %v5535_v39 = vcombine.low %v548_v15, %v552_v16 }
  0xdd   : > { %1307 = vmatpush1.bf16.msra.mxu0 %v5469_v42  ;;  %1360 = vmatpush1.bf16.msra.mxu1 %v5473_v43  ;;  %v5532_v30 = vcombine.high %v549_v17, %v553_v22  ;;  %v560_v32 = vld [vmem:[#allocation6 + $0x2a0] sm:$0xff]  ;;  %v557_v33 = vld [vmem:[#allocation6 + $0x288] sm:$0xff]  ;;  %v5539_v40 = vcombine.low %v549_v17, %v553_v22 }
  0xde   : > { %1308 = vmatprep.subr.bf16.mxu0 %v5475_v44  ;;  %1361 = vmatprep.subr.bf16.mxu1 %v5478_v45  ;;  %v561_v38 = vld [vmem:[#allocation6 + $0x2a8] sm:$0xff]  ;;  %v5541_v41 = vcombine.high %v556_v31, %v560_v32  ;;  %v564_v47 = vld [vmem:[#allocation6 + $0x2c0] sm:$0xff]  ;;  %v5547_v54 = vcombine.low %v556_v31, %v560_v32 }
  0xdf   : > { %6370 = vst [vmem:[#allocation18_spill] sm:$0xff] %v5539_v40  ;;  %v5544_v46 = vcombine.high %v557_v33, %v561_v38  ;;  %v568_v48 = vld [vmem:[#allocation6 + $0x2e0] sm:$0xff]  ;;  %v565_v49 = vld [vmem:[#allocation6 + $0x2c8] sm:$0xff]  ;;  %v5551_v56 = vcombine.low %v557_v33, %v561_v38 }
  0xe0   : > { %6371 = vst [vmem:[#allocation19_spill] sm:$0xff] %v5541_v41  ;;  %v569_v53 = vld [vmem:[#allocation6 + $0x2e8] sm:$0xff]  ;;  %6373 = vst [vmem:[#allocation21_spill] sm:$0xff] %v5547_v54  ;;  %v5553_v57 = vcombine.high %v564_v47, %v568_v48  ;;  %v572_v60 = vld [vmem:[#allocation6 + $0x300] sm:$0xff]  ;;  %v5559_v6 = vcombine.low %v564_v47, %v568_v48 }
  0xe1   : > { %1309 = vmatpush1.bf16.msra.mxu0 %v5481_v50  ;;  %1362 = vmatpush1.bf16.msra.mxu1 %v5485_v51  ;;  %6372 = vst [vmem:[#allocation20_spill] sm:$0xff] %v5544_v46  ;;  %6374 = vst [vmem:[#allocation22_spill] sm:$0xff] %v5551_v56  ;;  %v5556_v59 = vcombine.high %v565_v49, %v569_v53  ;;  %v576_v1 = vld [vmem:[#allocation6 + $0x320] sm:$0xff]  ;;  %v573_v2 = vld [vmem:[#allocation6 + $0x308] sm:$0xff]  ;;  %v5563_v17 = vcombine.low %v565_v49, %v569_v53 }
  0xe2   : > { %1310 = vmatprep.subr.bf16.mxu0 %v5487_v52  ;;  %1363 = vmatprep.subr.bf16.mxu1 %v5492_v55  ;;  %6375 = vst [vmem:[#allocation23_spill] sm:$0xff] %v5553_v57  ;;  %v577_v4 = vld [vmem:[#allocation6 + $0x328] sm:$0xff]  ;;  %6377 = vst [vmem:[#allocation25_spill] sm:$0xff] %v5559_v6  ;;  %v580_v15 = vld [vmem:[#allocation6 + $0x340] sm:$0xff]  ;;  %v5565_v22 = vcombine.high %v572_v60, %v576_v1  ;;  %v5571_v38 = vcombine.low %v572_v60, %v576_v1 }
  0xe3   : > { %6376 = vst [vmem:[#allocation24_spill] sm:$0xff] %v5556_v59  ;;  %v584_v16 = vld [vmem:[#allocation6 + $0x360] sm:$0xff]  ;;  %6378 = vst [vmem:[#allocation26_spill] sm:$0xff] %v5563_v17  ;;  %v581_v31 = vld [vmem:[#allocation6 + $0x348] sm:$0xff]  ;;  %v5568_v33 = vcombine.high %v573_v2, %v577_v4  ;;  %v5575_v49 = vcombine.low %v573_v2, %v577_v4 }
  0xe4   : > { %6379 = vst [vmem:[#allocation27_spill] sm:$0xff] %v5565_v22  ;;  %v585_v32 = vld [vmem:[#allocation6 + $0x368] sm:$0xff]  ;;  %6381 = vst [vmem:[#allocation29_spill] sm:$0xff] %v5571_v38  ;;  %v588_v47 = vld [vmem:[#allocation6 + $0x380] sm:$0xff]  ;;  %v5577_v53 = vcombine.high %v580_v15, %v584_v16  ;;  %v5583_v60 = vcombine.low %v580_v15, %v584_v16 }
  0xe5   : > { %1311 = vmatpush1.bf16.msra.mxu0 %v5497_v61  ;;  %1364 = vmatpush1.bf16.msra.mxu1 %v5502_v62  ;;  %6380 = vst [vmem:[#allocation28_spill] sm:$0xff] %v5568_v33  ;;  %v592_v48 = vld [vmem:[#allocation6 + $0x3a0] sm:$0xff]  ;;  %6382 = vst [vmem:[#allocation30_spill] sm:$0xff] %v5575_v49  ;;  %v5587_v2 = vcombine.low %v581_v31, %v585_v32  ;;  %v478_v16 = vld [vmem:[#allocation6 + $0x10] sm:$0xff] }
  0xe6   : > { %1312 = vmatprep.subr.bf16.mxu0 %v5504_v63  ;;  %1365 = vmatprep.subr.bf16.mxu1 %v5507_v0  ;;  %6383 = vst [vmem:[#allocation31_spill] sm:$0xff] %v5577_v53  ;;  %6385 = vst [vmem:[#allocation33_spill] sm:$0xff] %v5583_v60  ;;  %v596_v1 = vld [vmem:[#allocation6 + $0x3c0] sm:$0xff]  ;;  %v5589_v4 = vcombine.high %v588_v47, %v592_v48  ;;  %v5595_v15 = vcombine.low %v588_v47, %v592_v48  ;;  %v606_v48 = vld [vmem:[%s5397_s27 + $0x10] sm:$0xff] }
  0xe7   : > { %6386 = vst [vmem:[#allocation34_spill] sm:$0xff] %v5587_v2  ;;  %v604_v47 = vld [vmem:[%s5397_s27] sm:$0xff] }
  0xe8   : > { %6387 = vst [vmem:[#allocation35_spill] sm:$0xff] %v5589_v4  ;;  %6389 = vst [vmem:[#allocation37_spill] sm:$0xff] %v5595_v15 }
  0xe9   : > { %1313 = vmatpush1.bf16.msra.mxu0 %v5511_v7  ;;  %1366 = vmatpush1.bf16.msra.mxu1 %v5515_v11 }
  0xea   : > { %1314 = vmatprep.subr.bf16.mxu0 %v5517_v12  ;;  %1367 = vmatprep.subr.bf16.mxu1 %v5520_v13 }
  0xed   : > { %1315 = vmatpush1.bf16.msra.mxu0 %v5523_v23  ;;  %1368 = vmatpush1.bf16.msra.mxu1 %v5527_v24 }
  0xee   : > { %1316 = vmatprep.subr.bf16.mxu0 %v5529_v25  ;;  %1369 = vmatprep.subr.bf16.mxu1 %v5532_v30 }
  0xf1   : > { %1317 = vmatpush1.bf16.msra.mxu0 %v5535_v39  ;;  %1370 = vmatpush1.bf16.msra.mxu1 %v5539_v40  ;;  %v499_v40 = vld [vmem:[#allocation6 + $0xb8] sm:$0xff] }
  0xf2   : > { %1318 = vmatprep.subr.bf16.mxu0 %v5541_v41  ;;  %1371 = vmatprep.subr.bf16.mxu1 %v5544_v46  ;;  %v609_v46 = vld [vmem:[%s5397_s27 + $0x28] sm:$0xff]  ;;  %v611_v41 = vld [vmem:[%s5397_s27 + $0x38] sm:$0xff] }
  0xf5   : > { %1319 = vmatpush1.bf16.msra.mxu0 %v5547_v54  ;;  %1372 = vmatpush1.bf16.msra.mxu1 %v5551_v56  ;;  %v593_v56 = vld [vmem:[#allocation6 + $0x3a8] sm:$0xff]  ;;  %v487_v54 = vld [vmem:[#allocation6 + $0x58] sm:$0xff] }
  0xf6   : > { %1320 = vmatprep.subr.bf16.mxu0 %v5553_v57  ;;  %1373 = vmatprep.subr.bf16.mxu1 %v5556_v59  ;;  %v589_v57 = vld [vmem:[#allocation6 + $0x388] sm:$0xff]  ;;  %v5580_v59 = vcombine.high %v581_v31, %v585_v32 }
  0xf7   : > { %v5599_v31 = vcombine.low %v589_v57, %v593_v56 }
  0xf8   : > { %6384 = vst [vmem:[#allocation32_spill] sm:$0xff] %v5580_v59 }
  0xf9   : > { %1321 = vmatpush1.bf16.msra.mxu0 %v5559_v6  ;;  %1374 = vmatpush1.bf16.msra.mxu1 %v5563_v17  ;;  %v600_v6 = vld [vmem:[#allocation6 + $0x3e0] sm:$0xff]  ;;  %v601_v17 = vld [vmem:[#allocation6 + $0x3e8] sm:$0xff]  ;;  %6390 = vst [vmem:[#allocation38_spill] sm:$0xff] %v5599_v31 }
  0xfa   : > { %1322 = vmatprep.subr.bf16.mxu0 %v5565_v22  ;;  %1375 = vmatprep.subr.bf16.mxu1 %v5568_v33  ;;  %v597_v22 = vld [vmem:[#allocation6 + $0x3c8] sm:$0xff]  ;;  %v5592_v33 = vcombine.high %v589_v57, %v593_v56  ;;  %v5601_v32 = vcombine.high %v596_v1, %v600_v6 }
  0xfb   : > { %v5613_v56 = vcombine.low %v597_v22, %v601_v17 }
  0xfc   : > { %6388 = vst [vmem:[#allocation36_spill] sm:$0xff] %v5592_v33  ;;  %6391 = vst [vmem:[#allocation39_spill] sm:$0xff] %v5601_v32 }
  0xfd   : > { %1323 = vmatpush1.bf16.msra.mxu0 %v5571_v38  ;;  %1376 = vmatpush1.bf16.msra.mxu1 %v5575_v49  ;;  %v482_v49 = vld [vmem:[#allocation6 + $0x30] sm:$0xff]  ;;  %v483_v38 = vld [vmem:[#allocation6 + $0x38] sm:$0xff]  ;;  %6394 = vst [vmem:[#allocation42_spill] sm:$0xff] %v5613_v56 }
  0xfe   : > { %1324 = vmatprep.subr.bf16.mxu0 %v5577_v53  ;;  %1377 = vmatprep.subr.bf16.mxu1 %v5580_v59  ;;  %v479_v53 = vld [vmem:[#allocation6 + $0x18] sm:$0xff]  ;;  %v5604_v59 = vcombine.high %v597_v22, %v601_v17  ;;  %v5615_v57 = vcombine.high %v478_v16, %v482_v49  ;;  %v494_v17 = vld [vmem:[#allocation6 + $0x90] sm:$0xff] }
  0xff   : > { %v498_v22 = vld [vmem:[#allocation6 + $0xb0] sm:$0xff] }
 0x100   : > { %6392 = vst [vmem:[#allocation40_spill] sm:$0xff] %v5604_v59  ;;  %6395 = vst [vmem:[#allocation43_spill] sm:$0xff] %v5615_v57 }
 0x101   : > { %1325 = vmatpush1.bf16.msra.mxu0 %v5583_v60  ;;  %1378 = vmatpush1.bf16.msra.mxu1 %v5587_v2  ;;  %v5609_v60 = vcombine.low %v596_v1, %v600_v6  ;;  %v486_v2 = vld [vmem:[#allocation6 + $0x50] sm:$0xff]  ;;  %v5622_v6 = vpack.c.bf16 %v606_v48, %v604_v47  ;;  %v5625_v1 = vcombine.low %v478_v16, %v482_v49  ;;  %v608_v49 = vld [vmem:[%s5397_s27 + $0x20] sm:$0xff] }
 0x102   : > { %1326 = vmatprep.subr.bf16.mxu0 %v5589_v4  ;;  %1379 = vmatprep.subr.bf16.mxu1 %v5592_v33  ;;  %v490_v4 = vld [vmem:[#allocation6 + $0x70] sm:$0xff]  ;;  %v491_v33 = vld [vmem:[#allocation6 + $0x78] sm:$0xff]  ;;  %v5636_v48 = vpack.c.bf16 %v611_v41, %v609_v46  ;;  %v5649_v41 = vcombine.high %v494_v17, %v498_v22 }
 0x103   : > { %6393 = vst [vmem:[#allocation41_spill] sm:$0xff] %v5609_v60  ;;  %6397 = vst [vmem:[#allocation45_spill] sm:$0xff] %v5625_v1  ;;  %v5634_v47 = vcombine.high %v487_v54, %v491_v33  ;;  %v610_v16 = vld [vmem:[%s5397_s27 + $0x30] sm:$0xff]  ;;  %v503_v46 = vld [vmem:[#allocation6 + $0xd8] sm:$0xff] }
 0x104   : > { %6402 = vst [vmem:[#allocation50_spill] sm:$0xff] %v5649_v41 }
 0x105   : > { %1327 = vmatpush1.bf16.msra.mxu0 %v5595_v15  ;;  %1380 = vmatpush1.bf16.msra.mxu1 %v5599_v31  ;;  %v5620_v15 = vcombine.high %v479_v53, %v483_v38  ;;  %v5631_v31 = vcombine.high %v486_v2, %v490_v4  ;;  %6400 = vst [vmem:[#allocation48_spill] sm:$0xff] %v5634_v47 }
 0x106   : > { %1328 = vmatprep.subr.bf16.mxu0 %v5601_v32  ;;  %1381 = vmatprep.subr.bf16.mxu1 %v5604_v59  ;;  %v5629_v32 = vcombine.low %v479_v53, %v483_v38  ;;  %v495_v59 = vld [vmem:[#allocation6 + $0x98] sm:$0xff]  ;;  %v5643_v38 = vcombine.low %v486_v2, %v490_v4  ;;  %v502_v53 = vld [vmem:[#allocation6 + $0xd0] sm:$0xff]  ;;  %v5655_v2 = vpack.c.bf16 %v610_v16, %v608_v49 }
 0x107   : > { %6396 = vst [vmem:[#allocation44_spill] sm:$0xff] %v5620_v15  ;;  %6399 = vst [vmem:[#allocation47_spill] sm:$0xff] %v5631_v31  ;;  %v5659_v4 = vcombine.low %v494_v17, %v498_v22  ;;  %v518_v22 = vld [vmem:[#allocation6 + $0x150] sm:$0xff] }
 0x108   : > { %6398 = vst [vmem:[#allocation46_spill] sm:$0xff] %v5629_v32  ;;  %v522_v16 = vld [vmem:[#allocation6 + $0x170] sm:$0xff] }
 0x109   : > { %1329 = vmatpush1.bf16.msra.mxu0 %v5609_v60  ;;  %1382 = vmatpush1.bf16.msra.mxu1 %v5613_v56  ;;  %v507_v56 = vld [vmem:[#allocation6 + $0xf8] sm:$0xff]  ;;  %v5652_v60 = vcombine.high %v495_v59, %v499_v40  ;;  %6404 = vst [vmem:[#allocation52_spill] sm:$0xff] %v5659_v4 }
 0x10a   : > { %1404 = vmatprep.subr.bf16.mxu0 %v5615_v57  ;;  %1457 = vmatprep.subr.bf16.mxu1 %v5620_v15  ;;  %v506_v57 = vld [vmem:[#allocation6 + $0xf0] sm:$0xff]  ;;  %v5647_v15 = vcombine.low %v487_v54, %v491_v33  ;;  %v5668_v49 = vcombine.high %v503_v46, %v507_v56 }
 0x10b   : > { %6403 = vst [vmem:[#allocation51_spill] sm:$0xff] %v5652_v60  ;;  %v510_v54 = vld [vmem:[#allocation6 + $0x110] sm:$0xff]  ;;  %v5672_v17 = vcombine.low %v502_v53, %v506_v57 }
 0x10c   : > { %1331 = vmatmul.mubr.bf16.vlgmr.msra.gmra.mrb[0].mxu0 %v5622_v6  ;;  %1384 = vmatmul.mubr.bf16.vlgmr.msra.gmra.mrb[0].mxu1 %v5622_v6  ;;  %6401 = vst [vmem:[#allocation49_spill] sm:$0xff] %v5647_v15  ;;  %v514_v33 = vld [vmem:[#allocation6 + $0x130] sm:$0xff]  ;;  %6407 = vst [vmem:[#allocation55_spill] sm:$0xff] %v5668_v49 }
 0x10d   : > { %1405 = vmatpush1.bf16.msra.mxu0 %v5625_v1  ;;  %1458 = vmatpush1.bf16.msra.mxu1 %v5629_v32  ;;  %v511_v32 = vld [vmem:[#allocation6 + $0x118] sm:$0xff] }
 0x10e   : > { %1406 = vmatprep.subr.bf16.mxu0 %v5631_v31  ;;  %1459 = vmatprep.subr.bf16.mxu1 %v5634_v47  ;;  %v5663_v31 = vcombine.low %v495_v59, %v499_v40  ;;  %v5665_v47 = vcombine.high %v502_v53, %v506_v57  ;;  %v515_v1 = vld [vmem:[#allocation6 + $0x138] sm:$0xff]  ;;  %v5677_v40 = vcombine.low %v503_v46, %v507_v56  ;;  %v526_v53 = vld [vmem:[#allocation6 + $0x190] sm:$0xff] }
 0x10f   : > { %1340 = vmatprep.mubr.bf16.mxu0 %v5636_v48  ;;  %1393 = vmatprep.mubr.bf16.mxu1 %v5636_v48  ;;  %v5679_v59 = vcombine.high %v510_v54, %v514_v33  ;;  %v5687_v57 = vcombine.low %v510_v54, %v514_v33  ;;  %v5691_v56 = vcombine.low %v511_v32, %v515_v1  ;;  %v534_v54 = vld [vmem:[#allocation6 + $0x1d0] sm:$0xff] }
 0x110   : > { %6405 = vst [vmem:[#allocation53_spill] sm:$0xff] %v5663_v31  ;;  %6406 = vst [vmem:[#allocation54_spill] sm:$0xff] %v5665_v47  ;;  %v5693_v46 = vcombine.high %v518_v22, %v522_v16  ;;  %v538_v33 = vld [vmem:[#allocation6 + $0x1f0] sm:$0xff] }
 0x111   : > { %1407 = vmatpush1.bf16.msra.mxu0 %v5643_v38  ;;  %1460 = vmatpush1.bf16.msra.mxu1 %v5647_v15  ;;  %6408 = vst [vmem:[#allocation56_spill] sm:$0xff] %v5677_v40  ;;  %6409 = vst [vmem:[#allocation57_spill] sm:$0xff] %v5679_v59  ;;  %v5682_v15 = vcombine.high %v511_v32, %v515_v1 }
 0x112   : > { %1408 = vmatprep.subr.bf16.mxu0 %v5649_v41  ;;  %1461 = vmatprep.subr.bf16.mxu1 %v5652_v60  ;;  %v519_v60 = vld [vmem:[#allocation6 + $0x158] sm:$0xff]  ;;  %6411 = vst [vmem:[#allocation59_spill] sm:$0xff] %v5687_v57  ;;  %6412 = vst [vmem:[#allocation60_spill] sm:$0xff] %v5691_v56 }
 0x113   : > { %v523_v41 = vld [vmem:[#allocation6 + $0x178] sm:$0xff]  ;;  %6410 = vst [vmem:[#allocation58_spill] sm:$0xff] %v5682_v15  ;;  %6413 = vst [vmem:[#allocation61_spill] sm:$0xff] %v5693_v46 }
 0x114   : > { %1341 = vmatmul.mubr.bf16.gmra.mrb[4].mxu0 %v5655_v2  ;;  %1394 = vmatmul.mubr.bf16.gmra.mrb[4].mxu1 %v5655_v2  ;;  %v5703_v32 = vcombine.low %v519_v60, %v523_v41 }
 0x115   : > { %1409 = vmatpush1.bf16.msra.mxu0 %v5659_v4  ;;  %1462 = vmatpush1.bf16.msra.mxu1 %v5663_v31  ;;  %v531_v31 = vld [vmem:[#allocation6 + $0x1b8] sm:$0xff]  ;;  %v5696_v4 = vcombine.high %v519_v60, %v523_v41  ;;  %v5717_v41 = vcombine.high %v534_v54, %v538_v33 }
 0x116   : > { %1410 = vmatprep.subr.bf16.mxu0 %v5665_v47  ;;  %1463 = vmatprep.subr.bf16.mxu1 %v5668_v49  ;;  %v530_v47 = vld [vmem:[#allocation6 + $0x1b0] sm:$0xff]  ;;  %v527_v49 = vld [vmem:[#allocation6 + $0x198] sm:$0xff]  ;;  %6416 = vst [vmem:[#allocation64_spill] sm:$0xff] %v5703_v32 }
 0x117   : > { %1436 = vmatprep.mubr.bf16.mxu0 %v5494_v58  ;;  %1489 = vmatprep.mubr.bf16.mxu1 %v5494_v58  ;;  %6414 = vst [vmem:[#allocation62_spill] sm:$0xff] %v5696_v4  ;;  %v5699_v58 = vcombine.low %v518_v22, %v522_v16  ;;  %v5705_v1 = vcombine.high %v526_v53, %v530_v47  ;;  %v542_v16 = vld [vmem:[#allocation6 + $0x210] sm:$0xff]  ;;  %6421 = vst [vmem:[#allocation69_spill] sm:$0xff] %v5717_v41 }
 0x118   : > { %v5711_v22 = vcombine.low %v526_v53, %v530_v47  ;;  %v5715_v60 = vcombine.low %v527_v49, %v531_v31  ;;  %v5723_v47 = vcombine.low %v534_v54, %v538_v33  ;;  %v550_v53 = vld [vmem:[#allocation6 + $0x250] sm:$0xff] }
 0x119   : > { %1411 = vmatpush1.bf16.msra.mxu0 %v5672_v17  ;;  %1464 = vmatpush1.bf16.msra.mxu1 %v5677_v40  ;;  %6415 = vst [vmem:[#allocation63_spill] sm:$0xff] %v5699_v58  ;;  %6417 = vst [vmem:[#allocation65_spill] sm:$0xff] %v5705_v1  ;;  %v539_v40 = vld [vmem:[#allocation6 + $0x1f8] sm:$0xff]  ;;  %v558_v33 = vld [vmem:[#allocation6 + $0x290] sm:$0xff] }
 0x11a   : > { %1412 = vmatprep.subr.bf16.mxu0 %v5679_v59  ;;  %1465 = vmatprep.subr.bf16.mxu1 %v5682_v15  ;;  %v535_v59 = vld [vmem:[#allocation6 + $0x1d8] sm:$0xff]  ;;  %v5708_v15 = vcombine.high %v527_v49, %v531_v31  ;;  %6419 = vst [vmem:[#allocation67_spill] sm:$0xff] %v5711_v22  ;;  %6420 = vst [vmem:[#allocation68_spill] sm:$0xff] %v5715_v60 }
 0x11b   : > { %6423 = vst [vmem:[#allocation71_spill] sm:$0xff] %v5723_v47  ;;  %v5727_v31 = vcombine.low %v535_v59, %v539_v40 }
 0x11c   : > { %6418 = vst [vmem:[#allocation66_spill] sm:$0xff] %v5708_v15 }
 0x11d   : > { %1413 = vmatpush1.bf16.msra.mxu0 %v5687_v57  ;;  %1466 = vmatpush1.bf16.msra.mxu1 %v5691_v56  ;;  %v546_v57 = vld [vmem:[#allocation6 + $0x230] sm:$0xff]  ;;  %v547_v56 = vld [vmem:[#allocation6 + $0x238] sm:$0xff]  ;;  %6424 = vst [vmem:[#allocation72_spill] sm:$0xff] %v5727_v31 }
 0x11e   : > { %1414 = vmatprep.subr.bf16.mxu0 %v5693_v46  ;;  %1467 = vmatprep.subr.bf16.mxu1 %v5696_v4  ;;  %v543_v46 = vld [vmem:[#allocation6 + $0x218] sm:$0xff]  ;;  %v5720_v4 = vcombine.high %v535_v59, %v539_v40  ;;  %v5729_v49 = vcombine.high %v542_v16, %v546_v57  ;;  %v5735_v54 = vcombine.low %v542_v16, %v546_v57  ;;  %v566_v16 = vld [vmem:[#allocation6 + $0x2d0] sm:$0xff] }
 0x11f   : > { %v5739_v40 = vcombine.low %v543_v46, %v547_v56 }
 0x120   : > { %6422 = vst [vmem:[#allocation70_spill] sm:$0xff] %v5720_v4  ;;  %6425 = vst [vmem:[#allocation73_spill] sm:$0xff] %v5729_v49 }
 0x121   : > { %1415 = vmatpush1.bf16.msra.mxu0 %v5699_v58  ;;  %1468 = vmatpush1.bf16.msra.mxu1 %v5703_v32  ;;  %v554_v58 = vld [vmem:[#allocation6 + $0x270] sm:$0xff]  ;;  %v555_v32 = vld [vmem:[#allocation6 + $0x278] sm:$0xff]  ;;  %6427 = vst [vmem:[#allocation75_spill] sm:$0xff] %v5735_v54  ;;  %6428 = vst [vmem:[#allocation76_spill] sm:$0xff] %v5739_v40 }
 0x122   : > { %1416 = vmatprep.subr.bf16.mxu0 %v5705_v1  ;;  %1469 = vmatprep.subr.bf16.mxu1 %v5708_v15  ;;  %v551_v1 = vld [vmem:[#allocation6 + $0x258] sm:$0xff]  ;;  %v5732_v15 = vcombine.high %v543_v46, %v547_v56  ;;  %v5741_v59 = vcombine.high %v550_v53, %v554_v58  ;;  %v5747_v57 = vcombine.low %v550_v53, %v554_v58  ;;  %v574_v53 = vld [vmem:[#allocation6 + $0x310] sm:$0xff] }
 0x123   : > { %v5751_v56 = vcombine.low %v551_v1, %v555_v32 }
 0x124   : > { %6426 = vst [vmem:[#allocation74_spill] sm:$0xff] %v5732_v15  ;;  %6429 = vst [vmem:[#allocation77_spill] sm:$0xff] %v5741_v59 }
 0x125   : > { %1417 = vmatpush1.bf16.msra.mxu0 %v5711_v22  ;;  %1470 = vmatpush1.bf16.msra.mxu1 %v5715_v60  ;;  %v562_v22 = vld [vmem:[#allocation6 + $0x2b0] sm:$0xff]  ;;  %v563_v60 = vld [vmem:[#allocation6 + $0x2b8] sm:$0xff]  ;;  %6431 = vst [vmem:[#allocation79_spill] sm:$0xff] %v5747_v57  ;;  %6432 = vst [vmem:[#allocation80_spill] sm:$0xff] %v5751_v56 }
 0x126   : > { %1418 = vmatprep.subr.bf16.mxu0 %v5717_v41  ;;  %1471 = vmatprep.subr.bf16.mxu1 %v5720_v4  ;;  %v559_v41 = vld [vmem:[#allocation6 + $0x298] sm:$0xff]  ;;  %v5744_v4 = vcombine.high %v551_v1, %v555_v32  ;;  %v5753_v46 = vcombine.high %v558_v33, %v562_v22  ;;  %v5759_v58 = vcombine.low %v558_v33, %v562_v22  ;;  %v582_v33 = vld [vmem:[#allocation6 + $0x350] sm:$0xff] }
 0x127   : > { %v5763_v32 = vcombine.low %v559_v41, %v563_v60 }
 0x128   : > { %6430 = vst [vmem:[#allocation78_spill] sm:$0xff] %v5744_v4  ;;  %6433 = vst [vmem:[#allocation81_spill] sm:$0xff] %v5753_v46 }
 0x129   : > { %1419 = vmatpush1.bf16.msra.mxu0 %v5723_v47  ;;  %1472 = vmatpush1.bf16.msra.mxu1 %v5727_v31  ;;  %v570_v47 = vld [vmem:[#allocation6 + $0x2f0] sm:$0xff]  ;;  %v571_v31 = vld [vmem:[#allocation6 + $0x2f8] sm:$0xff]  ;;  %6435 = vst [vmem:[#allocation83_spill] sm:$0xff] %v5759_v58  ;;  %6436 = vst [vmem:[#allocation84_spill] sm:$0xff] %v5763_v32 }
 0x12a   : > { %1420 = vmatprep.subr.bf16.mxu0 %v5729_v49  ;;  %1473 = vmatprep.subr.bf16.mxu1 %v5732_v15  ;;  %v567_v49 = vld [vmem:[#allocation6 + $0x2d8] sm:$0xff]  ;;  %v5756_v15 = vcombine.high %v559_v41, %v563_v60  ;;  %v5765_v1 = vcombine.high %v566_v16, %v570_v47  ;;  %v5771_v22 = vcombine.low %v566_v16, %v570_v47  ;;  %v590_v16 = vld [vmem:[#allocation6 + $0x390] sm:$0xff] }
 0x12b   : > { %v5775_v60 = vcombine.low %v567_v49, %v571_v31 }
 0x12c   : > { %6434 = vst [vmem:[#allocation82_spill] sm:$0xff] %v5756_v15  ;;  %6437 = vst [vmem:[#allocation85_spill] sm:$0xff] %v5765_v1 }
 0x12d   : > { %1421 = vmatpush1.bf16.msra.mxu0 %v5735_v54  ;;  %1474 = vmatpush1.bf16.msra.mxu1 %v5739_v40  ;;  %v578_v54 = vld [vmem:[#allocation6 + $0x330] sm:$0xff]  ;;  %v579_v40 = vld [vmem:[#allocation6 + $0x338] sm:$0xff]  ;;  %6439 = vst [vmem:[#allocation87_spill] sm:$0xff] %v5771_v22  ;;  %6440 = vst [vmem:[#allocation88_spill] sm:$0xff] %v5775_v60 }
 0x12e   : > { %1422 = vmatprep.subr.bf16.mxu0 %v5741_v59  ;;  %1475 = vmatprep.subr.bf16.mxu1 %v5744_v4  ;;  %v575_v59 = vld [vmem:[#allocation6 + $0x318] sm:$0xff]  ;;  %v5768_v4 = vcombine.high %v567_v49, %v571_v31  ;;  %v5777_v41 = vcombine.high %v574_v53, %v578_v54  ;;  %v5783_v47 = vcombine.low %v574_v53, %v578_v54  ;;  %v598_v53 = vld [vmem:[#allocation6 + $0x3d0] sm:$0xff] }
 0x12f   : > { %v5787_v31 = vcombine.low %v575_v59, %v579_v40 }
 0x130   : > { %6438 = vst [vmem:[#allocation86_spill] sm:$0xff] %v5768_v4  ;;  %6441 = vst [vmem:[#allocation89_spill] sm:$0xff] %v5777_v41 }
 0x131   : > { %1423 = vmatpush1.bf16.msra.mxu0 %v5747_v57  ;;  %1476 = vmatpush1.bf16.msra.mxu1 %v5751_v56  ;;  %v586_v57 = vld [vmem:[#allocation6 + $0x370] sm:$0xff]  ;;  %v587_v56 = vld [vmem:[#allocation6 + $0x378] sm:$0xff] }
 0x132   : > { %1424 = vmatprep.subr.bf16.mxu0 %v5753_v46  ;;  %1477 = vmatprep.subr.bf16.mxu1 %v5756_v15  ;;  %v5780_v46 = vcombine.high %v575_v59, %v579_v40  ;;  %v583_v15 = vld [vmem:[#allocation6 + $0x358] sm:$0xff]  ;;  %v5789_v49 = vcombine.high %v582_v33, %v586_v57  ;;  %v5795_v54 = vcombine.low %v582_v33, %v586_v57 }
 0x133   : > { %v5799_v40 = vcombine.low %v583_v15, %v587_v56 }
 0x134   : > { %6442 = vst [vmem:[#allocation90_spill] sm:$0xff] %v5780_v46 }
 0x135   : > { %1425 = vmatpush1.bf16.msra.mxu0 %v5759_v58  ;;  %1478 = vmatpush1.bf16.msra.mxu1 %v5763_v32  ;;  %v594_v58 = vld [vmem:[#allocation6 + $0x3b0] sm:$0xff]  ;;  %v5792_v32 = vcombine.high %v583_v15, %v587_v56 }
 0x136   : > { %1426 = vmatprep.subr.bf16.mxu0 %v5765_v1  ;;  %1479 = vmatprep.subr.bf16.mxu1 %v5768_v4  ;;  %v591_v1 = vld [vmem:[#allocation6 + $0x398] sm:$0xff]  ;;  %v5801_v59 = vcombine.high %v590_v16, %v594_v58  ;;  %v5807_v57 = vcombine.low %v590_v16, %v594_v58 }
 0x137   : > { %v595_v4 = vld [vmem:[#allocation6 + $0x3b8] sm:$0xff]  ;;  %6443 = vst [vmem:[#allocation91_spill] sm:$0xff] %v5792_v32 }
 0x138   : > { %v5811_v33 = vcombine.low %v591_v1, %v595_v4  ;;  %v6479_v16 = vld [vmem:[#allocation53_spill] sm:$0xff] }
 0x139   : > { %1427 = vmatpush1.bf16.msra.mxu0 %v5771_v22  ;;  %1480 = vmatpush1.bf16.msra.mxu1 %v5775_v60  ;;  %v602_v22 = vld [vmem:[#allocation6 + $0x3f0] sm:$0xff]  ;;  %v603_v60 = vld [vmem:[#allocation6 + $0x3f8] sm:$0xff] }
 0x13a   : > { %1428 = vmatprep.subr.bf16.mxu0 %v5777_v41  ;;  %1481 = vmatprep.subr.bf16.mxu1 %v5780_v46  ;;  %v599_v41 = vld [vmem:[#allocation6 + $0x3d8] sm:$0xff]  ;;  %v5804_v46 = vcombine.high %v591_v1, %v595_v4  ;;  %v5813_v15 = vcombine.high %v598_v53, %v602_v22  ;;  %v1511_v4 = vld [vmem:[%s5404_s29 + $0x8] sm:$0xff] }
 0x13b   : > { %v5816_v56 = vcombine.high %v599_v41, %v603_v60  ;;  %v5823_v58 = vcombine.low %v599_v41, %v603_v60  ;;  %v6475_v1 = vld [vmem:[#allocation49_spill] sm:$0xff]  ;;  %v6477_v60 = vld [vmem:[#allocation51_spill] sm:$0xff]  ;;  %v6478_v41 = vld [vmem:[#allocation52_spill] sm:$0xff] }
 0x13d   : > { %1429 = vmatpush1.bf16.msra.mxu0 %v5783_v47  ;;  %1482 = vmatpush1.bf16.msra.mxu1 %v5787_v31 }
 0x13e   : > { %1430 = vmatprep.subr.bf16.mxu0 %v5789_v49  ;;  %1483 = vmatprep.subr.bf16.mxu1 %v5792_v32  ;;  %v5819_v32 = vcombine.low %v598_v53, %v602_v22  ;;  %v6476_v22 = vld [vmem:[#allocation50_spill] sm:$0xff] }
 0x13f   : > { %v6480_v53 = vld [vmem:[#allocation54_spill] sm:$0xff] }
 0x141   : > { %1431 = vmatpush1.bf16.msra.mxu0 %v5795_v54  ;;  %1484 = vmatpush1.bf16.msra.mxu1 %v5799_v40 }
 0x142   : > { %1432 = vmatprep.subr.bf16.mxu0 %v5801_v59  ;;  %1485 = vmatprep.subr.bf16.mxu1 %v5804_v46 }
 0x145   : > { %1433 = vmatpush1.bf16.msra.mxu0 %v5807_v57  ;;  %1486 = vmatpush1.bf16.msra.mxu1 %v5811_v33 }
 0x146   : > { %1434 = vmatprep.subr.bf16.mxu0 %v5813_v15  ;;  %1487 = vmatprep.subr.bf16.mxu1 %v5816_v56 }
 0x149   : > { %1435 = vmatpush1.bf16.msra.mxu0 %v5819_v32  ;;  %1488 = vmatpush1.bf16.msra.mxu1 %v5823_v58 }
 0x14a   : > { %1522 = vmatprep.subr.bf16.mxu0 %v5418_v3  ;;  %1575 = vmatprep.subr.bf16.mxu1 %v5422_v8  ;;  %v1513_v3 = vld [vmem:[%s5404_s29 + $0x18] sm:$0xff]  ;;  %v6444_v8 = vld [vmem:[#allocation18_spill] sm:$0xff] }
 0x14c   : > { %1437 = vmatmul.mubr.bf16.vlgmr.msra.gmra.mrb[8].mxu0 %v5622_v6  ;;  %1490 = vmatmul.mubr.bf16.vlgmr.msra.gmra.mrb[8].mxu1 %v5622_v6  ;;  %v6473_v6 = vld [vmem:[#allocation47_spill] sm:$0xff] }
 0x14d   : > { %1523 = vmatpush1.bf16.msra.mxu0 %v5420_v5  ;;  %1576 = vmatpush1.bf16.msra.mxu1 %v5424_v9  ;;  %v5844_v5 = vpack.c.bf16 %v1513_v3, %v1511_v4  ;;  %v6445_v9 = vld [vmem:[#allocation19_spill] sm:$0xff]  ;;  %v6483_v3 = vld [vmem:[#allocation57_spill] sm:$0xff] }
 0x14e   : > { %1524 = vmatprep.subr.bf16.mxu0 %v5426_v10  ;;  %1577 = vmatprep.subr.bf16.mxu1 %v5429_v14  ;;  %v6446_v10 = vld [vmem:[#allocation20_spill] sm:$0xff]  ;;  %v6447_v14 = vld [vmem:[#allocation21_spill] sm:$0xff]  ;;  %v6481_v4 = vld [vmem:[#allocation55_spill] sm:$0xff] }
 0x14f   : > { %1446 = vmatprep.mubr.bf16.mxu0 %v5636_v48  ;;  %1499 = vmatprep.mubr.bf16.mxu1 %v5636_v48  ;;  %v6474_v48 = vld [vmem:[#allocation48_spill] sm:$0xff] }
 0x151   : > { %1525 = vmatpush1.bf16.msra.mxu0 %v5433_v18  ;;  %1578 = vmatpush1.bf16.msra.mxu1 %v5437_v19  ;;  %v6448_v18 = vld [vmem:[#allocation22_spill] sm:$0xff]  ;;  %v6449_v19 = vld [vmem:[#allocation23_spill] sm:$0xff] }
 0x152   : > { %1526 = vmatprep.subr.bf16.mxu0 %v5439_v20  ;;  %1579 = vmatprep.subr.bf16.mxu1 %v5442_v21  ;;  %v6450_v20 = vld [vmem:[#allocation24_spill] sm:$0xff]  ;;  %v6451_v21 = vld [vmem:[#allocation25_spill] sm:$0xff] }
 0x154   : > { %1447 = vmatmul.mubr.bf16.gmra.mrb[12].mxu0 %v5655_v2  ;;  %1500 = vmatmul.mubr.bf16.gmra.mrb[12].mxu1 %v5655_v2 }
 0x155   : > { %1527 = vmatpush1.bf16.msra.mxu0 %v5445_v26  ;;  %1580 = vmatpush1.bf16.msra.mxu1 %v5449_v27  ;;  %v6452_v26 = vld [vmem:[#allocation26_spill] sm:$0xff]  ;;  %v6453_v27 = vld [vmem:[#allocation27_spill] sm:$0xff] }
 0x156   : > { %1528 = vmatprep.subr.bf16.mxu0 %v5451_v28  ;;  %1581 = vmatprep.subr.bf16.mxu1 %v5454_v29  ;;  %v6454_v28 = vld [vmem:[#allocation28_spill] sm:$0xff]  ;;  %v6455_v29 = vld [vmem:[#allocation29_spill] sm:$0xff] }
 0x157   : > { %1554 = vmatprep.mubr.bf16.mxu0 %v5844_v5  ;;  %1607 = vmatprep.mubr.bf16.mxu1 %v5844_v5 }
 0x159   : > { %1529 = vmatpush1.bf16.msra.mxu0 %v5457_v34  ;;  %1582 = vmatpush1.bf16.msra.mxu1 %v5461_v35  ;;  %v6456_v34 = vld [vmem:[#allocation30_spill] sm:$0xff]  ;;  %v6457_v35 = vld [vmem:[#allocation31_spill] sm:$0xff] }
 0x15a   : > { %1530 = vmatprep.subr.bf16.mxu0 %v5463_v36  ;;  %1583 = vmatprep.subr.bf16.mxu1 %v5466_v37  ;;  %v6458_v36 = vld [vmem:[#allocation32_spill] sm:$0xff]  ;;  %v6459_v37 = vld [vmem:[#allocation33_spill] sm:$0xff] }
 0x15d   : > { %1531 = vmatpush1.bf16.msra.mxu0 %v5469_v42  ;;  %1584 = vmatpush1.bf16.msra.mxu1 %v5473_v43  ;;  %v6460_v42 = vld [vmem:[#allocation34_spill] sm:$0xff]  ;;  %v6461_v43 = vld [vmem:[#allocation35_spill] sm:$0xff] }
 0x15e   : > { %1532 = vmatprep.subr.bf16.mxu0 %v5475_v44  ;;  %1585 = vmatprep.subr.bf16.mxu1 %v5478_v45  ;;  %v6462_v44 = vld [vmem:[#allocation36_spill] sm:$0xff]  ;;  %v6463_v45 = vld [vmem:[#allocation37_spill] sm:$0xff] }
 0x161   : > { %1533 = vmatpush1.bf16.msra.mxu0 %v5481_v50  ;;  %1586 = vmatpush1.bf16.msra.mxu1 %v5485_v51  ;;  %v1510_v50 = vld [vmem:[%s5404_s29] sm:$0xff]  ;;  %v1512_v51 = vld [vmem:[%s5404_s29 + $0x10] sm:$0xff] }
 0x162   : > { %1534 = vmatprep.subr.bf16.mxu0 %v5487_v52  ;;  %1587 = vmatprep.subr.bf16.mxu1 %v5492_v55  ;;  %v6464_v52 = vld [vmem:[#allocation38_spill] sm:$0xff]  ;;  %v6465_v55 = vld [vmem:[#allocation39_spill] sm:$0xff] }
 0x165   : > { %1535 = vmatpush1.bf16.msra.mxu0 %v5497_v61  ;;  %1588 = vmatpush1.bf16.msra.mxu1 %v5502_v62  ;;  %v6466_v61 = vld [vmem:[#allocation40_spill] sm:$0xff]  ;;  %v5904_v62 = vpack.c.bf16 %v1512_v51, %v1510_v50  ;;  %v6507_v51 = vld [vmem:[#allocation81_spill] sm:$0xff] }
 0x166   : > { %1536 = vmatprep.subr.bf16.mxu0 %v5504_v63  ;;  %1589 = vmatprep.subr.bf16.mxu1 %v5507_v0  ;;  %v1515_v63 = vld [vmem:[%s5404_s29 + $0x28] sm:$0xff]  ;;  %v1517_v0 = vld [vmem:[%s5404_s29 + $0x38] sm:$0xff]  ;;  %v6506_v50 = vld [vmem:[#allocation80_spill] sm:$0xff] }
 0x169   : > { %1537 = vmatpush1.bf16.msra.mxu0 %v5511_v7  ;;  %1590 = vmatpush1.bf16.msra.mxu1 %v5515_v11  ;;  %v6467_v7 = vld [vmem:[#allocation41_spill] sm:$0xff]  ;;  %v6468_v11 = vld [vmem:[#allocation42_spill] sm:$0xff] }
 0x16a   : > { %1538 = vmatprep.subr.bf16.mxu0 %v5517_v12  ;;  %1591 = vmatprep.subr.bf16.mxu1 %v5520_v13  ;;  %v6469_v12 = vld [vmem:[#allocation43_spill] sm:$0xff]  ;;  %v6470_v13 = vld [vmem:[#allocation44_spill] sm:$0xff] }
 0x16d   : > { %1539 = vmatpush1.bf16.msra.mxu0 %v5523_v23  ;;  %1592 = vmatpush1.bf16.msra.mxu1 %v5527_v24  ;;  %v5912_v23 = vpack.c.bf16 %v1517_v0, %v1515_v63  ;;  %v6471_v24 = vld [vmem:[#allocation45_spill] sm:$0xff]  ;;  %v6512_v0 = vld [vmem:[#allocation86_spill] sm:$0xff] }
 0x16e   : > { %1540 = vmatprep.subr.bf16.mxu0 %v5529_v25  ;;  %1593 = vmatprep.subr.bf16.mxu1 %v5532_v30  ;;  %v1514_v25 = vld [vmem:[%s5404_s29 + $0x20] sm:$0xff]  ;;  %v1516_v30 = vld [vmem:[%s5404_s29 + $0x30] sm:$0xff]  ;;  %v6511_v63 = vld [vmem:[#allocation85_spill] sm:$0xff] }
 0x16f   : > { %v5923_v2 = vpack.c.bf16 %v1516_v30, %v1514_v25  ;;  %v4668_v25 = vld [vmem:[#allocation7 + $0x58] sm:$0xff]  }
 0x171   : > { %1541 = vmatpush1.bf16.msra.mxu0 %v5535_v39  ;;  %1594 = vmatpush1.bf16.msra.mxu1 %v6444_v8  ;;  %v6472_v39 = vld [vmem:[#allocation46_spill] sm:$0xff] }
 0x172   : > { %1542 = vmatprep.subr.bf16.mxu0 %v6445_v9  ;;  %1595 = vmatprep.subr.bf16.mxu1 %v6446_v10  ;;  %v6484_v8 = vld [vmem:[#allocation58_spill] sm:$0xff]  ;;  %v6485_v9 = vld [vmem:[#allocation59_spill] sm:$0xff]  ;;  %v6486_v10 = vld [vmem:[#allocation60_spill] sm:$0xff] }
 0x175   : > { %1543 = vmatpush1.bf16.msra.mxu0 %v6447_v14  ;;  %1596 = vmatpush1.bf16.msra.mxu1 %v6448_v18  ;;  %v6487_v14 = vld [vmem:[#allocation61_spill] sm:$0xff]  ;;  %v6488_v18 = vld [vmem:[#allocation62_spill] sm:$0xff] }
 0x176   : > { %1544 = vmatprep.subr.bf16.mxu0 %v6449_v19  ;;  %1597 = vmatprep.subr.bf16.mxu1 %v6450_v20  ;;  %v6489_v19 = vld [vmem:[#allocation63_spill] sm:$0xff]  ;;  %v6490_v20 = vld [vmem:[#allocation64_spill] sm:$0xff] }
 0x179   : > { %1545 = vmatpush1.bf16.msra.mxu0 %v6451_v21  ;;  %1598 = vmatpush1.bf16.msra.mxu1 %v6452_v26  ;;  %v6493_v21 = vld [vmem:[#allocation67_spill] sm:$0xff]  ;;  %v6494_v26 = vld [vmem:[#allocation68_spill] sm:$0xff] }
 0x17a   : > { %1546 = vmatprep.subr.bf16.mxu0 %v6453_v27  ;;  %1599 = vmatprep.subr.bf16.mxu1 %v6454_v28  ;;  %v6495_v27 = vld [vmem:[#allocation69_spill] sm:$0xff]  ;;  %v6496_v28 = vld [vmem:[#allocation70_spill] sm:$0xff] }
 0x17d   : > { %1547 = vmatpush1.bf16.msra.mxu0 %v6455_v29  ;;  %1600 = vmatpush1.bf16.msra.mxu1 %v6456_v34  ;;  %v6497_v29 = vld [vmem:[#allocation71_spill] sm:$0xff]  ;;  %v6498_v34 = vld [vmem:[#allocation72_spill] sm:$0xff] }
 0x17e   : > { %1548 = vmatprep.subr.bf16.mxu0 %v6457_v35  ;;  %1601 = vmatprep.subr.bf16.mxu1 %v6458_v36  ;;  %v6499_v35 = vld [vmem:[#allocation73_spill] sm:$0xff]  ;;  %v6500_v36 = vld [vmem:[#allocation74_spill] sm:$0xff] }
 0x181   : > { %1549 = vmatpush1.bf16.msra.mxu0 %v6459_v37  ;;  %1602 = vmatpush1.bf16.msra.mxu1 %v6460_v42  ;;  %v6501_v37 = vld [vmem:[#allocation75_spill] sm:$0xff]  ;;  %v6502_v42 = vld [vmem:[#allocation76_spill] sm:$0xff] }
 0x182   : > { %1550 = vmatprep.subr.bf16.mxu0 %v6461_v43  ;;  %1603 = vmatprep.subr.bf16.mxu1 %v6462_v44  ;;  %v6503_v43 = vld [vmem:[#allocation77_spill] sm:$0xff]  ;;  %v6504_v44 = vld [vmem:[#allocation78_spill] sm:$0xff] }
 0x185   : > { %1551 = vmatpush1.bf16.msra.mxu0 %v6463_v45  ;;  %1604 = vmatpush1.bf16.msra.mxu1 %v6464_v52  ;;  %v6505_v45 = vld [vmem:[#allocation79_spill] sm:$0xff]  ;;  %v6508_v52 = vld [vmem:[#allocation82_spill] sm:$0xff] }
 0x186   : > { %1552 = vmatprep.subr.bf16.mxu0 %v6465_v55  ;;  %1605 = vmatprep.subr.bf16.mxu1 %v6466_v61  ;;  %v6509_v55 = vld [vmem:[#allocation83_spill] sm:$0xff]  ;;  %v6510_v61 = vld [vmem:[#allocation84_spill] sm:$0xff] }
 0x189   : > { %1553 = vmatpush1.bf16.msra.mxu0 %v6467_v7  ;;  %1606 = vmatpush1.bf16.msra.mxu1 %v6468_v11  ;;  %v6513_v7 = vld [vmem:[#allocation87_spill] sm:$0xff]  ;;  %v6514_v11 = vld [vmem:[#allocation88_spill] sm:$0xff] }
 0x18a   : > { %1628 = vmatprep.subr.bf16.mxu0 %v6469_v12  ;;  %1681 = vmatprep.subr.bf16.mxu1 %v6470_v13  ;;  %v6515_v12 = vld [vmem:[#allocation89_spill] sm:$0xff]  ;;  %v6516_v13 = vld [vmem:[#allocation90_spill] sm:$0xff] }
 0x18c   : > { %1555 = vmatmul.mubr.bf16.vlgmr.msra.gmra.mrb[16].mxu0 %v5904_v62  ;;  %1608 = vmatmul.mubr.bf16.vlgmr.msra.gmra.mrb[16].mxu1 %v5904_v62 }
 0x18d   : > { %1629 = vmatpush1.bf16.msra.mxu0 %v6471_v24  ;;  %1682 = vmatpush1.bf16.msra.mxu1 %v6472_v39  ;;  %v6517_v24 = vld [vmem:[#allocation91_spill] sm:$0xff]  ;;  %v4670_v39 = vld [vmem:[#allocation7 + $0x18] sm:$0xff]  }
 0x18e   : > { %1630 = vmatprep.subr.bf16.mxu0 %v6473_v6  ;;  %1683 = vmatprep.subr.bf16.mxu1 %v6474_v48  ;;  %v4672_v6 = vld [vmem:[#allocation7 + $0x60] sm:$0xff]  }
 0x18f   : > { %1564 = vmatprep.mubr.bf16.mxu0 %v5912_v23  ;;  %1617 = vmatprep.mubr.bf16.mxu1 %v5912_v23  ;;  %v4673_v48 = vld [vmem:[#allocation7 + $0xe0] sm:$0xff]  }
 0x191   : > { %1631 = vmatpush1.bf16.msra.mxu0 %v5643_v38  ;;  %1684 = vmatpush1.bf16.msra.mxu1 %v6475_v1  ;;  %v6482_v38 = vld [vmem:[#allocation56_spill] sm:$0xff] }
 0x192   : > { %1632 = vmatprep.subr.bf16.mxu0 %v6476_v22  ;;  %1685 = vmatprep.subr.bf16.mxu1 %v6477_v60  ;;  %v4674_v22 = vld [vmem:[#allocation7 + $0x20] sm:$0xff]  }
 0x193   : > { %v6000_v60 = vld [vmem:[%s6260_s3] sm:$0xff] }
 0x194   : > { %1565 = vmatmul.mubr.bf16.gmra.mrb[20].mxu0 %v5923_v2  ;;  %1618 = vmatmul.mubr.bf16.gmra.mrb[20].mxu1 %v5923_v2 }
 0x195   : > { %1633 = vmatpush1.bf16.msra.mxu0 %v6478_v41  ;;  %1686 = vmatpush1.bf16.msra.mxu1 %v6479_v16  ;;  %v4675_v16 = vld [vmem:[#allocation7 + $0xa0] sm:$0xff]  }
 0x196   : > { %1634 = vmatprep.subr.bf16.mxu0 %v6480_v53  ;;  %1687 = vmatprep.subr.bf16.mxu1 %v6481_v4  ;;  %v4676_v4 = vld [vmem:[#allocation7 + $0x68] sm:$0xff]  }
 0x197   : > { %1660 = vmatprep.mubr.bf16.mxu0 %v5844_v5  ;;  %1713 = vmatprep.mubr.bf16.mxu1 %v5844_v5  ;;  %v6491_v5 = vld [vmem:[#allocation65_spill] sm:$0xff] }
 0x199   : > { %1635 = vmatpush1.bf16.msra.mxu0 %v5672_v17  ;;  %1688 = vmatpush1.bf16.msra.mxu1 %v6482_v38  ;;  %v6492_v17 = vld [vmem:[#allocation66_spill] sm:$0xff]  ;;  %v4677_v38 = vld [vmem:[#allocation7 + $0xe8] sm:$0xff]  }
 0x19a   : > { %1636 = vmatprep.subr.bf16.mxu0 %v6483_v3  ;;  %1689 = vmatprep.subr.bf16.mxu1 %v6484_v8 }
 0x19d   : > { %1637 = vmatpush1.bf16.msra.mxu0 %v6485_v9  ;;  %1690 = vmatpush1.bf16.msra.mxu1 %v6486_v10  ;;  %v4678_v10 = vld [vmem:[#allocation7 + $0x28] sm:$0xff]  }
 0x19e   : > { %1638 = vmatprep.subr.bf16.mxu0 %v6487_v14  ;;  %1691 = vmatprep.subr.bf16.mxu1 %v6488_v18  ;;  %v4679_v18 = vld [vmem:[#allocation7 + $0xa8] sm:$0xff]  }
 0x1a1   : > { %1639 = vmatpush1.bf16.msra.mxu0 %v6489_v19  ;;  %1692 = vmatpush1.bf16.msra.mxu1 %v6490_v20  ;;  %v4680_v19 = vld [vmem:[#allocation7 + $0x70] sm:$0xff]  }
 0x1a2   : > { %1640 = vmatprep.subr.bf16.mxu0 %v6491_v5  ;;  %1693 = vmatprep.subr.bf16.mxu1 %v6492_v17  ;;  %v4681_v5 = vld [vmem:[#allocation7 + $0xf0] sm:$0xff]  }
 0x1a5   : > { %1641 = vmatpush1.bf16.msra.mxu0 %v6493_v21  ;;  %1694 = vmatpush1.bf16.msra.mxu1 %v6494_v26 }
 0x1a6   : > { %1642 = vmatprep.subr.bf16.mxu0 %v6495_v27  ;;  %1695 = vmatprep.subr.bf16.mxu1 %v6496_v28 }
 0x1a9   : > { %1643 = vmatpush1.bf16.msra.mxu0 %v6497_v29  ;;  %1696 = vmatpush1.bf16.msra.mxu1 %v6498_v34 }
 0x1aa   : > { %1644 = vmatprep.subr.bf16.mxu0 %v6499_v35  ;;  %1697 = vmatprep.subr.bf16.mxu1 %v6500_v36  ;;  %v4682_v35 = vld [vmem:[#allocation7 + $0x30] sm:$0xff]  }
 0x1ab   : > { %v4683_v36 = vld [vmem:[#allocation7 + $0xb0] sm:$0xff]  }
 0x1ad   : > { %1645 = vmatpush1.bf16.msra.mxu0 %v6501_v37  ;;  %1698 = vmatpush1.bf16.msra.mxu1 %v6502_v42  ;;  %v4684_v37 = vld [vmem:[#allocation7 + $0x78] sm:$0xff]  }
 0x1ae   : > { %1646 = vmatprep.subr.bf16.mxu0 %v6503_v43  ;;  %1699 = vmatprep.subr.bf16.mxu1 %v6504_v44 }
 0x1b1   : > { %1647 = vmatpush1.bf16.msra.mxu0 %v6505_v45  ;;  %1700 = vmatpush1.bf16.msra.mxu1 %v6506_v50 }
 0x1b2   : > { %1648 = vmatprep.subr.bf16.mxu0 %v6507_v51  ;;  %1701 = vmatprep.subr.bf16.mxu1 %v6508_v52  ;;  %v4685_v51 = vld [vmem:[#allocation7 + $0xf8] sm:$0xff]  }
 0x1b5   : > { %1649 = vmatpush1.bf16.msra.mxu0 %v6509_v55  ;;  %1702 = vmatpush1.bf16.msra.mxu1 %v6510_v61 }
 0x1b6   : > { %1650 = vmatprep.subr.bf16.mxu0 %v6511_v63  ;;  %1703 = vmatprep.subr.bf16.mxu1 %v6512_v0 }
 0x1b9   : > { %1651 = vmatpush1.bf16.msra.mxu0 %v6513_v7  ;;  %1704 = vmatpush1.bf16.msra.mxu1 %v6514_v11 }
 0x1ba   : > { %1652 = vmatprep.subr.bf16.mxu0 %v6515_v12  ;;  %1705 = vmatprep.subr.bf16.mxu1 %v6516_v13  ;;  %v4686_v13 = vld [vmem:[#allocation7 + $0x38] sm:$0xff]  }
 0x1bd   : > { %1653 = vmatpush1.bf16.msra.mxu0 %v5783_v47  ;;  %1706 = vmatpush1.bf16.msra.mxu1 %v5787_v31  ;;  %v4656_v47 = vld [vmem:[#allocation7 + $0x40] sm:$0xff]  }
 0x1be   : > { %1654 = vmatprep.subr.bf16.mxu0 %v5789_v49  ;;  %1707 = vmatprep.subr.bf16.mxu1 %v6517_v24  ;;  %v4657_v31 = vld [vmem:[#allocation7 + $0xc0] sm:$0xff]  }
 0x1bf   : > { %v4658_v49 = vld [vmem:[#allocation7] sm:$0xff]  }
 0x1c1   : > { %1655 = vmatpush1.bf16.msra.mxu0 %v5795_v54  ;;  %1708 = vmatpush1.bf16.msra.mxu1 %v5799_v40  ;;  %v4659_v54 = vld [vmem:[#allocation7 + $0x80] sm:$0xff]   ;;  %v4660_v40 = vld [vmem:[#allocation7 + $0x48] sm:$0xff]  }
 0x1c2   : > { %1656 = vmatprep.subr.bf16.mxu0 %v5801_v59  ;;  %1709 = vmatprep.subr.bf16.mxu1 %v5804_v46  ;;  %v4661_v46 = vld [vmem:[#allocation7 + $0xc8] sm:$0xff]  }
 0x1c3   : > { %v4662_v59 = vld [vmem:[#allocation7 + $0x8] sm:$0xff]  }
 0x1c5   : > { %1657 = vmatpush1.bf16.msra.mxu0 %v5807_v57  ;;  %1710 = vmatpush1.bf16.msra.mxu1 %v5811_v33  ;;  %v4663_v57 = vld [vmem:[#allocation7 + $0x88] sm:$0xff]   ;;  %v4664_v33 = vld [vmem:[#allocation7 + $0x50] sm:$0xff]  }
 0x1c6   : > { %1658 = vmatprep.subr.bf16.mxu0 %v5813_v15  ;;  %1711 = vmatprep.subr.bf16.mxu1 %v5816_v56  ;;  %v618_v15 = vlaneseq  ;;  %v4666_v56 = vld [vmem:[#allocation7 + $0x10] sm:$0xff]  }
 0x1c8   : > { %v5993_v30 = vshrl.u32 %v618_v15, 7 }
 0x1c9   : > { %1659 = vmatpush1.bf16.msra.mxu0 %v5819_v32  ;;  %1712 = vmatpush1.bf16.msra.mxu1 %v5823_v58  ;;  %v4665_v32 = vld [vmem:[#allocation7 + $0xd0] sm:$0xff]  }
 0x1ca   : > { %4231 = vmatprep.subr.bf16.mxu0 %v4656_v47  ;;  %4259 = vmatprep.subr.bf16.mxu1 %v4657_v31  ;;  %v4667_v58 = vld [vmem:[#allocation7 + $0x90] sm:$0xff]   ;;  %v620_v1 = vsub.s32 0, %v5993_v30  ;;  %v628_v41 = vsub.s32 2, %v5993_v30  ;;  %v632_v53 = vsub.s32 3, %v5993_v30  ;;  %v4687_v31 = vld [vmem:[#allocation7 + $0xb8] sm:$0xff]  }
 0x1cc   : > { %1661 = vmatmul.mubr.bf16.vlgmr.msra.gmra.mrb[24].mxu0 %v5904_v62  ;;  %1714 = vmatmul.mubr.bf16.vlgmr.msra.gmra.mrb[24].mxu1 %v5904_v62  ;;  %v4669_v62 = vld [vmem:[#allocation7 + $0xd8] sm:$0xff]   ;;  %v6006_v3 = vrot.slane %v6000_v60, %v620_v1  ;;  %v6009_v8 = vrot.slane %v6000_v60, %v628_v41  ;;  %v6015_v14 = vrot.slane %v6000_v60, %v632_v53 }
 0x1cd   : > { %4232 = vmatpush3.bf16.msra.mxu0 %v4658_v49  ;;  %4260 = vmatpush3.bf16.msra.mxu1 %v4659_v54  ;;  %v4688_v54 = vld [vmem:[#allocation7 + $0x140] sm:$0xff]  }
 0x1ce   : > { %4233 = vmatprep.subr.bf16.mxu0 %v4660_v40  ;;  %4261 = vmatprep.subr.bf16.mxu1 %v4661_v46 }
 0x1cf   : > { %1670 = vmatprep.mubr.bf16.mxu0 %v5912_v23  ;;  %1723 = vmatprep.mubr.bf16.mxu1 %v5912_v23  ;;  %v4671_v23 = vld [vmem:[#allocation7 + $0x98] sm:$0xff]  }
 0x1d1   : > { %4234 = vmatpush3.bf16.msra.mxu0 %v4662_v59  ;;  %4262 = vmatpush3.bf16.msra.mxu1 %v4663_v57  ;;  %v4689_v59 = vld [vmem:[#allocation7 + $0x1c0] sm:$0xff]  }
 0x1d2   : > { %4235 = vmatprep.subr.bf16.mxu0 %v4664_v33  ;;  %4263 = vmatprep.subr.bf16.mxu1 %v4665_v32 }
 0x1d4   : > { %1671 = vmatmul.mubr.bf16.gmra.mrb[28].mxu0 %v5923_v2  ;;  %1724 = vmatmul.mubr.bf16.gmra.mrb[28].mxu1 %v5923_v2  ;;  %v624_v2 = vsub.s32 1, %v5993_v30 }
 0x1d5   : > { %4236 = vmatpush3.bf16.msra.mxu0 %v4666_v56  ;;  %4264 = vmatpush3.bf16.msra.mxu1 %v4667_v58 }
 0x1d6   : > { %4237 = vmatprep.subr.bf16.mxu0 %v4668_v25  ;;  %4265 = vmatprep.subr.bf16.mxu1 %v4669_v62  ;;  %v6012_v9 = vrot.slane %v6000_v60, %v624_v2 }
 0x1d9   : > { %4238 = vmatpush3.bf16.msra.mxu0 %v4670_v39  ;;  %4266 = vmatpush3.bf16.msra.mxu1 %v4671_v23 }
 0x1da   : > { %4239 = vmatprep.subr.bf16.mxu0 %v4672_v6  ;;  %4267 = vmatprep.subr.bf16.mxu1 %v4673_v48 }
 0x1dd   : > { %4240 = vmatpush3.bf16.msra.mxu0 %v4674_v22  ;;  %4268 = vmatpush3.bf16.msra.mxu1 %v4675_v16 }
 0x1de   : > { %4241 = vmatprep.subr.bf16.mxu0 %v4676_v4  ;;  %4269 = vmatprep.subr.bf16.mxu1 %v4677_v38  ;;  %v4690_v4 = vld [vmem:[#allocation7 + $0x100] sm:$0xff]  }
 0x1df   : > { %v1332_v20 = vpop.f32.mrb[0].mxu0  ;;  %v1385_v21 = vpop.f32.mrb[0].mxu1  ;;  %v4691_v38 = vld [vmem:[#allocation7 + $0x180] sm:$0xff]  }
 0x1e0   : > { %v1333_v17 = vadd.f32 %v1332_v20, %v6006_v3  ;;  %v1334_v26 = vpop.f32.mrb[1].mxu0  ;;  %v1386_v27 = vadd.f32 %v1385_v21, %v6009_v8  ;;  %v1387_v29 = vpop.f32.mrb[1].mxu1  ;;  %v4693_v20 = vld [vmem:[#allocation7 + $0x1c8] sm:$0xff]  }
 0x1e1   : > { %v1335_v28 = vadd.f32 %v1334_v26, %v6012_v9  ;;  %v1336_v34 = vpop.f32.mrb[2].mxu0  ;;  %4242 = vmatpush3.bf16.msra.mxu0 %v4678_v10  ;;  %v1388_v43 = vadd.f32 %v1387_v29, %v6015_v14  ;;  %v1389_v45 = vpop.f32.mrb[2].mxu1  ;;  %4270 = vmatpush3.bf16.msra.mxu1 %v4679_v18  ;;  %v4692_v10 = vld [vmem:[#allocation7 + $0x148] sm:$0xff]  }
 0x1e2   : > { %vm1734_vm0 = vcmp.gt.f32.partialorder %v1333_v17, 0.0  ;;  %v1766_v42 = vmul.f32 0.2, %v1333_v17  ;;  %v1337_v44 = vadd.f32 %v1336_v34, %v6006_v3  ;;  %v1338_v50 = vpop.f32.mrb[3].mxu0  ;;  %4243 = vmatprep.subr.bf16.mxu0 %v4680_v19  ;;  %vm1736_vm1 = vcmp.gt.f32.partialorder %v1386_v27, 0.0  ;;  %4271 = vmatprep.subr.bf16.mxu1 %v4681_v5  ;;  %v1391_v63 = vpop.f32.mrb[3].mxu1 }
 0x1e3   : > { %v1768_v52 = vmul.f32 0.2, %v1386_v27  ;;  %vm1735_vm2 = vcmp.gt.f32.partialorder %v1335_v28, 0.0  ;;  %v1767_v55 = vmul.f32 0.2, %v1335_v28  ;;  %v1390_v11 = vadd.f32 %v1389_v45, %v6009_v8  ;;  %v4696_v45 = vld [vmem:[#allocation7 + $0x150] sm:$0xff]  }
 0x1e4   : > { %v6022_v61 = vsel %vm1734_vm0, %v1333_v17, %v1766_v42  ;;  %vm1742_vm3 = vcmp.gt.f32.partialorder %v1337_v44, 0.0  ;;  %v1769_v0 = vmul.f32 0.2, %v1388_v43  ;;  %v1774_v7 = vmul.f32 0.2, %v1337_v44 }
 0x1e5   : > { %v1339_v12 = vadd.f32 %v1338_v50, %v6012_v9  ;;  %4244 = vmatpush3.bf16.msra.mxu0 %v4682_v35  ;;  %v1800_v24 = vsel %vm1736_vm1, %v1386_v27, %v1768_v52  ;;  %vm1737_vm4 = vcmp.gt.f32.partialorder %v1388_v43, 0.0  ;;  %v1392_v47 = vadd.f32 %v1391_v63, %v6015_v14  ;;  %4272 = vmatpush3.bf16.msra.mxu1 %v4683_v36  ;;  %v4694_v27 = vld [vmem:[#allocation7 + $0x108] sm:$0xff]   ;;  %v4697_v50 = vld [vmem:[#allocation7 + $0x1d0] sm:$0xff]  }
 0x1e6   : > { %4245 = vmatprep.subr.bf16.mxu0 %v4684_v37  ;;  %v1799_v49 = vsel %vm1735_vm2, %v1335_v28, %v1767_v55  ;;  %v1806_v40 = vsel %vm1742_vm3, %v1337_v44, %v1774_v7  ;;  %vm1744_vm5 = vcmp.gt.f32.partialorder %v1390_v11, 0.0  ;;  %v1776_v46 = vmul.f32 0.2, %v1390_v11  ;;  %4273 = vmatprep.subr.bf16.mxu1 %v4685_v51  ;;  %v4695_v28 = vld [vmem:[#allocation7 + $0x188] sm:$0xff]  }
 0x1e7   : > { %vm1743_vm6 = vcmp.gt.f32.partialorder %v1339_v12, 0.0  ;;  %v1342_v57 = vpop.f32.mrb[4].mxu0  ;;  %v1926_v33 = vpack.c.bf16 %v1806_v40, %v6022_v61  ;;  %v1775_v32 = vmul.f32 0.2, %v1339_v12  ;;  %vm1745_vm7 = vcmp.gt.f32.partialorder %v1392_v47, 0.0  ;;  %v1395_v6 = vpop.f32.mrb[4].mxu1 }
 0x1e8   : > { %v1777_v15 = vmul.f32 0.2, %v1392_v47  ;;  %v1344_v56 = vpop.f32.mrb[5].mxu0  ;;  %v1808_v58 = vsel %vm1744_vm5, %v1390_v11, %v1776_v46  ;;  %v1801_v25 = vsel %vm1737_vm4, %v1388_v43, %v1769_v0  ;;  %v1343_v62 = vadd.f32 %v1342_v57, %v6006_v3  ;;  %v1397_v2 = vpop.f32.mrb[5].mxu1  ;;  %v4702_v57 = vld [vmem:[#allocation7 + $0x118] sm:$0xff]  }
 0x1e9   : > { %4246 = vmatpush3.bf16.msra.mxu0 %v4686_v13  ;;  %v1345_v39 = vadd.f32 %v1344_v56, %v6012_v9  ;;  %v1346_v23 = vpop.f32.mrb[6].mxu0  ;;  %v1928_v48 = vpack.c.bf16 %v1808_v58, %v1800_v24  ;;  %4274 = vmatpush3.bf16.msra.mxu1 %v4687_v31  ;;  %v1807_v1 = vsel %vm1743_vm6, %v1339_v12, %v1775_v32  ;;  %v1399_v18 = vpop.f32.mrb[6].mxu1  ;;  %v4698_v13 = vld [vmem:[#allocation7 + $0x110] sm:$0xff]   ;;  %v4704_v32 = vld [vmem:[#allocation7 + $0x160] sm:$0xff]  }
 0x1ea   : > { %v1809_v22 = vsel %vm1745_vm7, %v1392_v47, %v1777_v15  ;;  %4287 = vmatprep.subr.bf16.mxu0 %v4688_v54  ;;  %v1348_v41 = vpop.f32.mrb[7].mxu0  ;;  %v1927_v16 = vpack.c.bf16 %v1807_v1, %v1799_v49  ;;  %4315 = vmatprep.subr.bf16.mxu1 %v4689_v59  ;;  %vm1750_vm8 = vcmp.gt.f32.partialorder %v1343_v62, 0.0  ;;  %v1782_v19 = vmul.f32 0.2, %v1343_v62  ;;  %v1401_v26 = vpop.f32.mrb[7].mxu1  ;;  %v4699_v24 = vld [vmem:[#allocation7 + $0x190] sm:$0xff]  }
 0x1eb   : > { %v1929_v53 = vpack.c.bf16 %v1809_v22, %v1801_v25  ;;  %v1783_v5 = vmul.f32 0.2, %v1345_v39  ;;  %v1347_v17 = vadd.f32 %v1346_v23, %v6006_v3  ;;  %v1396_v21 = vadd.f32 %v1395_v6, %v6009_v8  ;;  %v4700_v49 = vld [vmem:[#allocation7 + $0x158] sm:$0xff]   ;;  %v4705_v15 = vld [vmem:[#allocation7 + $0x1e0] sm:$0xff]   ;;  %v4708_v25 = vld [vmem:[#allocation7 + $0x168] sm:$0xff]  }
 0x1ec   : > { %2493 = vmatprep.mubr.bf16.mxu0 %v1927_v16  ;;  %vm1751_vm9 = vcmp.gt.f32.partialorder %v1345_v39, 0.0  ;;  %v1349_v29 = vadd.f32 %v1348_v41, %v6012_v9  ;;  %v1398_v34 = vadd.f32 %v1397_v2, %v6015_v14  ;;  %v1400_v35 = vadd.f32 %v1399_v18, %v6009_v8  ;;  %v4701_v54 = vld [vmem:[#allocation7 + $0x1d8] sm:$0xff]   ;;  %v4706_v56 = vld [vmem:[#allocation7 + $0x120] sm:$0xff]   ;;  %v4711_v23 = vld [vmem:[#allocation7 + $0x1a8] sm:$0xff]  }
 0x1ed   : > { %2542 = vmatprep.mubr.bf16.mxu1 %v1929_v53  ;;  %2494 = vmatmul.mubr.bf16.vlgmr.msra.gmra.mrb[32].mxu0 %v1926_v33  ;;  %vm1758_vm10 = vcmp.gt.f32.partialorder %v1347_v17, 0.0  ;;  %v1790_v36 = vmul.f32 0.2, %v1347_v17  ;;  %vm1752_vm11 = vcmp.gt.f32.partialorder %v1396_v21, 0.0  ;;  %v1784_v37 = vmul.f32 0.2, %v1396_v21 }
 0x1ee   : > { %2543 = vmatmul.mubr.bf16.vlgmr.msra.gmra.mrb[32].mxu1 %v1928_v48  ;;  %4288 = vmatpush3.bf16.msra.mxu0 %v4690_v4  ;;  %vm1759_vm12 = vcmp.gt.f32.partialorder %v1349_v29, 0.0  ;;  %v1791_v42 = vmul.f32 0.2, %v1349_v29  ;;  %vm1753_vm13 = vcmp.gt.f32.partialorder %v1398_v34, 0.0  ;;  %v1785_v43 = vmul.f32 0.2, %v1398_v34 }
 0x1ef   : > { %4316 = vmatpush3.bf16.msra.mxu1 %v4691_v38  ;;  %4289 = vmatprep.subr.bf16.mxu0 %v4692_v10  ;;  %vm1760_vm14 = vcmp.gt.f32.partialorder %v1400_v35, 0.0  ;;  %v1792_v44 = vmul.f32 0.2, %v1400_v35  ;;  %v1402_v51 = vadd.f32 %v1401_v26, %v6015_v14  ;;  %v1815_v52 = vsel %vm1751_vm9, %v1345_v39, %v1783_v5  ;;  %v4703_v33 = vld [vmem:[#allocation7 + $0x198] sm:$0xff]   ;;  %v4707_v58 = vld [vmem:[#allocation7 + $0x1a0] sm:$0xff]   ;;  %v4710_v39 = vld [vmem:[#allocation7 + $0x128] sm:$0xff]  }
 0x1f0   : > { %4317 = vmatprep.subr.bf16.mxu1 %v4693_v20  ;;  %v1823_v55 = vsel %vm1759_vm12, %v1349_v29, %v1791_v42  ;;  %v1814_v61 = vsel %vm1750_vm8, %v1343_v62, %v1782_v19  ;;  %v1822_v63 = vsel %vm1758_vm10, %v1347_v17, %v1790_v36  ;;  %v1817_v0 = vsel %vm1753_vm13, %v1398_v34, %v1785_v43  ;;  %v4709_v62 = vld [vmem:[#allocation7 + $0x1e8] sm:$0xff]   ;;  %v4712_v6 = vld [vmem:[#allocation7 + $0x170] sm:$0xff]   ;;  %v4716_v41 = vld [vmem:[#allocation7 + $0x178] sm:$0xff]  }
 0x1f1   : > { %vm1761_vm15 = vcmp.gt.f32.partialorder %v1402_v51, 0.0  ;;  %v1793_v7 = vmul.f32 0.2, %v1402_v51  ;;  %v1935_v11 = vpack.c.bf16 %v1823_v55, %v1815_v52  ;;  %v1934_v12 = vpack.c.bf16 %v1822_v63, %v1814_v61  ;;  %v4713_v48 = vld [vmem:[#allocation7 + $0x1f0] sm:$0xff]   ;;  %v4717_v2 = vld [vmem:[#allocation7 + $0x1f8] sm:$0xff]   ;;  %v4720_v4 = vld [vmem:[#allocation9 + $0x40] sm:$0xff]  }
 0x1f2   : > { %4290 = vmatpush3.bf16.msra.mxu0 %v4694_v27  ;;  %v1816_v47 = vsel %vm1752_vm11, %v1396_v21, %v1784_v37  ;;  %v1824_v31 = vsel %vm1760_vm14, %v1400_v35, %v1792_v44  ;;  %v4714_v1 = vld [vmem:[#allocation7 + $0x130] sm:$0xff]   ;;  %v4718_v16 = vld [vmem:[#allocation7 + $0x138] sm:$0xff]   ;;  %v4721_v38 = vld [vmem:[#allocation9 + $0xc0] sm:$0xff]   ;;  %v636_v10 = vsub.s32 4, %v5993_v30  ;;  %v644_v18 = vsub.s32 6, %v5993_v30 }
 0x1f3   : > { %4318 = vmatpush3.bf16.msra.mxu1 %v4695_v28  ;;  %4291 = vmatprep.subr.bf16.mxu0 %v4696_v45  ;;  %v1825_v40 = vsel %vm1761_vm15, %v1402_v51, %v1793_v7  ;;  %v1936_v46 = vpack.c.bf16 %v1824_v31, %v1816_v47  ;;  %v4715_v22 = vld [vmem:[#allocation7 + $0x1b0] sm:$0xff]   ;;  %v4719_v53 = vld [vmem:[#allocation7 + $0x1b8] sm:$0xff]   ;;  %v640_v19 = vsub.s32 5, %v5993_v30  ;;  %v648_v20 = vsub.s32 7, %v5993_v30 }
 0x1f4   : > { %4319 = vmatprep.subr.bf16.mxu1 %v4697_v50  ;;  %2501 = vmatprep.mubr.bf16.mxu0 %v1935_v11  ;;  %v1937_v59 = vpack.c.bf16 %v1825_v40, %v1817_v0  ;;  %v6050_v5 = vrot.slane %v6000_v60, %v636_v10  ;;  %v6053_v17 = vrot.slane %v6000_v60, %v644_v18  ;;  %v4722_v10 = vld [vmem:[#allocation9] sm:$0xff]  }
 0x1f5   : > { %2502 = vmatmul.mubr.bf16.gmra.mrb[36].mxu0 %v1934_v12  ;;  %v6056_v21 = vrot.slane %v6000_v60, %v640_v19  ;;  %v6059_v26 = vrot.slane %v6000_v60, %v648_v20 }
 0x1f6   : > { %4292 = vmatpush3.bf16.msra.mxu0 %v4698_v13  ;;  %2550 = vmatprep.mubr.bf16.mxu1 %v1937_v59 }
 0x1f7   : > { %4320 = vmatpush3.bf16.msra.mxu1 %v4699_v24  ;;  %4293 = vmatprep.subr.bf16.mxu0 %v4700_v49 }
 0x1f8   : > { %4321 = vmatprep.subr.bf16.mxu1 %v4701_v54  ;;  %2551 = vmatmul.mubr.bf16.gmra.mrb[36].mxu1 %v1936_v46 }
 0x1fa   : > { %4294 = vmatpush3.bf16.msra.mxu0 %v4702_v57 }
 0x1fb   : > { %4322 = vmatpush3.bf16.msra.mxu1 %v4703_v33  ;;  %4295 = vmatprep.subr.bf16.mxu0 %v4704_v32 }
 0x1fc   : > { %4323 = vmatprep.subr.bf16.mxu1 %v4705_v15 }
 0x1fe   : > { %4296 = vmatpush3.bf16.msra.mxu0 %v4706_v56 }
 0x1ff   : > { %4324 = vmatpush3.bf16.msra.mxu1 %v4707_v58  ;;  %4297 = vmatprep.subr.bf16.mxu0 %v4708_v25 }
 0x200   : > { %4325 = vmatprep.subr.bf16.mxu1 %v4709_v62 }
 0x202   : > { %4298 = vmatpush3.bf16.msra.mxu0 %v4710_v39 }
 0x203   : > { %4326 = vmatpush3.bf16.msra.mxu1 %v4711_v23  ;;  %4299 = vmatprep.subr.bf16.mxu0 %v4712_v6 }
 0x204   : > { %4327 = vmatprep.subr.bf16.mxu1 %v4713_v48 }
 0x206   : > { %4300 = vmatpush3.bf16.msra.mxu0 %v4714_v1 }
 0x207   : > { %4328 = vmatpush3.bf16.msra.mxu1 %v4715_v22  ;;  %4301 = vmatprep.subr.bf16.mxu0 %v4716_v41 }
 0x208   : > { %4329 = vmatprep.subr.bf16.mxu1 %v4717_v2 }
 0x20a   : > { %4302 = vmatpush3.bf16.msra.mxu0 %v4718_v16 }
 0x20b   : > { %4330 = vmatpush3.bf16.msra.mxu1 %v4719_v53  ;;  %4343 = vmatprep.subr.bf16.mxu0 %v4720_v4 }
 0x20c   : > { %4371 = vmatprep.subr.bf16.mxu1 %v4721_v38 }
 0x21f   : > { %v1438_v27 = vpop.f32.mrb[8].mxu0  ;;  %v1491_v29 = vpop.f32.mrb[8].mxu1 }
 0x220   : > { %v1439_v28 = vadd.f32 %v1438_v27, %v6050_v5  ;;  %v1440_v34 = vpop.f32.mrb[9].mxu0  ;;  %v1492_v35 = vadd.f32 %v1491_v29, %v6053_v17  ;;  %v1493_v36 = vpop.f32.mrb[9].mxu1  ;;  %v4723_v29 = vld [vmem:[#allocation9 + $0x80] sm:$0xff]  }
 0x221   : > { %v1441_v30 = vadd.f32 %v1440_v34, %v6056_v21  ;;  %v1442_v37 = vpop.f32.mrb[10].mxu0  ;;  %v1494_v43 = vadd.f32 %v1493_v36, %v6059_v26  ;;  %v1495_v45 = vpop.f32.mrb[10].mxu1  ;;  %v4724_v34 = vld [vmem:[#allocation9 + $0x48] sm:$0xff]  }
 0x222   : > { %vm1738_vm0 = vcmp.gt.f32.partialorder %v1439_v28, 0.0  ;;  %v1770_v42 = vmul.f32 0.2, %v1439_v28  ;;  %v1443_v44 = vadd.f32 %v1442_v37, %v6050_v5  ;;  %v1444_v60 = vpop.f32.mrb[11].mxu0  ;;  %vm1740_vm1 = vcmp.gt.f32.partialorder %v1492_v35, 0.0  ;;  %v1497_v55 = vpop.f32.mrb[11].mxu1 }
 0x223   : > { %v1772_v50 = vmul.f32 0.2, %v1492_v35  ;;  %vm1739_vm2 = vcmp.gt.f32.partialorder %v1441_v30, 0.0  ;;  %v1771_v51 = vmul.f32 0.2, %v1441_v30  ;;  %vm1741_vm4 = vcmp.gt.f32.partialorder %v1494_v43, 0.0 }
 0x224   : > { %v1773_v52 = vmul.f32 0.2, %v1494_v43  ;;  %vm1746_vm3 = vcmp.gt.f32.partialorder %v1443_v44, 0.0  ;;  %v1778_v61 = vmul.f32 0.2, %v1443_v44  ;;  %v1496_v63 = vadd.f32 %v1495_v45, %v6053_v17 }
 0x225   : > { %v1445_v0 = vadd.f32 %v1444_v60, %v6056_v21  ;;  %v1802_v7 = vsel %vm1738_vm0, %v1439_v28, %v1770_v42  ;;  %v1804_v11 = vsel %vm1740_vm1, %v1492_v35, %v1772_v50  ;;  %v1498_v12 = vadd.f32 %v1497_v55, %v6059_v26  ;;  %v4725_v35 = vld [vmem:[#allocation9 + $0xc8] sm:$0xff]  }
 0x226   : > { %v1803_v13 = vsel %vm1739_vm2, %v1441_v30, %v1771_v51  ;;  %v1810_v24 = vsel %vm1746_vm3, %v1443_v44, %v1778_v61  ;;  %vm1748_vm5 = vcmp.gt.f32.partialorder %v1496_v63, 0.0  ;;  %v1780_v47 = vmul.f32 0.2, %v1496_v63  ;;  %v4726_v61 = vld [vmem:[#allocation9 + $0x8] sm:$0xff]  }
 0x227   : > { %vm1747_vm6 = vcmp.gt.f32.partialorder %v1445_v0, 0.0  ;;  %v1448_v31 = vpop.f32.mrb[12].mxu0  ;;  %v1930_v49 = vpack.c.bf16 %v1810_v24, %v1802_v7  ;;  %v1779_v54 = vmul.f32 0.2, %v1445_v0  ;;  %vm1749_vm7 = vcmp.gt.f32.partialorder %v1498_v12, 0.0  ;;  %v1501_v56 = vpop.f32.mrb[12].mxu1 }
 0x228   : > { %v1450_v40 = vpop.f32.mrb[13].mxu0  ;;  %v1805_v46 = vsel %vm1741_vm4, %v1494_v43, %v1773_v52  ;;  %v1812_v59 = vsel %vm1748_vm5, %v1496_v63, %v1780_v47  ;;  %v1781_v57 = vmul.f32 0.2, %v1498_v12  ;;  %v1449_v33 = vadd.f32 %v1448_v31, %v6050_v5  ;;  %v1503_v23 = vpop.f32.mrb[13].mxu1  ;;  %v4727_v63 = vld [vmem:[#allocation9 + $0x88] sm:$0xff]   ;;  %v4728_v7 = vld [vmem:[#allocation9 + $0x50] sm:$0xff]  }
 0x229   : > { %v1451_v32 = vadd.f32 %v1450_v40, %v6056_v21  ;;  %v1452_v15 = vpop.f32.mrb[14].mxu0  ;;  %v1932_v58 = vpack.c.bf16 %v1812_v59, %v1804_v11  ;;  %v1502_v62 = vadd.f32 %v1501_v56, %v6053_v17  ;;  %v1811_v6 = vsel %vm1747_vm6, %v1445_v0, %v1779_v54  ;;  %v1505_v38 = vpop.f32.mrb[14].mxu1  ;;  %v4730_v24 = vld [vmem:[#allocation9 + $0x10] sm:$0xff]   ;;  %v4732_v31 = vld [vmem:[#allocation9 + $0x58] sm:$0xff]   ;;  %v4737_v59 = vld [vmem:[#allocation9 + $0xe0] sm:$0xff]  }
 0x22a   : > { %v1453_v25 = vadd.f32 %v1452_v15, %v6050_v5  ;;  %v1454_v39 = vpop.f32.mrb[15].mxu0  ;;  %vm1754_vm8 = vcmp.gt.f32.partialorder %v1449_v33, 0.0  ;;  %v1786_v48 = vmul.f32 0.2, %v1449_v33  ;;  %v1504_v16 = vadd.f32 %v1503_v23, %v6059_v26  ;;  %v1507_v20 = vpop.f32.mrb[15].mxu1  ;;  %v4731_v47 = vld [vmem:[#allocation9 + $0x90] sm:$0xff]  }
 0x22b   : > { %vm1755_vm9 = vcmp.gt.f32.partialorder %v1451_v32, 0.0  ;;  %v1787_v1 = vmul.f32 0.2, %v1451_v32  ;;  %vm1756_vm11 = vcmp.gt.f32.partialorder %v1502_v62, 0.0  ;;  %v1788_v41 = vmul.f32 0.2, %v1502_v62 }
 0x22c   : > { %vm1762_vm10 = vcmp.gt.f32.partialorder %v1453_v25, 0.0  ;;  %v1794_v22 = vmul.f32 0.2, %v1453_v25  ;;  %v1455_v2 = vadd.f32 %v1454_v39, %v6056_v21  ;;  %v1931_v53 = vpack.c.bf16 %v1811_v6, %v1803_v13  ;;  %v4734_v54 = vld [vmem:[#allocation9 + $0x18] sm:$0xff]   ;;  %v4741_v15 = vld [vmem:[#allocation9 + $0xe8] sm:$0xff]   ;;  %v4746_v39 = vld [vmem:[#allocation9 + $0x30] sm:$0xff]  }
 0x22d   : > { %v1813_v4 = vsel %vm1749_vm7, %v1498_v12, %v1781_v57  ;;  %v1506_v19 = vadd.f32 %v1505_v38, %v6053_v17  ;;  %v1819_v27 = vsel %vm1755_vm9, %v1451_v32, %v1787_v1  ;;  %v1818_v28 = vsel %vm1754_vm8, %v1449_v33, %v1786_v48  ;;  %v4729_v12 = vld [vmem:[#allocation9 + $0xd0] sm:$0xff]   ;;  %v4735_v40 = vld [vmem:[#allocation9 + $0x98] sm:$0xff]   ;;  %v4738_v57 = vld [vmem:[#allocation9 + $0x20] sm:$0xff]  }
 0x22e   : > { %v1933_v18 = vpack.c.bf16 %v1813_v4, %v1805_v46  ;;  %vm1763_vm12 = vcmp.gt.f32.partialorder %v1455_v2, 0.0  ;;  %v1795_v30 = vmul.f32 0.2, %v1455_v2  ;;  %vm1757_vm13 = vcmp.gt.f32.partialorder %v1504_v16, 0.0  ;;  %2591 = vmatprep.mubr.bf16.mxu0 %v1931_v53  ;;  %v4736_v46 = vld [vmem:[#allocation9 + $0x60] sm:$0xff]   ;;  %v4740_v32 = vld [vmem:[#allocation9 + $0x68] sm:$0xff]  }
 0x22f   : > { %v1789_v36 = vmul.f32 0.2, %v1504_v16  ;;  %vm1764_vm14 = vcmp.gt.f32.partialorder %v1506_v19, 0.0  ;;  %v1796_v37 = vmul.f32 0.2, %v1506_v19  ;;  %2592 = vmatmul.mubr.bf16.vlgmr.msra.gmra.mrb[40].mxu0 %v1930_v49  ;;  %v1508_v42 = vadd.f32 %v1507_v20, %v6059_v26  ;;  %v4733_v49 = vld [vmem:[#allocation9 + $0xd8] sm:$0xff]  }
 0x230   : > { %2640 = vmatprep.mubr.bf16.mxu1 %v1933_v18  ;;  %v1826_v43 = vsel %vm1762_vm10, %v1453_v25, %v1794_v22  ;;  %v1827_v44 = vsel %vm1763_vm12, %v1455_v2, %v1795_v30  ;;  %v1820_v50 = vsel %vm1756_vm11, %v1502_v62, %v1788_v41  ;;  %4344 = vmatpush3.bf16.msra.mxu0 %v4722_v10  ;;  %v4739_v33 = vld [vmem:[#allocation9 + $0xa0] sm:$0xff]   ;;  %v4742_v56 = vld [vmem:[#allocation9 + $0x28] sm:$0xff]   ;;  %v4744_v25 = vld [vmem:[#allocation9 + $0x70] sm:$0xff]  }
 0x231   : > { %2641 = vmatmul.mubr.bf16.vlgmr.msra.gmra.mrb[40].mxu1 %v1932_v58  ;;  %v1938_v45 = vpack.c.bf16 %v1826_v43, %v1818_v28  ;;  %v1821_v60 = vsel %vm1757_vm13, %v1504_v16, %v1789_v36  ;;  %vm1765_vm15 = vcmp.gt.f32.partialorder %v1508_v42, 0.0  ;;  %v1797_v51 = vmul.f32 0.2, %v1508_v42  ;;  %4345 = vmatprep.subr.bf16.mxu0 %v4724_v34  ;;  %v4743_v58 = vld [vmem:[#allocation9 + $0xa8] sm:$0xff]   ;;  %v4745_v62 = vld [vmem:[#allocation9 + $0xf0] sm:$0xff]   ;;  %v4748_v6 = vld [vmem:[#allocation9 + $0x78] sm:$0xff]  }
 0x232   : > { %v1939_v52 = vpack.c.bf16 %v1827_v44, %v1819_v27  ;;  %v1828_v55 = vsel %vm1764_vm14, %v1506_v19, %v1796_v37  ;;  %4372 = vmatpush3.bf16.msra.mxu1 %v4723_v29  ;;  %v4747_v23 = vld [vmem:[#allocation9 + $0xb0] sm:$0xff]   ;;  %v4749_v48 = vld [vmem:[#allocation9 + $0xf8] sm:$0xff]   ;;  %v4752_v41 = vld [vmem:[#allocation9 + $0x140] sm:$0xff]  }
 0x233   : > { %v1940_v0 = vpack.c.bf16 %v1828_v55, %v1820_v50  ;;  %4373 = vmatprep.subr.bf16.mxu1 %v4725_v35  ;;  %v1829_v11 = vsel %vm1765_vm15, %v1508_v42, %v1797_v51  ;;  %v4750_v1 = vld [vmem:[#allocation9 + $0x38] sm:$0xff]   ;;  %v4753_v2 = vld [vmem:[#allocation9 + $0x1c0] sm:$0xff]  }
 0x234   : > { %2599 = vmatprep.mubr.bf16.mxu0 %v1939_v52  ;;  %v1941_v13 = vpack.c.bf16 %v1829_v11, %v1821_v60  ;;  %4346 = vmatpush3.bf16.msra.mxu0 %v4726_v61  ;;  %v4751_v22 = vld [vmem:[#allocation9 + $0xb8] sm:$0xff]  }
 0x235   : > { %4347 = vmatprep.subr.bf16.mxu0 %v4728_v7 }
 0x236   : > { %4374 = vmatpush3.bf16.msra.mxu1 %v4727_v63  ;;  %2648 = vmatprep.mubr.bf16.mxu1 %v1941_v13 }
 0x237   : > { %2600 = vmatmul.mubr.bf16.gmra.mrb[44].mxu0 %v1938_v45  ;;  %4375 = vmatprep.subr.bf16.mxu1 %v4729_v12 }
 0x238   : > { %4348 = vmatpush3.bf16.msra.mxu0 %v4730_v24 }
 0x239   : > { %2649 = vmatmul.mubr.bf16.gmra.mrb[44].mxu1 %v1940_v0  ;;  %4349 = vmatprep.subr.bf16.mxu0 %v4732_v31 }
 0x23a   : > { %4376 = vmatpush3.bf16.msra.mxu1 %v4731_v47 }
 0x23b   : > { %4377 = vmatprep.subr.bf16.mxu1 %v4733_v49 }
 0x23c   : > { %4350 = vmatpush3.bf16.msra.mxu0 %v4734_v54 }
 0x23d   : > { %4351 = vmatprep.subr.bf16.mxu0 %v4736_v46 }
 0x23e   : > { %4378 = vmatpush3.bf16.msra.mxu1 %v4735_v40 }
 0x23f   : > { %4379 = vmatprep.subr.bf16.mxu1 %v4737_v59 }
 0x240   : > { %4352 = vmatpush3.bf16.msra.mxu0 %v4738_v57  ;;  %v4754_v57 = vld [vmem:[#allocation9 + $0x100] sm:$0xff]  }
 0x241   : > { %4353 = vmatprep.subr.bf16.mxu0 %v4740_v32 }
 0x242   : > { %4380 = vmatpush3.bf16.msra.mxu1 %v4739_v33 }
 0x243   : > { %4381 = vmatprep.subr.bf16.mxu1 %v4741_v15 }
 0x244   : > { %4354 = vmatpush3.bf16.msra.mxu0 %v4742_v56 }
 0x245   : > { %4355 = vmatprep.subr.bf16.mxu0 %v4744_v25  ;;  %v4755_v25 = vld [vmem:[#allocation9 + $0x180] sm:$0xff]  }
 0x246   : > { %4382 = vmatpush3.bf16.msra.mxu1 %v4743_v58 }
 0x247   : > { %4383 = vmatprep.subr.bf16.mxu1 %v4745_v62  ;;  %v4756_v62 = vld [vmem:[#allocation9 + $0x148] sm:$0xff]  }
 0x248   : > { %4356 = vmatpush3.bf16.msra.mxu0 %v4746_v39  ;;  %v4757_v39 = vld [vmem:[#allocation9 + $0x1c8] sm:$0xff]  }
 0x249   : > { %4357 = vmatprep.subr.bf16.mxu0 %v4748_v6 }
 0x24a   : > { %4384 = vmatpush3.bf16.msra.mxu1 %v4747_v23 }
 0x24b   : > { %4385 = vmatprep.subr.bf16.mxu1 %v4749_v48 }
 0x24c   : > { %4358 = vmatpush3.bf16.msra.mxu0 %v4750_v1 }
 0x24d   : > { %4399 = vmatprep.subr.bf16.mxu0 %v4752_v41 }
 0x24e   : > { %4386 = vmatpush3.bf16.msra.mxu1 %v4751_v22  ;;  %v4758_v22 = vld [vmem:[#allocation9 + $0x108] sm:$0xff]  }
 0x24f   : > { %4427 = vmatprep.subr.bf16.mxu1 %v4753_v2 }
 0x25f   : > { %v1556_v16 = vpop.f32.mrb[16].mxu0  ;;  %v1609_v4 = vpop.f32.mrb[16].mxu1 }
 0x260   : > { %v1557_v53 = vadd.f32 %v1556_v16, %v6006_v3  ;;  %v1558_v38 = vpop.f32.mrb[17].mxu0  ;;  %v1610_v10 = vadd.f32 %v1609_v4, %v6009_v8  ;;  %v1611_v19 = vpop.f32.mrb[17].mxu1 }
 0x261   : > { %v1559_v18 = vadd.f32 %v1558_v38, %v6012_v9  ;;  %v1560_v20 = vpop.f32.mrb[18].mxu0  ;;  %v1612_v28 = vadd.f32 %v1611_v19, %v6015_v14  ;;  %v1613_v34 = vpop.f32.mrb[18].mxu1 }
 0x262   : > { %vm1830_vm0 = vcmp.gt.f32.partialorder %v1557_v53, 0.0  ;;  %v1862_v27 = vmul.f32 0.2, %v1557_v53  ;;  %v1561_v29 = vadd.f32 %v1560_v20, %v6006_v3  ;;  %v1562_v35 = vpop.f32.mrb[19].mxu0  ;;  %vm1832_vm1 = vcmp.gt.f32.partialorder %v1610_v10, 0.0  ;;  %v1615_v42 = vpop.f32.mrb[19].mxu1 }
 0x263   : > { %v1864_v30 = vmul.f32 0.2, %v1610_v10  ;;  %vm1831_vm2 = vcmp.gt.f32.partialorder %v1559_v18, 0.0  ;;  %v1863_v36 = vmul.f32 0.2, %v1559_v18  ;;  %v1614_v45 = vadd.f32 %v1613_v34, %v6009_v8 }
 0x264   : > { %v1894_v37 = vsel %vm1830_vm0, %v1557_v53, %v1862_v27  ;;  %vm1838_vm3 = vcmp.gt.f32.partialorder %v1561_v29, 0.0  ;;  %v1865_v43 = vmul.f32 0.2, %v1612_v28  ;;  %v1870_v44 = vmul.f32 0.2, %v1561_v29  ;;  %v4759_v53 = vld [vmem:[#allocation9 + $0x188] sm:$0xff]  }
 0x265   : > { %v1563_v60 = vadd.f32 %v1562_v35, %v6012_v9  ;;  %v1896_v50 = vsel %vm1832_vm1, %v1610_v10, %v1864_v30  ;;  %vm1833_vm4 = vcmp.gt.f32.partialorder %v1612_v28, 0.0  ;;  %v1616_v51 = vadd.f32 %v1615_v42, %v6015_v14  ;;  %v4760_v10 = vld [vmem:[#allocation9 + $0x150] sm:$0xff]  }
 0x266   : > { %v1895_v52 = vsel %vm1831_vm2, %v1559_v18, %v1863_v36  ;;  %v1902_v55 = vsel %vm1838_vm3, %v1561_v29, %v1870_v44  ;;  %vm1840_vm5 = vcmp.gt.f32.partialorder %v1614_v45, 0.0  ;;  %v1872_v61 = vmul.f32 0.2, %v1614_v45  ;;  %v4761_v18 = vld [vmem:[#allocation9 + $0x1d0] sm:$0xff]  }
 0x267   : > { %vm1839_vm6 = vcmp.gt.f32.partialorder %v1563_v60, 0.0  ;;  %v1566_v63 = vpop.f32.mrb[20].mxu0  ;;  %v2657_v0 = vpack.c.bf16 %v1902_v55, %v1894_v37  ;;  %v1871_v7 = vmul.f32 0.2, %v1563_v60  ;;  %vm1841_vm7 = vcmp.gt.f32.partialorder %v1616_v51, 0.0  ;;  %v1619_v54 = vpop.f32.mrb[20].mxu1 }
 0x268   : > { %v1873_v11 = vmul.f32 0.2, %v1616_v51  ;;  %v1568_v12 = vpop.f32.mrb[21].mxu0  ;;  %v1904_v13 = vsel %vm1840_vm5, %v1614_v45, %v1872_v61  ;;  %v1897_v24 = vsel %vm1833_vm4, %v1612_v28, %v1865_v43  ;;  %v1567_v47 = vadd.f32 %v1566_v63, %v6006_v3  ;;  %v1621_v15 = vpop.f32.mrb[21].mxu1  ;;  %v4762_v37 = vld [vmem:[#allocation9 + $0x110] sm:$0xff]   ;;  %v4766_v55 = vld [vmem:[#allocation9 + $0x118] sm:$0xff]  }
 0x269   : > { %v1569_v31 = vadd.f32 %v1568_v12, %v6012_v9  ;;  %v1570_v49 = vpop.f32.mrb[22].mxu0  ;;  %v2659_v40 = vpack.c.bf16 %v1904_v13, %v1896_v50  ;;  %v1903_v46 = vsel %vm1839_vm6, %v1563_v60, %v1871_v7  ;;  %v1623_v23 = vpop.f32.mrb[22].mxu1  ;;  %v1620_v1 = vadd.f32 %v1619_v54, %v6009_v8  ;;  %v4763_v42 = vld [vmem:[#allocation9 + $0x190] sm:$0xff]   ;;  %v4764_v60 = vld [vmem:[#allocation9 + $0x158] sm:$0xff]   ;;  %v4768_v63 = vld [vmem:[#allocation9 + $0x160] sm:$0xff]  }
 0x26a   : > { %v1905_v59 = vsel %vm1841_vm7, %v1616_v51, %v1873_v11  ;;  %v1571_v33 = vadd.f32 %v1570_v49, %v6006_v3  ;;  %v1572_v32 = vpop.f32.mrb[23].mxu0  ;;  %v2658_v56 = vpack.c.bf16 %v1903_v46, %v1895_v52  ;;  %vm1846_vm8 = vcmp.gt.f32.partialorder %v1567_v47, 0.0  ;;  %v1625_v2 = vpop.f32.mrb[23].mxu1  ;;  %v4765_v50 = vld [vmem:[#allocation9 + $0x1d8] sm:$0xff]   ;;  %v4770_v7 = vld [vmem:[#allocation9 + $0x120] sm:$0xff]   ;;  %v4772_v12 = vld [vmem:[#allocation9 + $0x168] sm:$0xff]  }
 0x26b   : > { %v2660_v58 = vpack.c.bf16 %v1905_v59, %v1897_v24  ;;  %v1878_v6 = vmul.f32 0.2, %v1567_v47  ;;  %vm1847_vm9 = vcmp.gt.f32.partialorder %v1569_v31, 0.0  ;;  %v1879_v48 = vmul.f32 0.2, %v1569_v31  ;;  %v4767_v61 = vld [vmem:[#allocation9 + $0x198] sm:$0xff]  }
 0x26c   : > { %3224 = vmatprep.mubr.bf16.mxu0 %v2658_v56  ;;  %vm1854_vm10 = vcmp.gt.f32.partialorder %v1571_v33, 0.0  ;;  %v1573_v3 = vadd.f32 %v1572_v32, %v6012_v9  ;;  %v1622_v41 = vadd.f32 %v1621_v15, %v6015_v14  ;;  %v1886_v16 = vmul.f32 0.2, %v1571_v33  ;;  %v4771_v11 = vld [vmem:[#allocation9 + $0x1a0] sm:$0xff]   ;;  %v4773_v13 = vld [vmem:[#allocation9 + $0x1e8] sm:$0xff]   ;;  %v4777_v49 = vld [vmem:[#allocation9 + $0x1f0] sm:$0xff]  }
 0x26d   : > { %3273 = vmatprep.mubr.bf16.mxu1 %v2660_v58  ;;  %3225 = vmatmul.mubr.bf16.vlgmr.msra.gmra.mrb[48].mxu0 %v2657_v0  ;;  %v1624_v4 = vadd.f32 %v1623_v23, %v6009_v8  ;;  %v1626_v38 = vadd.f32 %v1625_v2, %v6015_v14  ;;  %v1911_v19 = vsel %vm1847_vm9, %v1569_v31, %v1879_v48  ;;  %vm1848_vm11 = vcmp.gt.f32.partialorder %v1620_v1, 0.0  ;;  %v4769_v0 = vld [vmem:[#allocation9 + $0x1e0] sm:$0xff]   ;;  %v4774_v24 = vld [vmem:[#allocation9 + $0x128] sm:$0xff]   ;;  %v4776_v31 = vld [vmem:[#allocation9 + $0x170] sm:$0xff]  }
 0x26e   : > { %3274 = vmatmul.mubr.bf16.vlgmr.msra.gmra.mrb[48].mxu1 %v2659_v40  ;;  %4400 = vmatpush3.bf16.msra.mxu0 %v4754_v57  ;;  %v1880_v20 = vmul.f32 0.2, %v1620_v1  ;;  %vm1855_vm12 = vcmp.gt.f32.partialorder %v1573_v3, 0.0  ;;  %v1887_v9 = vmul.f32 0.2, %v1573_v3  ;;  %vm1849_vm13 = vcmp.gt.f32.partialorder %v1622_v41, 0.0 }
 0x26f   : > { %4428 = vmatpush3.bf16.msra.mxu1 %v4755_v25  ;;  %4401 = vmatprep.subr.bf16.mxu0 %v4756_v62  ;;  %v1881_v27 = vmul.f32 0.2, %v1622_v41  ;;  %vm1856_vm14 = vcmp.gt.f32.partialorder %v1624_v4, 0.0  ;;  %v1888_v28 = vmul.f32 0.2, %v1624_v4  ;;  %vm1857_vm15 = vcmp.gt.f32.partialorder %v1626_v38, 0.0 }
 0x270   : > { %4429 = vmatprep.subr.bf16.mxu1 %v4757_v39  ;;  %v1889_v8 = vmul.f32 0.2, %v1626_v38  ;;  %v1919_v29 = vsel %vm1855_vm12, %v1573_v3, %v1887_v9  ;;  %v1910_v14 = vsel %vm1846_vm8, %v1567_v47, %v1878_v6  ;;  %v1918_v35 = vsel %vm1854_vm10, %v1571_v33, %v1886_v16  ;;  %v4775_v47 = vld [vmem:[#allocation9 + $0x1a8] sm:$0xff]   ;;  %v4778_v54 = vld [vmem:[#allocation9 + $0x130] sm:$0xff]   ;;  %v4780_v46 = vld [vmem:[#allocation9 + $0x178] sm:$0xff]  }
 0x271   : > { %v2666_v34 = vpack.c.bf16 %v1919_v29, %v1911_v19  ;;  %v1913_v30 = vsel %vm1849_vm13, %v1622_v41, %v1881_v27  ;;  %v1912_v36 = vsel %vm1848_vm11, %v1620_v1, %v1880_v20  ;;  %v2665_v43 = vpack.c.bf16 %v1918_v35, %v1910_v14  ;;  %v4779_v40 = vld [vmem:[#allocation9 + $0x1b0] sm:$0xff]   ;;  %v4781_v59 = vld [vmem:[#allocation9 + $0x1f8] sm:$0xff]  }
 0x272   : > { %4402 = vmatpush3.bf16.msra.mxu0 %v4758_v22  ;;  %v1921_v44 = vsel %vm1857_vm15, %v1626_v38, %v1889_v8  ;;  %v1920_v45 = vsel %vm1856_vm14, %v1624_v4, %v1888_v28  ;;  %v4782_v57 = vld [vmem:[#allocation9 + $0x138] sm:$0xff]  }
 0x273   : > { %4430 = vmatpush3.bf16.msra.mxu1 %v4759_v53  ;;  %4403 = vmatprep.subr.bf16.mxu0 %v4760_v10  ;;  %v2668_v51 = vpack.c.bf16 %v1921_v44, %v1913_v30  ;;  %v2667_v52 = vpack.c.bf16 %v1920_v45, %v1912_v36  ;;  %v4783_v33 = vld [vmem:[#allocation9 + $0x1b8] sm:$0xff]  }
 0x274   : > { %4431 = vmatprep.subr.bf16.mxu1 %v4761_v18  ;;  %3232 = vmatprep.mubr.bf16.mxu0 %v2666_v34 }
 0x275   : > { %3233 = vmatmul.mubr.bf16.gmra.mrb[52].mxu0 %v2665_v43  ;;  %3281 = vmatprep.mubr.bf16.mxu1 %v2668_v51 }
 0x276   : > { %4404 = vmatpush3.bf16.msra.mxu0 %v4762_v37  ;;  %3282 = vmatmul.mubr.bf16.gmra.mrb[52].mxu1 %v2667_v52 }
 0x277   : > { %4432 = vmatpush3.bf16.msra.mxu1 %v4763_v42  ;;  %4405 = vmatprep.subr.bf16.mxu0 %v4764_v60 }
 0x278   : > { %4433 = vmatprep.subr.bf16.mxu1 %v4765_v50 }
 0x27a   : > { %4406 = vmatpush3.bf16.msra.mxu0 %v4766_v55 }
 0x27b   : > { %4434 = vmatpush3.bf16.msra.mxu1 %v4767_v61  ;;  %4407 = vmatprep.subr.bf16.mxu0 %v4768_v63 }
 0x27c   : > { %4435 = vmatprep.subr.bf16.mxu1 %v4769_v0 }
 0x27e   : > { %4408 = vmatpush3.bf16.msra.mxu0 %v4770_v7 }
 0x27f   : > { %4436 = vmatpush3.bf16.msra.mxu1 %v4771_v11  ;;  %4409 = vmatprep.subr.bf16.mxu0 %v4772_v12 }
 0x280   : > { %4437 = vmatprep.subr.bf16.mxu1 %v4773_v13 }
 0x282   : > { %4410 = vmatpush3.bf16.msra.mxu0 %v4774_v24 }
 0x283   : > { %4438 = vmatpush3.bf16.msra.mxu1 %v4775_v47  ;;  %4411 = vmatprep.subr.bf16.mxu0 %v4776_v31 }
 0x284   : > { %4439 = vmatprep.subr.bf16.mxu1 %v4777_v49 }
 0x286   : > { %4412 = vmatpush3.bf16.msra.mxu0 %v4778_v54 }
 0x287   : > { %4440 = vmatpush3.bf16.msra.mxu1 %v4779_v40  ;;  %4413 = vmatprep.subr.bf16.mxu0 %v4780_v46 }
 0x288   : > { %4441 = vmatprep.subr.bf16.mxu1 %v4781_v59 }
 0x28a   : > { %4414 = vmatpush3.bf16.msra.mxu0 %v4782_v57 }
 0x28b   : > { %4442 = vmatpush3.bf16.msra.mxu1 %v4783_v33 }
 0x29f   : > { %v1662_v32 = vpop.f32.mrb[24].mxu0  ;;  %v1715_v56 = vpop.f32.mrb[24].mxu1 }
 0x2a0   : > { %v1663_v15 = vadd.f32 %v1662_v32, %v6050_v5  ;;  %v1664_v58 = vpop.f32.mrb[25].mxu0  ;;  %v1716_v25 = vadd.f32 %v1715_v56, %v6053_v17  ;;  %v1717_v39 = vpop.f32.mrb[25].mxu1 }
 0x2a1   : > { %v1665_v62 = vadd.f32 %v1664_v58, %v6056_v21  ;;  %v1666_v23 = vpop.f32.mrb[26].mxu0  ;;  %v1718_v48 = vadd.f32 %v1717_v39, %v6059_v26  ;;  %v1719_v22 = vpop.f32.mrb[26].mxu1 }
 0x2a2   : > { %vm1834_vm0 = vcmp.gt.f32.partialorder %v1663_v15, 0.0  ;;  %v1866_v6 = vmul.f32 0.2, %v1663_v15  ;;  %v1667_v1 = vadd.f32 %v1666_v23, %v6050_v5  ;;  %v1668_v3 = vpop.f32.mrb[27].mxu0  ;;  %vm1836_vm1 = vcmp.gt.f32.partialorder %v1716_v25, 0.0  ;;  %v1721_v53 = vpop.f32.mrb[27].mxu1 }
 0x2a3   : > { %v1868_v41 = vmul.f32 0.2, %v1716_v25  ;;  %vm1835_vm2 = vcmp.gt.f32.partialorder %v1665_v62, 0.0  ;;  %v1867_v2 = vmul.f32 0.2, %v1665_v62  ;;  %vm1837_vm4 = vcmp.gt.f32.partialorder %v1718_v48, 0.0 }
 0x2a4   : > { %v1869_v16 = vmul.f32 0.2, %v1718_v48  ;;  %vm1842_vm3 = vcmp.gt.f32.partialorder %v1667_v1, 0.0  ;;  %v1874_v4 = vmul.f32 0.2, %v1667_v1  ;;  %v1720_v38 = vadd.f32 %v1719_v22, %v6053_v17 }
 0x2a5   : > { %v1669_v10 = vadd.f32 %v1668_v3, %v6056_v21  ;;  %v1898_v18 = vsel %vm1834_vm0, %v1663_v15, %v1866_v6  ;;  %v1900_v19 = vsel %vm1836_vm1, %v1716_v25, %v1868_v41  ;;  %v1722_v20 = vadd.f32 %v1721_v53, %v6059_v26 }
 0x2a6   : > { %v1899_v9 = vsel %vm1835_vm2, %v1665_v62, %v1867_v2  ;;  %v1906_v27 = vsel %vm1842_vm3, %v1667_v1, %v1874_v4  ;;  %vm1844_vm5 = vcmp.gt.f32.partialorder %v1720_v38, 0.0  ;;  %v1876_v28 = vmul.f32 0.2, %v1720_v38  ;;  %v4057_v1 = vld [vmem:[%s6262_s5] ss:$0 sm:$0xff] }
 0x2a7   : > { %vm1843_vm6 = vcmp.gt.f32.partialorder %v1669_v10, 0.0  ;;  %v1672_v8 = vpop.f32.mrb[28].mxu0  ;;  %v2661_v29 = vpack.c.bf16 %v1906_v27, %v1898_v18  ;;  %v1875_v14 = vmul.f32 0.2, %v1669_v10  ;;  %vm1845_vm7 = vcmp.gt.f32.partialorder %v1722_v20, 0.0  ;;  %v1725_v34 = vpop.f32.mrb[28].mxu1 }
 0x2a8   : > { %v1901_v35 = vsel %vm1837_vm4, %v1718_v48, %v1869_v16  ;;  %v1908_v30 = vsel %vm1844_vm5, %v1720_v38, %v1876_v28  ;;  %v1877_v36 = vmul.f32 0.2, %v1722_v20  ;;  %v1673_v37 = vadd.f32 %v1672_v8, %v6050_v5  ;;  %v1674_v43 = vpop.f32.mrb[29].mxu0  ;;  %v1727_v44 = vpop.f32.mrb[29].mxu1 }
 0x2a9   : > { %v1726_v42 = vadd.f32 %v1725_v34, %v6053_v17  ;;  %v2663_v45 = vpack.c.bf16 %v1908_v30, %v1900_v19  ;;  %v1675_v60 = vadd.f32 %v1674_v43, %v6056_v21  ;;  %v1728_v50 = vadd.f32 %v1727_v44, %v6059_v26  ;;  %v1676_v51 = vpop.f32.mrb[30].mxu0  ;;  %v1729_v52 = vpop.f32.mrb[30].mxu1 }
 0x2aa   : > { %v1907_v55 = vsel %vm1843_vm6, %v1669_v10, %v1875_v14  ;;  %vm1850_vm8 = vcmp.gt.f32.partialorder %v1673_v37, 0.0  ;;  %v1882_v61 = vmul.f32 0.2, %v1673_v37  ;;  %v1677_v11 = vadd.f32 %v1676_v51, %v6050_v5  ;;  %v1678_v13 = vpop.f32.mrb[31].mxu0  ;;  %v1731_v24 = vpop.f32.mrb[31].mxu1 }
 0x2ab   : > { %vm1852_vm9 = vcmp.gt.f32.partialorder %v1726_v42, 0.0  ;;  %v1884_v63 = vmul.f32 0.2, %v1726_v42  ;;  %vm1851_vm10 = vcmp.gt.f32.partialorder %v1675_v60, 0.0  ;;  %v1883_v0 = vmul.f32 0.2, %v1675_v60 }
 0x2ac   : > { %vm1853_vm11 = vcmp.gt.f32.partialorder %v1728_v50, 0.0  ;;  %v1885_v7 = vmul.f32 0.2, %v1728_v50  ;;  %v1730_v12 = vadd.f32 %v1729_v52, %v6053_v17  ;;  %v2662_v47 = vpack.c.bf16 %v1907_v55, %v1899_v9 }
 0x2ad   : > { %v1909_v31 = vsel %vm1845_vm7, %v1722_v20, %v1877_v36  ;;  %v1679_v49 = vadd.f32 %v1678_v13, %v6056_v21  ;;  %v1732_v54 = vadd.f32 %v1731_v24, %v6059_v26  ;;  %v1915_v46 = vsel %vm1851_vm10, %v1675_v60, %v1883_v0 }
 0x2ae   : > { %v2664_v40 = vpack.c.bf16 %v1909_v31, %v1901_v35  ;;  %vm1858_vm12 = vcmp.gt.f32.partialorder %v1677_v11, 0.0  ;;  %v1890_v59 = vmul.f32 0.2, %v1677_v11  ;;  %vm1860_vm13 = vcmp.gt.f32.partialorder %v1730_v12, 0.0  ;;  %3322 = vmatprep.mubr.bf16.mxu0 %v2662_v47 }
 0x2af   : > { %v1892_v57 = vmul.f32 0.2, %v1730_v12  ;;  %vm1859_vm14 = vcmp.gt.f32.partialorder %v1679_v49, 0.0  ;;  %v1891_v5 = vmul.f32 0.2, %v1679_v49  ;;  %vm1861_vm15 = vcmp.gt.f32.partialorder %v1732_v54, 0.0  ;;  %3323 = vmatmul.mubr.bf16.vlgmr.msra.gmra.mrb[56].mxu0 %v2661_v29 }
 0x2b0   : > { %v1893_v17 = vmul.f32 0.2, %v1732_v54  ;;  %3371 = vmatprep.mubr.bf16.mxu1 %v2664_v40  ;;  %v1917_v33 = vsel %vm1853_vm11, %v1728_v50, %v1885_v7  ;;  %v1914_v21 = vsel %vm1850_vm8, %v1673_v37, %v1882_v61  ;;  %v1922_v32 = vsel %vm1858_vm12, %v1677_v11, %v1890_v59 }
 0x2b1   : > { %3372 = vmatmul.mubr.bf16.vlgmr.msra.gmra.mrb[56].mxu1 %v2663_v45  ;;  %v1916_v26 = vsel %vm1852_vm9, %v1726_v42, %v1884_v63  ;;  %v1923_v15 = vsel %vm1859_vm14, %v1679_v49, %v1891_v5  ;;  %v2669_v58 = vpack.c.bf16 %v1922_v32, %v1914_v21  ;;  %v1924_v25 = vsel %vm1860_vm13, %v1730_v12, %v1892_v57 }
 0x2b2   : > { %v1925_v56 = vsel %vm1861_vm15, %v1732_v54, %v1893_v17  ;;  %v2670_v62 = vpack.c.bf16 %v1923_v15, %v1915_v46  ;;  %v2671_v23 = vpack.c.bf16 %v1924_v25, %v1916_v26 }
 0x2b3   : > { %v2672_v39 = vpack.c.bf16 %v1925_v56, %v1917_v33 }
 0x2b4   : > { %3330 = vmatprep.mubr.bf16.mxu0 %v2670_v62 }
 0x2b5   : > { %3379 = vmatprep.mubr.bf16.mxu1 %v2672_v39 }
 0x2b7   : > { %3331 = vmatmul.mubr.bf16.gmra.mrb[60].mxu0 %v2669_v58 }
 0x2b9   : > { %3380 = vmatmul.mubr.bf16.gmra.mrb[60].mxu1 %v2671_v23 }
 0x2c0   : > { %v4247_v6 = vpop.f32.mrb[32].mxu0 }
 0x2c1   : > { %v4275_v48 = vpop.f32.mrb[32].mxu1  ;;  %v4248_v22 = vpop.f32.mrb[33].mxu0 }
 0x2c2   : > { %v4276_v3 = vpop.f32.mrb[33].mxu1  ;;  %v4249_v41 = vadd.f32 %v4248_v22, %v4247_v6  ;;  %v4250_v16 = vpop.f32.mrb[34].mxu0 }
 0x2c3   : > { %v4277_v2 = vadd.f32 %v4276_v3, %v4275_v48  ;;  %v4278_v53 = vpop.f32.mrb[34].mxu1  ;;  %v4251_v4 = vpop.f32.mrb[35].mxu0 }
 0x2c4   : > { %v4279_v38 = vpop.f32.mrb[35].mxu1  ;;  %v2496_v10 = vadd.f32 %v4249_v41, %v4057_v1  ;;  %v4252_v18 = vadd.f32 %v4251_v4, %v4250_v16  ;;  %v4122_v16 = vld [vmem:[%s6264_s7] ss:$0 sm:$0xff] }
 0x2c5   : > { %v4280_v19 = vadd.f32 %v4279_v38, %v4278_v53 }
 0x2c6   : > { %v2545_v20 = vadd.f32 %v4277_v2, %v2496_v10  ;;  %v2499_v9 = vadd.f32 %v4252_v18, %v4057_v1 }
 0x2c8   : > { %v2548_v27 = vadd.f32 %v4280_v19, %v2499_v9  ;;  %v4253_v28 = vpop.f32.mrb[36].mxu0 }
 0x2c9   : > { %v4254_v8 = vpop.f32.mrb[37].mxu0 }
 0x2ca   : > { %v4255_v29 = vadd.f32 %v4254_v8, %v4253_v28  ;;  %v4256_v14 = vpop.f32.mrb[38].mxu0 }
 0x2cb   : > { %v4257_v34 = vpop.f32.mrb[39].mxu0  ;;  %v4281_v30 = vpop.f32.mrb[36].mxu1 }
 0x2cc   : > { %v2504_v35 = vadd.f32 %v4255_v29, %v4057_v1  ;;  %v4258_v36 = vadd.f32 %v4257_v34, %v4256_v14  ;;  %v4282_v37 = vpop.f32.mrb[37].mxu1 }
 0x2cd   : > { %v4283_v43 = vadd.f32 %v4282_v37, %v4281_v30  ;;  %v4284_v44 = vpop.f32.mrb[38].mxu1 }
 0x2ce   : > { %v2507_v42 = vadd.f32 %v4258_v36, %v4057_v1  ;;  %v4285_v45 = vpop.f32.mrb[39].mxu1 }
 0x2cf   : > { %v2553_v60 = vadd.f32 %v4283_v43, %v2504_v35  ;;  %v4286_v50 = vadd.f32 %v4285_v45, %v4284_v44 }
 0x2d1   : > { %v2556_v51 = vadd.f32 %v4286_v50, %v2507_v42 }
 0x302   : > { %v4303_v52 = vpop.f32.mrb[40].mxu0 }
 0x303   : > { %v4304_v61 = vpop.f32.mrb[41].mxu0 }
 0x304   : > { %v4331_v55 = vpop.f32.mrb[40].mxu1  ;;  %v4305_v63 = vadd.f32 %v4304_v61, %v4303_v52  ;;  %v4306_v7 = vpop.f32.mrb[42].mxu0 }
 0x305   : > { %v4332_v0 = vpop.f32.mrb[41].mxu1  ;;  %v4307_v13 = vpop.f32.mrb[43].mxu0 }
 0x306   : > { %v4333_v11 = vadd.f32 %v4332_v0, %v4331_v55  ;;  %v4334_v12 = vpop.f32.mrb[42].mxu1  ;;  %v2594_v24 = vadd.f32 %v4305_v63, %v2545_v20  ;;  %v4308_v47 = vadd.f32 %v4307_v13, %v4306_v7 }
 0x307   : > { %v4335_v31 = vpop.f32.mrb[43].mxu1 }
 0x308   : > { %v4336_v49 = vadd.f32 %v4335_v31, %v4334_v12  ;;  %v2643_v54 = vadd.f32 %v4333_v11, %v2594_v24  ;;  %v2597_v40 = vadd.f32 %v4308_v47, %v2548_v27 }
 0x30a   : > { %v3388_v46 = vmax.f32 %v2643_v54, 0.0  ;;  %v2646_v59 = vadd.f32 %v4336_v49, %v2597_v40  ;;  %v4309_v57 = vpop.f32.mrb[44].mxu0 }
 0x30b   : > { %v4310_v5 = vpop.f32.mrb[45].mxu0 }
 0x30c   : > { %v4337_v17 = vpop.f32.mrb[44].mxu1  ;;  %3392 = vst [vmem:[%s6135_s14] sm:$0xff] %v3388_v46  ;;  %v3389_v33 = vmax.f32 %v2646_v59, 0.0  ;;  %v4311_v21 = vadd.f32 %v4310_v5, %v4309_v57  ;;  %v4312_v32 = vpop.f32.mrb[46].mxu0 }
 0x30d   : > { %v4338_v26 = vpop.f32.mrb[45].mxu1  ;;  %v4313_v15 = vpop.f32.mrb[47].mxu0 }
 0x30e   : > { %v4339_v56 = vadd.f32 %v4338_v26, %v4337_v17  ;;  %v4340_v58 = vpop.f32.mrb[46].mxu1  ;;  %3393 = vst [vmem:[%s6135_s14 + $0x8] sm:$0xff] %v3389_v33  ;;  %v2602_v25 = vadd.f32 %v4311_v21, %v2553_v60  ;;  %v4314_v62 = vadd.f32 %v4313_v15, %v4312_v32 }
 0x30f   : > { %v4341_v39 = vpop.f32.mrb[47].mxu1 }
 0x310   : > { %v4342_v23 = vadd.f32 %v4341_v39, %v4340_v58  ;;  %v2605_v6 = vadd.f32 %v4314_v62, %v2556_v51  ;;  %v2651_v48 = vadd.f32 %v4339_v56, %v2602_v25 }
 0x312   : > { %v3390_v1 = vmax.f32 %v2651_v48, 0.0  ;;  %v2654_v22 = vadd.f32 %v4342_v23, %v2605_v6 }
 0x314   : > { %3394 = vst [vmem:[%s6135_s14 + $0x10] sm:$0xff] %v3390_v1  ;;  %v3391_v3 = vmax.f32 %v2654_v22, 0.0 }
 0x316   : > { %3395 = vst [vmem:[%s6135_s14 + $0x18] sm:$0xff] %v3391_v3 }
 0x340   : > { %v4359_v41 = vpop.f32.mrb[48].mxu0 }
 0x341   : > { %v4387_v2 = vpop.f32.mrb[48].mxu1  ;;  %v4360_v53 = vpop.f32.mrb[49].mxu0 }
 0x342   : > { %v4388_v4 = vpop.f32.mrb[49].mxu1  ;;  %v4361_v38 = vadd.f32 %v4360_v53, %v4359_v41  ;;  %v4362_v18 = vpop.f32.mrb[50].mxu0 }
 0x343   : > { %v4389_v10 = vadd.f32 %v4388_v4, %v4387_v2  ;;  %v4390_v19 = vpop.f32.mrb[50].mxu1  ;;  %v4363_v20 = vpop.f32.mrb[51].mxu0 }
 0x344   : > { %v4391_v9 = vpop.f32.mrb[51].mxu1  ;;  %v3227_v27 = vadd.f32 %v4361_v38, %v4122_v16  ;;  %v4364_v28 = vadd.f32 %v4363_v20, %v4362_v18 }
 0x345   : > { %v4392_v8 = vadd.f32 %v4391_v9, %v4390_v19 }
 0x346   : > { %v3276_v29 = vadd.f32 %v4389_v10, %v3227_v27  ;;  %v3230_v14 = vadd.f32 %v4364_v28, %v4122_v16 }
 0x348   : > { %v3279_v34 = vadd.f32 %v4392_v8, %v3230_v14  ;;  %v4365_v35 = vpop.f32.mrb[52].mxu0 }
 0x349   : > { %v4366_v30 = vpop.f32.mrb[53].mxu0  ;;  %v4393_v42 = vpop.f32.mrb[52].mxu1 }
 0x34a   : > { %v4367_v36 = vadd.f32 %v4366_v30, %v4365_v35  ;;  %v4368_v37 = vpop.f32.mrb[54].mxu0  ;;  %v4394_v60 = vpop.f32.mrb[53].mxu1 }
 0x34b   : > { %v4369_v43 = vpop.f32.mrb[55].mxu0  ;;  %v4395_v50 = vadd.f32 %v4394_v60, %v4393_v42  ;;  %v4396_v51 = vpop.f32.mrb[54].mxu1 }
 0x34c   : > { %v3235_v44 = vadd.f32 %v4367_v36, %v4122_v16  ;;  %v4370_v45 = vadd.f32 %v4369_v43, %v4368_v37  ;;  %v4397_v55 = vpop.f32.mrb[55].mxu1 }
 0x34d   : > { %v4398_v63 = vadd.f32 %v4397_v55, %v4396_v51 }
 0x34e   : > { %v3238_v52 = vadd.f32 %v4370_v45, %v4122_v16  ;;  %v3284_v61 = vadd.f32 %v4395_v50, %v3235_v44 }
 0x350   : > { %v3287_v0 = vadd.f32 %v4398_v63, %v3238_v52 }
 0x382   : > { %v4415_v7 = vpop.f32.mrb[56].mxu0 }
 0x383   : > { %v4416_v12 = vpop.f32.mrb[57].mxu0 }
 0x384   : > { %v4443_v11 = vpop.f32.mrb[56].mxu1  ;;  %v4417_v13 = vadd.f32 %v4416_v12, %v4415_v7  ;;  %v4418_v47 = vpop.f32.mrb[58].mxu0 }
 0x385   : > { %v4444_v24 = vpop.f32.mrb[57].mxu1  ;;  %v4419_v54 = vpop.f32.mrb[59].mxu0 }
 0x386   : > { %v4445_v31 = vadd.f32 %v4444_v24, %v4443_v11  ;;  %v4446_v49 = vpop.f32.mrb[58].mxu1  ;;  %v3325_v40 = vadd.f32 %v4417_v13, %v3276_v29  ;;  %v4420_v46 = vadd.f32 %v4419_v54, %v4418_v47 }
 0x387   : > { %v4447_v59 = vpop.f32.mrb[59].mxu1 }
 0x388   : > { %v4448_v57 = vadd.f32 %v4447_v59, %v4446_v49  ;;  %v3374_v5 = vadd.f32 %v4445_v31, %v3325_v40  ;;  %v3328_v17 = vadd.f32 %v4420_v46, %v3279_v34 }
 0x38a   : > { %v3396_v33 = vmax.f32 %v3374_v5, 0.0  ;;  %v3377_v21 = vadd.f32 %v4448_v57, %v3328_v17  ;;  %v4421_v32 = vpop.f32.mrb[60].mxu0 }
 0x38b   : > { %v4422_v15 = vpop.f32.mrb[61].mxu0 }
 0x38c   : > { %v4449_v26 = vpop.f32.mrb[60].mxu1  ;;  %3400 = vst [vmem:[%s6146_s16] sm:$0xff] %v3396_v33  ;;  %v3397_v56 = vmax.f32 %v3377_v21, 0.0  ;;  %v4423_v58 = vadd.f32 %v4422_v15, %v4421_v32  ;;  %v4424_v62 = vpop.f32.mrb[62].mxu0 }
 0x38d   : > { %v4450_v25 = vpop.f32.mrb[61].mxu1  ;;  %v4425_v6 = vpop.f32.mrb[63].mxu0 }
 0x38e   : > { %v4451_v39 = vadd.f32 %v4450_v25, %v4449_v26  ;;  %v4452_v23 = vpop.f32.mrb[62].mxu1  ;;  %3401 = vst [vmem:[%s6146_s16 + $0x8] sm:$0xff] %v3397_v56  ;;  %v3333_v48 = vadd.f32 %v4423_v58, %v3284_v61  ;;  %v4426_v1 = vadd.f32 %v4425_v6, %v4424_v62 }
 0x38f   : > { %v4453_v22 = vpop.f32.mrb[63].mxu1 }
 0x390   : > { %v4454_v3 = vadd.f32 %v4453_v22, %v4452_v23  ;;  %v3382_v41 = vadd.f32 %v4451_v39, %v3333_v48  ;;  %v3336_v2 = vadd.f32 %v4426_v1, %v3287_v0  ;;  %3414 = sbr.rel (!%p6518_p8) target bundleno = 968 (0x3c8), region = 76 }
 0x392   : > { %v3398_v16 = vmax.f32 %v3382_v41, 0.0  ;;  %v3385_v53 = vadd.f32 %v4454_v3, %v3336_v2 }
 0x394   : > { %3402 = vst [vmem:[%s6146_s16 + $0x10] sm:$0xff] %v3398_v16  ;;  %v3399_v4 = vmax.f32 %v3385_v53, 0.0 }
 0x396   : > { %3403 = vst [vmem:[%s6146_s16 + $0x18] sm:$0xff] %v3399_v4 }
 0x397   : > { %s6538_s24 = smov (!%p3417_p10, %s3416_s24), 4 }
 0x398   : > { %s4190_s27 = sshll.u32 %s6538_s24, 7 }
 0x399   : > { %p4193_p0 = scmp.eq.s32.totalorder %s4190_s27, 0 }
 0x39a   : > { %s6165_s9 = sshrl.u32 (!%p4193_p0), %s6538_s24, 2 }
 0x39b   : > { %3425 = sbr.rel (%p4193_p0) target bundleno = 968 (0x3c8), region = 80  ;;  %p4194_p11 = scmp.le.s32.totalorder (!%p4193_p0), %s6165_s9, 0 }
 0x3a2   : > { %3777 = sbr.rel (%p4194_p11) target bundleno = 947 (0x3b3), region = 243  ;;  %s6520_s21 = smov (!%p4194_p11), %s6159_s25 }
 0x3a3   : > { %s6521_s29 = smov (!%p4194_p11), %s6135_s14  ;;  %s6174_s19 = smov (!%p4194_p11), 0  }
 0x3a4   : > { %s5048_s28 = smov (!%p4194_p11), 0  }
 0x3a9 LB: >> { %v3493_v38 = vld [vmem:[%s5042_s29] sm:$0xff]  ;;  %v3495_v10 = vld [vmem:[%s5042_s29 + $0x8] sm:$0xff]  ;;  %v3497_v18 = vld [vmem:[%s5042_s29 + $0x10] sm:$0xff]  ;;  %s3501_s15 = sadd.s32 1, %s5046_s19  ;;  %s3487_s28 = sadd.s32 1, %s5050_s28   ;;  %s5050_s28 = sphi %s5048_s28, %s3487_s28   ;;  %s5046_s19 = sphi %s6174_s19, %s6522_s19   ;;  %s5042_s29 = sphi %s6521_s29, %s3506_s29   ;;  %s5038_s21 = sphi %s6520_s21, %s3507_s21  }
 0x3aa   : >> { %3494 = vst [vmem:[%s5038_s21] sm:$0xff] %v3493_v38  ;;  %3496 = vst [vmem:[%s5038_s21 + $0x8] sm:$0xff] %v3495_v10  ;;  %v3499_v19 = vld [vmem:[%s5042_s29 + $0x18] sm:$0xff]  ;;  %p3502_p2 = scmp.ge.s32.totalorder %s3501_s15, %s6165_s9  ;;  %p3486_p3 = scmp.ge.s32.totalorder %s3487_s28, %s6165_s9 }
 0x3ab   : >> { %3498 = vst [vmem:[%s5038_s21 + $0x10] sm:$0xff] %v3497_v18  ;;  %3500 = vst [vmem:[%s5038_s21 + $0x18] sm:$0xff] %v3499_v19 }
 0x3ac   : >> { %s6540_s15 = smov (%p3502_p2, %s3501_s15), 0  ;;  %3489 = sbr.rel (!%p3486_p3) target bundleno = 937 (0x3a9), region = 249 }
 0x3ad   : >> { %s4195_s23 = sshll.u32 %s6540_s15, 5  ;;  %s6522_s19 = smov %s6540_s15 }
 0x3ae   : >> { %s3506_s29 = scalar_lea.vmem %s6135_s14, %s4195_s23 [#allocation10]   ;;  %s3507_s21 = scalar_lea.vmem %s6159_s25, %s4195_s23  }
 0x3b3 PF: > { %s6190_s12 = sand.u32 3, %s6538_s24   ;;  %s4226_s4 = sshll.u32 %s6165_s9, 5 }
 0x3b4   : > { %s3512_s30 = scalar_lea.vmem %s6135_s14, %s4226_s4 [#allocation10]   ;;  %s3514_s8 = scalar_lea.vmem %s6159_s25, %s4226_s4  }
 0x3b5   : > { %p4200_p6 = scmp.le.s32.totalorder %s6190_s12, 0 }
 0x3b6   : > { %s5052_s17 = smov (!%p4200_p6), %s3514_s8   ;;  %s5056_s18 = smov (!%p4200_p6), %s3512_s30  }
 0x3b7   : > { %3791 = sbr.rel (%p4200_p6) target bundleno = 968 (0x3c8), region = 254  ;;  %s5060_s22 = smov (!%p4200_p6), 0  }
 0x3b8   : > { %s5064_s26 = smov (!%p4200_p6), 0  }
 0x3be LB: >> { %v3524_v20 = vld [vmem:[%s5058_s18] sm:$0xff]  ;;  %s3526_s24 = sadd.s32 1, %s5062_s22  ;;  %s3518_s26 = sadd.s32 1, %s5066_s26   ;;  %s5066_s26 = sphi %s5064_s26, %s3518_s26   ;;  %s5062_s22 = sphi %s5060_s22, %s5061_s22   ;;  %s5058_s18 = sphi %s5056_s18, %s3531_s18   ;;  %s5054_s17 = sphi %s5052_s17, %s3532_s17  }
 0x3bf   : >> { %3525 = vst [vmem:[%s5054_s17] sm:$0xff] %v3524_v20  ;;  %p3527_p9 = scmp.ge.s32.totalorder %s3526_s24, %s6190_s12  ;;  %p3517_p7 = scmp.ge.s32.totalorder %s3518_s26, %s6190_s12 }
 0x3c1   : >> { %s6542_s24 = smov (%p3527_p9, %s3526_s24), 0  ;;  %3520 = sbr.rel (!%p3517_p7) target bundleno = 958 (0x3be), region = 260 }
 0x3c2   : >> { %s4201_s14 = sshll.u32 %s6542_s24, 3  ;;  %s5061_s22 = smov %s6542_s24  }
 0x3c3   : >> { %s3531_s18 = scalar_lea.vmem %s3512_s30, %s4201_s14 [#allocation10]   ;;  %s3532_s17 = scalar_lea.vmem %s3514_s8, %s4201_s14  }
 0x3c8 PF: > { %p6523_p12 = scmp.ne.s32.totalorder %s6355_s20, 0 }
 0x3c9   : > { %s4203_s25 = sshll.u32 (%p6523_p12), %s5182_s13, 2  ;;  %s4228_s27 = sshll.u32 (%p6523_p12), %s5182_s13, 5 }
 0x3ca   : > { %3538 = sbr.rel (!%p6523_p12) target bundleno = 1026 (0x402), region = 128  ;;  %s3540_s9 = ssub.s32 (%p6523_p12), 6, %s4203_s25 }
 0x3cb   : > { %s6524_s19 = sld [smem:[#allocation94_spill]] (%p6523_p12)  ;;  %p3541_p13 = scmp.lt.s32.totalorder (%p6523_p12), %s3540_s9, 4 }
 0x3d1   : > { %s6205_s28 = scalar_lea.vmem %s6524_s19, %s4228_s27   ;;  %s6544_s9 = smov (!%p3541_p13, %s3540_s9), 4 }
 0x3d2   : > { %s4204_s15 = sshll.u32 %s6544_s9, 7 }
 0x3d3   : > { %p4207_p4 = scmp.eq.s32.totalorder %s4204_s15, 0 }
 0x3d4   : > { %s6211_s20 = sshrl.u32 (!%p4207_p4), %s6544_s9, 2 }
 0x3d5   : > { %3549 = sbr.rel (%p4207_p4) target bundleno = 1026 (0x402), region = 132  ;;  %p4208_p1 = scmp.le.s32.totalorder (!%p4207_p4), %s6211_s20, 0 }
 0x3dc   : > { %3805 = sbr.rel (%p4208_p1) target bundleno = 1005 (0x3ed), region = 265  ;;  %s6525_s13 = smov (!%p4208_p1), %s6205_s28 }
 0x3dd   : > { %s6526_s23 = smov (!%p4208_p1), %s6146_s16  ;;  %s6220_s12 = smov (!%p4208_p1), 0  }
 0x3de   : > { %s5080_s4 = smov (!%p4208_p1), 0  }
 0x3e3 LB: >> { %v3617_v9 = vld [vmem:[%s5074_s23] sm:$0xff]  ;;  %v3619_v27 = vld [vmem:[%s5074_s23 + $0x8] sm:$0xff]  ;;  %v3621_v28 = vld [vmem:[%s5074_s23 + $0x10] sm:$0xff]  ;;  %s3625_s30 = sadd.s32 1, %s5078_s12  ;;  %s3611_s4 = sadd.s32 1, %s5082_s4   ;;  %s5082_s4 = sphi %s5080_s4, %s3611_s4   ;;  %s5078_s12 = sphi %s6220_s12, %s6527_s12   ;;  %s5074_s23 = sphi %s6526_s23, %s3630_s23   ;;  %s5070_s13 = sphi %s6525_s13, %s3631_s13  }
 0x3e4   : >> { %3618 = vst [vmem:[%s5070_s13] sm:$0xff] %v3617_v9  ;;  %3620 = vst [vmem:[%s5070_s13 + $0x8] sm:$0xff] %v3619_v27  ;;  %v3623_v8 = vld [vmem:[%s5074_s23 + $0x18] sm:$0xff]  ;;  %p3626_p5 = scmp.ge.s32.totalorder %s3625_s30, %s6211_s20  ;;  %p3610_p8 = scmp.ge.s32.totalorder %s3611_s4, %s6211_s20 }
 0x3e5   : >> { %3622 = vst [vmem:[%s5070_s13 + $0x10] sm:$0xff] %v3621_v28  ;;  %3624 = vst [vmem:[%s5070_s13 + $0x18] sm:$0xff] %v3623_v8 }
 0x3e6   : >> { %s6546_s30 = smov (%p3626_p5, %s3625_s30), 0  ;;  %3613 = sbr.rel (!%p3610_p8) target bundleno = 995 (0x3e3), region = 271 }
 0x3e7   : >> { %s4209_s8 = sshll.u32 %s6546_s30, 5  ;;  %s6527_s12 = smov %s6546_s30 }
 0x3e8   : >> { %s3630_s23 = scalar_lea.vmem %s6146_s16, %s4209_s8 [#allocation11]   ;;  %s3631_s13 = scalar_lea.vmem %s6205_s28, %s4209_s8  }
 0x3ed PF: > { %s6236_s17 = sand.u32 3, %s6544_s9   ;;  %s4229_s18 = sshll.u32 %s6211_s20, 5 }
 0x3ee   : > { %s3636_s22 = scalar_lea.vmem %s6146_s16, %s4229_s18 [#allocation11]   ;;  %s3638_s26 = scalar_lea.vmem %s6205_s28, %s4229_s18  }
 0x3ef   : > { %p4214_p10 = scmp.le.s32.totalorder %s6236_s17, 0 }
 0x3f0   : > { %s5084_s24 = smov (!%p4214_p10), %s3638_s26   ;;  %s5088_s14 = smov (!%p4214_p10), %s3636_s22  }
 0x3f1   : > { %3819 = sbr.rel (%p4214_p10) target bundleno = 1026 (0x402), region = 276  ;;  %s5092_s25 = smov (!%p4214_p10), 0  }
 0x3f2   : > { %s5096_s27 = smov (!%p4214_p10), 0  }
 0x3f8 LB: >> { %v3648_v29 = vld [vmem:[%s5090_s14] sm:$0xff]  ;;  %s3650_s9 = sadd.s32 1, %s5094_s25  ;;  %s3642_s27 = sadd.s32 1, %s5098_s27   ;;  %s5098_s27 = sphi %s5096_s27, %s3642_s27   ;;  %s5094_s25 = sphi %s5092_s25, %s5093_s25   ;;  %s5090_s14 = sphi %s5088_s14, %s3655_s14   ;;  %s5086_s24 = sphi %s5084_s24, %s3656_s24  }
 0x3f9   : >> { %3649 = vst [vmem:[%s5086_s24] sm:$0xff] %v3648_v29  ;;  %p3651_p0 = scmp.ge.s32.totalorder %s3650_s9, %s6236_s17  ;;  %p3641_p11 = scmp.ge.s32.totalorder %s3642_s27, %s6236_s17 }
 0x3fb   : >> { %s6548_s9 = smov (%p3651_p0, %s3650_s9), 0  ;;  %3644 = sbr.rel (!%p3641_p11) target bundleno = 1016 (0x3f8), region = 282 }
 0x3fc   : >> { %s4215_s16 = sshll.u32 %s6548_s9, 3  ;;  %s5093_s25 = smov %s6548_s9  }
 0x3fd   : >> { %s3655_s14 = scalar_lea.vmem %s3636_s22, %s4215_s16 [#allocation11]   ;;  %s3656_s24 = scalar_lea.vmem %s3638_s26, %s4215_s16  }
 0x402 PF: > { %s6528_s12 = sld [smem:[#allocation16_spill]]  ;;  %s6529_s21 = sld [smem:[#allocation17_spill]] }
 0x403   : > { %s6530_s30 = smov %s5026_s10  ;;  %s6531_s10 = smov %s5030_s11 }
 0x408   : > { %p24_p2 = scmp.ge.s32.totalorder %s6528_s12, 4   ;;  %s6532_s11 = smov %s6529_s21 }
 0x40a   :  { %26 = sbr.rel (!%p24_p2) target bundleno = 10 (0xa), region = 293 }
 0x411   :  { %3679 = vsyncpa [#allocation3], 1 }
 0x412   :  { %3681 = vsyncpa [#allocation3 + $0x1], 1 }
 0x413   :  { %3682 = vsyncpa [#allocation5], 1 }
 0x414   :  { %3684 = vsyncpa [#allocation5 + $0x1], 1 }
 0x415   :  { %3685 = vsyncpa [#allocation8], 1 }

// kernel: _forward_impl.1
= control target key start
LH: loop header
LB: loop body
LE: loop exit
PB: predicated region body
PF: predicated region fallthrough
CT: control target
= control target key end

     0   :  { %s6257_s0 = inlined_call_operand.hbm [shape: f32[48,256], index: 0, kind: input, shape index: {}]   ;;  %s6258_s1 = inlined_call_operand.hbm [shape: f32[48,256], index: 1, kind: input, shape index: {}]   ;;  %s6259_s2 = inlined_call_operand.hbm [shape: bf16[256,1024], index: 2, kind: input, shape index: {}]   ;;  %s6260_s3 = inlined_call_operand.vmem [shape: f32[1,1024], index: 3, kind: input, shape index: {}]   ;;  %s6261_s4 = inlined_call_operand.hbm [shape: bf16[1024,128], index: 4, kind: input, shape index: {}]   ;;  %s6262_s5 = inlined_call_operand.vmem [shape: f32[1,128], index: 5, kind: input, shape index: {}]   ;;  %s6263_s6 = inlined_call_operand.hbm [shape: bf16[1024,128], index: 6, kind: input, shape index: {}]   ;;  %s6264_s7 = inlined_call_operand.vmem [shape: f32[1,128], index: 7, kind: input, shape index: {}]   ;;  %s6265_s8 = inlined_call_operand.vmem [shape: f32[48,128], index: 8, kind: output, shape index: {0}]   ;;  %s6266_s9 = inlined_call_operand.vmem [shape: f32[48,128], index: 9, kind: output, shape index: {1}]  }
   0x1   :  { %6348 = sst [smem:[#allocation92_spill]] %s6261_s4 }
   0x2   :  { %6349 = sst [smem:[#allocation93_spill]] %s6265_s8 }
   0x3   :  { %6350 = sst [smem:[#allocation94_spill]] %s6266_s9 }
   0x4   :  { %15 = vsyncpa [#allocation3], 0 }
   0x5   :  { %17 = vsyncpa [#allocation3 + $0x1], 0 }
   0x6   :  { %18 = vsyncpa [#allocation5], 0 }
   0x7   :  { %20 = vsyncpa [#allocation5 + $0x1], 0 }
   0x8   :  { %21 = vsyncpa [#allocation8], 0  ;;  %s5163_s30 = smov 0   ;;  %s5165_s10 = smov 0  }
   0x9   :  { %s5167_s11 = smov 0   ;;  %s5169_s12 = smov 0  }
   0xa LB: > { %s5182_s13 = sadd.s32 4294967295, %s5034_s12   ;;  %s5185_s14 = sadd.s32 1, %s5034_s12   ;;  %s5034_s12 = sphi %s5169_s12, %s6528_s12   ;;  %s5030_s11 = sphi %s5167_s11, %s6532_s11   ;;  %s5026_s10 = sphi %s5165_s10, %s6531_s10   ;;  %s5022_s30 = sphi %s5163_s30, %s6530_s30  }
   0xb   : > { %6351 = sst [smem:[#allocation16_spill]] %s5185_s14  ;;  %s31_s15 = ssub.s32 %s5034_s12, %s5185_s14 }
   0xc   : > { %s34_s16 = sadd.s32 1, %s5030_s11  ;;  %p32_p0 = scmp.eq.s32.totalorder %s31_s15, 0 }
   0xd   : > { %p41_p1 = scmp.ne.s32.totalorder %s5030_s11, %s5026_s10  ;;  %p42_p2 = scmp.eq.s32.totalorder %s5034_s12, 0 }
   0xe   : > { %p47_p3 = scmp.ne.s32.totalorder %s5026_s10, %s5022_s30  ;;  %p6267_p5 = scmp.eq.s32.totalorder %s5182_s13, 0 }
   0xf   : > { %s5195_s17 = scalar_select %p32_p0, %s5030_s11, %s34_s16  }
  0x10   : > { %p5197_p4 = por %p42_p2, %p41_p1  ;;  %p223_p6 = scmp.eq.s32.totalorder %s5182_s13, 1 }
  0x11   : > { %6352 = sst [smem:[#allocation17_spill]] %s5195_s17  ;;  %p3898_p7 = scmp.ge.s32.totalorder %s5034_s12, 1 }
  0x12   : > { %s6353_s18 = scalar_select %p5197_p4, 1, 0 }
  0x13   : > { %p5206_p8 = por %p6267_p5, %p47_p3  ;;  %p262_p9 = scmp.lt.s32.totalorder %s5034_s12, 3 }
  0x14   : > { %p5211_p10 = por %p223_p6, %p41_p1  ;;  %s5100_s22 = smov [#allocation7]  }
  0x15   : > { %s6354_s19 = scalar_select %p5206_p8, 1, 0 }
  0x16   : > { %s6355_s20 = scalar_select %p5211_p10, 1, 0 }
  0x17   : > { %p5215_p11 = pnand %p3898_p7, %p262_p9  ;;  %s290_s23 = sshll.u32 %s5100_s22, 4  ;;  %s291_s23 = int_to_ptr.vmem [resolvable:$true] %s290_s23 }
  0x18   : > { %s5101_s25 = smov [#allocation6]   ;;  %s6358_s4 = sld [smem:[#allocation92_spill]] }
  0x19   : > { %s6356_s21 = scalar_select %p5215_p11, 1, 0 }
  0x1a   : > { %p4469_p12 = pneg %p5215_p11  ;;  %s274_s26 = sshll.u32 %s5101_s25, 4  ;;  %s5227_s26 = int_to_ptr.vmem [resolvable:$true] %s274_s26 }
  0x1c   : > { %p5223_p13 = pnand %p4469_p12, %p6267_p5 }
  0x1e   : > { %s4784_s29 = scalar_lea.hbm %s6358_s4, 8192  ;;  %p5237_p1 = pneg %p5223_p13 }
  0x1f   : > { %p4785_p0 = scmp.ne.s32.totalorder %s6358_s4, %s4784_s29  ;;  %p4791_p6 = scmp.lt.u32.totalorder %s4784_s29, %s6358_s4 }
  0x21   : > { %p4787_p2 = pnand %p5237_p1, %p4785_p0 }
  0x23   : > { %p4788_p3 = pneg %p4787_p2 }
  0x25   : > { %p4793_p7 = pnand %p4791_p6, %p4788_p3 }
  0x27   : > { %4796 = shalt.err (!%p4793_p7)
}
  0x28   : > { %s4797_s27 = scalar_lea.vmem %s291_s23, 8192  ;;  %p4805_p10 = scmp.lt.s32.totalorder %s291_s23, %s291_s23 }
  0x29   : > { %p4798_p9 = scmp.ne.s32.totalorder %s291_s23, %s4797_s27  ;;  %p4806_p8 = scmp.lt.s32.totalorder %s4797_s27, %s4797_s27 }
  0x2b   : > { %p4800_p12 = pnand %p4798_p9, %p5237_p1  ;;  %p4807_p11 = por %p4806_p8, %p4805_p10 }
  0x2d   : > { %p4801_p5 = pneg %p4800_p12 }
  0x2f   : > { %p4808_p4 = pnand %p4807_p11, %p4801_p5 }
  0x31   : > { %4811 = shalt.err (!%p4808_p4)
}
  0x32   : > { %s6272_s28 = smov 64   ;;  %s6273_s30 = smov 4  }
  0x33   : > { %4475 = dma.hbm_to_vmem [thread:$0]  (!%p5223_p13), %s6358_s4, 8192, %s291_s23, [#allocation8], %s6272_s28, %s6272_s28, %s6273_s30  }
  0x34   : > { %s4812_s17 = scalar_lea.hbm %s6259_s2, 16384 }
  0x35   : > { %p4813_p4 = scmp.ne.s32.totalorder %s6259_s2, %s4812_s17  ;;  %p4819_p10 = scmp.lt.u32.totalorder %s4812_s17, %s6259_s2 }
  0x37   : > { %p4815_p5 = pnand %p4813_p4, %p5237_p1 }
  0x39   : > { %p4816_p8 = pneg %p4815_p5 }
  0x3b   : > { %p4821_p11 = pnand %p4819_p10, %p4816_p8 }
  0x3d   : > { %4824 = shalt.err (!%p4821_p11)
}
  0x3e   : > { %s4825_s23 = scalar_lea.vmem %s5227_s26, 16384  ;;  %p4833_p6 = scmp.lt.s32.totalorder %s5227_s26, %s5227_s26 }
  0x3f   : > { %p4826_p0 = scmp.ne.s32.totalorder %s5227_s26, %s4825_s23  ;;  %p4834_p7 = scmp.lt.s32.totalorder %s4825_s23, %s4825_s23 }
  0x41   : > { %p4828_p2 = pnand %p4826_p0, %p5237_p1  ;;  %p4835_p9 = por %p4834_p7, %p4833_p6 }
  0x43   : > { %p4829_p3 = pneg %p4828_p2 }
  0x45   : > { %p4836_p12 = pnand %p4835_p9, %p4829_p3 }
  0x47   : > { %4839 = shalt.err (!%p4836_p12)
}
  0x48   : > { %s5104_s14 = smov 512   ;;  %s5105_s8 = smov 32  }
  0x49   : > { %4472 = dma.hbm_to_vmem [thread:$0]  (!%p5223_p13), %s6259_s2, 16384, %s5227_s26, [#allocation5], %s5104_s14, %s5104_s14, %s5105_s8  }
  0x4a   : > { %s5106_s29 = smov [#allocation9]   ;;  %s4840_s27 = scalar_lea.hbm %s6263_s6, 8192 }
  0x4b   : > { %s306_s15 = sshll.u32 %s5106_s29, 4  ;;  %p4841_p4 = scmp.ne.s32.totalorder %s6263_s6, %s4840_s27  ;;  %s307_s15 = int_to_ptr.vmem [resolvable:$true] %s306_s15 }
  0x4c   : > { %p4847_p10 = scmp.lt.u32.totalorder %s4840_s27, %s6263_s6 }
  0x4d   : > { %p4843_p5 = pnand %p4841_p4, %p5237_p1 }
  0x4f   : > { %p4844_p8 = pneg %p4843_p5 }
  0x51   : > { %p4849_p11 = pnand %p4847_p10, %p4844_p8 }
  0x53   : > { %4852 = shalt.err (!%p4849_p11)
}
  0x54   : > { %s4853_s26 = scalar_lea.vmem %s307_s15, 8192  ;;  %p4861_p6 = scmp.lt.s32.totalorder %s307_s15, %s307_s15 }
  0x55   : > { %p4854_p0 = scmp.ne.s32.totalorder %s307_s15, %s4853_s26  ;;  %p4862_p7 = scmp.lt.s32.totalorder %s4853_s26, %s4853_s26 }
  0x57   : > { %p4856_p2 = pnand %p4854_p0, %p5237_p1  ;;  %p4863_p9 = por %p4862_p7, %p4861_p6 }
  0x59   : > { %p4857_p3 = pneg %p4856_p2 }
  0x5b   : > { %p4864_p12 = pnand %p4863_p9, %p4857_p3 }
  0x5d   : > { %4867 = shalt.err (!%p4864_p12)
}
  0x5e   : > { %s6360_s28 = smov 4   ;;  %s6361_s14 = smov 64  }
  0x5f   : > { %4478 = dma.hbm_to_vmem [thread:$0]  (!%p5223_p13), %s6263_s6, 8192, %s307_s15, [#allocation8], %s6361_s14, %s6361_s14, %s6360_s28  }
  0x60   : > { %p3902_p4 = scmp.ge.s32.totalorder %s5034_s12, 2 }
  0x61   : > { %p6362_p1 = scmp.ne.s32.totalorder (!%p3902_p4), %s6353_s18, 0 }
  0x62   : > { %319 = sbr.rel (%p3902_p4) target bundleno = 177 (0xb1), region = 40 }
  0x69   : > { %322 = sbr.rel (!%p6362_p1) target bundleno = 140 (0x8c), region = 44  ;;  %s323_s16 = sand.u32 (%p6362_p1), 1, %s5030_s11  }
  0x6a   : > { %s3904_s8 = sshll.u32 (%p6362_p1), %s5034_s12, 2  ;;  %s3903_s9 = sshll.u32 (%p6362_p1), %s323_s16, 6 }
  0x6b   : > { %s329_s17 = ssub.s32 (%p6362_p1), 6, %s3904_s8  ;;  %s5308_s22 = scalar_lea.sflag (%p6362_p1), [#allocation3], %s323_s16 }
  0x6c   : > { %p330_p5 = scmp.lt.s32.totalorder (%p6362_p1), %s329_s17, 4  ;;  %s327_s15 = scalar_lea.vmem (%p6362_p1), [#allocation2], %s3903_s9 }
  0x70   : > { %s6534_s17 = smov (!%p330_p5, %s329_s17), 4 }
  0x71   : > { %s5305_s24 = sshll.u32 %s6534_s17, 8 }
  0x72   : > { %s335_s29 = ssub.s32 1024, %s5305_s24 }
  0x73   : > { %336 = vsyncadd %s5308_s22, %s335_s29  ;;  %p3907_p13 = scmp.ne.s32.totalorder %s5305_s24, 0  ;;  %s4221_s25 = sshll.u32 %s5034_s12, 10 }
  0x74   : > { %s5316_s26 = scalar_lea.hbm %s6257_s0, %s4221_s25  ;;  %s342_s28 = sshll.u32 %s327_s15, 4  ;;  %s5318_s28 = int_to_ptr.vmem [resolvable:$true] %s342_s28 }
  0x75   : > { %s4868_s14 = scalar_lea.hbm %s5316_s26, %s5305_s24  ;;  %s4872_s16 = scalar_lea.hbm %s6257_s0, 1536 }
  0x76   : > { %p4869_p8 = scmp.ne.s32.totalorder %s5316_s26, %s4868_s14  ;;  %p4873_p0 = scmp.lt.u32.totalorder %s5316_s26, %s6257_s0 }
  0x77   : > { %p4874_p2 = scmp.lt.u32.totalorder %s4872_s16, %s4868_s14  ;;  %p4876_p6 = scmp.lt.u32.totalorder %s4868_s14, %s5316_s26 }
  0x78   : > { %p4870_p10 = pnand %p4869_p8, %p3907_p13 }
  0x79   : > { %p4875_p3 = por %p4874_p2, %p4873_p0 }
  0x7a   : > { %p4871_p11 = pneg %p4870_p10 }
  0x7b   : > { %p4877_p7 = por %p4876_p6, %p4875_p3 }
  0x7d   : > { %p4878_p9 = pnand %p4877_p7, %p4871_p11 }
  0x7f   : > { %4881 = shalt.err (!%p4878_p9)
}
  0x80   : > { %s4882_s17 = scalar_lea.vmem %s5318_s28, %s5305_s24  ;;  %s5107_s29 = smov [#allocation2]  }
  0x81   : > { %p4883_p12 = scmp.ne.s32.totalorder %s5318_s28, %s4882_s17  ;;  %s4886_s15 = sshll.u32 %s5107_s29, 4  ;;  %s4887_s15 = int_to_ptr.vmem [resolvable:$false] %s4886_s15 }
  0x82   : > { %s4888_s25 = scalar_lea.vmem %s4887_s15, 2048  ;;  %p4889_p5 = scmp.lt.s32.totalorder %s5318_s28, %s4887_s15 }
  0x83   : > { %p4884_p4 = pnand %p4883_p12, %p3907_p13  ;;  %p4890_p8 = scmp.lt.s32.totalorder %s4888_s25, %s4882_s17 }
  0x85   : > { %p4885_p1 = pneg %p4884_p4  ;;  %p4891_p10 = por %p4890_p8, %p4889_p5 }
  0x87   : > { %p4892_p0 = pnand %p4891_p10, %p4885_p1 }
  0x89   : > { %4895 = shalt.err (!%p4892_p0)
}
  0x8a   : > { %s5108_s27 = smov 256   ;;  %s5109_s23 = smov 16  }
  0x8b   : > { %348 = dma.hbm_to_vmem [thread:$0]  (%p3907_p13), %s5316_s26, %s5305_s24, %s5318_s28, %s5308_s22, %s5108_s27, %s5108_s27, %s5109_s23  }
  0x8c PF: > { %p6363_p11 = scmp.ne.s32.totalorder %s6353_s18, 0 }
  0x8d   : > { %s352_s14 = sand.u32 (%p6363_p11), 1, %s5034_s12   ;;  %s354_s4 = sand.u32 (%p6363_p11), 1, %s5030_s11  }
  0x8e   : > { %351 = sbr.rel (!%p6363_p11) target bundleno = 177 (0xb1), region = 48  ;;  %s3912_s30 = sshll.u32 (%p6363_p11), %s354_s4, 6 }
  0x8f   : > { %s3913_s16 = sshll.u32 (%p6363_p11), %s5034_s12, 2  ;;  %s5353_s29 = scalar_lea.sflag (%p6363_p11), [#allocation5], %s352_s14 }
  0x90   : > { %s358_s8 = ssub.s32 (%p6363_p11), 6, %s3913_s16  ;;  %s356_s24 = scalar_lea.vmem (%p6363_p11), [#allocation4], %s3912_s30 }
  0x91   : > { %p359_p2 = scmp.lt.s32.totalorder (%p6363_p11), %s358_s8, 4 }
  0x95   : > { %s6536_s8 = smov (!%p359_p2, %s358_s8), 4 }
  0x96   : > { %s5350_s9 = sshll.u32 %s6536_s8, 8 }
  0x97   : > { %s364_s17 = ssub.s32 1024, %s5350_s9 }
  0x98   : > { %365 = vsyncadd %s5353_s29, %s364_s17  ;;  %p3916_p13 = scmp.ne.s32.totalorder %s5350_s9, 0  ;;  %s4224_s18 = sshll.u32 %s5034_s12, 10 }
  0x99   : > { %s5361_s28 = scalar_lea.hbm %s6258_s1, %s4224_s18  ;;  %s371_s15 = sshll.u32 %s356_s24, 4  ;;  %s5363_s15 = int_to_ptr.vmem [resolvable:$true] %s371_s15 }
  0x9a   : > { %s4896_s25 = scalar_lea.hbm %s5361_s28, %s5350_s9  ;;  %s4900_s12 = scalar_lea.hbm %s6258_s1, 1536 }
  0x9b   : > { %p4897_p3 = scmp.ne.s32.totalorder %s5361_s28, %s4896_s25  ;;  %p4901_p9 = scmp.lt.u32.totalorder %s5361_s28, %s6258_s1 }
  0x9c   : > { %p4902_p12 = scmp.lt.u32.totalorder %s4900_s12, %s4896_s25  ;;  %p4904_p1 = scmp.lt.u32.totalorder %s4896_s25, %s5361_s28 }
  0x9d   : > { %p4898_p6 = pnand %p4897_p3, %p3916_p13 }
  0x9e   : > { %p4903_p4 = por %p4902_p12, %p4901_p9 }
  0x9f   : > { %p4899_p7 = pneg %p4898_p6 }
  0xa0   : > { %p4905_p5 = por %p4904_p1, %p4903_p4 }
  0xa2   : > { %p4906_p8 = pnand %p4905_p5, %p4899_p7 }
  0xa4   : > { %4909 = shalt.err (!%p4906_p8)
}
  0xa5   : > { %s4910_s30 = scalar_lea.vmem %s5363_s15, %s5350_s9  ;;  %s5110_s16 = smov [#allocation4]  }
  0xa6   : > { %p4911_p10 = scmp.ne.s32.totalorder %s5363_s15, %s4910_s30  ;;  %s4914_s8 = sshll.u32 %s5110_s16, 4  ;;  %s4915_s8 = int_to_ptr.vmem [resolvable:$false] %s4914_s8 }
  0xa7   : > { %s4916_s17 = scalar_lea.vmem %s4915_s8, 2048  ;;  %p4917_p2 = scmp.lt.s32.totalorder %s5363_s15, %s4915_s8 }
  0xa8   : > { %p4912_p0 = pnand %p4911_p10, %p3916_p13  ;;  %p4918_p3 = scmp.lt.s32.totalorder %s4916_s17, %s4910_s30 }
  0xaa   : > { %p4913_p11 = pneg %p4912_p0  ;;  %p4919_p6 = por %p4918_p3, %p4917_p2 }
  0xac   : > { %p4920_p9 = pnand %p4919_p6, %p4913_p11 }
  0xae   : > { %4923 = shalt.err (!%p4920_p9)
}
  0xaf   : > { %s5111_s24 = smov 256   ;;  %s5112_s18 = smov 16  }
  0xb0   : > { %377 = dma.hbm_to_vmem [thread:$0]  (%p3916_p13), %s5361_s28, %s5350_s9, %s5363_s15, %s5353_s29, %s5111_s24, %s5111_s24, %s5112_s18  }
  0xb1 PF: > { %p6364_p7 = scmp.ne.s32.totalorder %s6356_s21, 0 }
  0xb3   : > { %383 = sbr.rel (%p6364_p7) target bundleno = 1026 (0x402), region = 52 }
  0xba   : > { %s5393_s22 = sand.u32 1, %s5026_s10   ;;  %p6365_p12 = scmp.ne.s32.totalorder %s6354_s19, 0 }
  0xbb   : > { %s3922_s26 = sshll.u32 %s5393_s22, 6  ;;  %s386_s25 = scalar_lea.sflag [#allocation3], %s5393_s22 }
  0xbc   : > { %s5397_s27 = scalar_lea.vmem [#allocation2], %s3922_s26 }
  0xbd   : > { %5005 = dma.done.wait (%p6365_p12), %s386_s25, 1024  }
  0xbe   : > { %5007 = vsyncadd (%p6365_p12), %s386_s25, 4294966272  ;;  %s394_s9 = sand.u32 1, %s5182_s13   ;;  %s5404_s29 = scalar_lea.vmem [#allocation4], %s3922_s26 }
  0xbf   : > { %s395_s21 = scalar_lea.sflag [#allocation5], %s394_s9 }
  0xc0   : > { %5009 = dma.done.wait (%p6365_p12), %s395_s21, 1024  }
  0xc1   : > { %5011 = vsyncadd (%p6365_p12), %s395_s21, 4294966272  ;;  %p6366_p13 = scmp.eq.s32.totalorder %s5182_s13, 0 }
  0xc3   : > { %5013 = dma.done.wait (%p6366_p13), [#allocation5], 16384   ;;  %p6367_p4 = pmov %p6366_p13 }
  0xc5   : > { %5015 = vsyncadd (%p6367_p4), [#allocation5], 4294950912  ;;  %p6368_p1 = pmov %p6367_p4 }
  0xc7   : > { %5017 = dma.done.wait (%p6368_p1), [#allocation8], 16384   ;;  %p6369_p5 = pmov %p6368_p1 }
  0xc8   : > { %v476_v0 = vld [vmem:[#allocation6] sm:$0xff]  ;;  %v477_v2 = vld [vmem:[#allocation6 + $0x8] sm:$0xff]  ;;  %v607_v54 = vld [vmem:[%s5397_s27 + $0x18] sm:$0xff]  ;;  %s3927_s12 = sshll.u32 %s5393_s22, 5  ;;  %p6518_p8 = scmp.ne.s32.totalorder %s6355_s20, 0 }
  0xc9   : > { %5019 = vsyncadd (%p6369_p5), [#allocation8], 4294950912  ;;  %v480_v1 = vld [vmem:[#allocation6 + $0x20] sm:$0xff]  ;;  %v481_v4 = vld [vmem:[#allocation6 + $0x28] sm:$0xff]  ;;  %s6135_s14 = scalar_lea.vmem [#allocation10], %s3927_s12   ;;  %s6146_s16 = scalar_lea.vmem [#allocation11], %s3927_s12  }
  0xca   : > { %v5418_v3 = vcombine.high %v476_v0, %v480_v1  ;;  %v5420_v5 = vcombine.low %v476_v0, %v480_v1  ;;  %v484_v6 = vld [vmem:[#allocation6 + $0x40] sm:$0xff]  ;;  %v5422_v8 = vcombine.high %v477_v2, %v481_v4  ;;  %v5424_v9 = vcombine.low %v477_v2, %v481_v4  ;;  %v485_v11 = vld [vmem:[#allocation6 + $0x48] sm:$0xff]  ;;  %s4189_s8 = sshll.u32 (%p6518_p8), %s5182_s13, 2  ;;  %s4225_s17 = sshll.u32 (%p6518_p8), %s5182_s13, 5 }
  0xcb   : > { %v488_v7 = vld [vmem:[#allocation6 + $0x60] sm:$0xff]  ;;  %v489_v12 = vld [vmem:[#allocation6 + $0x68] sm:$0xff]  ;;  %s3416_s24 = ssub.s32 (%p6518_p8), 6, %s4189_s8  ;;  %s6519_s26 = sld [smem:[#allocation93_spill]] (%p6518_p8) }
  0xcc   : > { %v5426_v10 = vcombine.high %v484_v6, %v488_v7  ;;  %v492_v13 = vld [vmem:[#allocation6 + $0x80] sm:$0xff]  ;;  %1298 = vmatprep.subr.bf16.mxu0 %v5418_v3  ;;  %v5429_v14 = vcombine.high %v485_v11, %v489_v12  ;;  %v493_v16 = vld [vmem:[#allocation6 + $0x88] sm:$0xff]  ;;  %1351 = vmatprep.subr.bf16.mxu1 %v5422_v8  ;;  %v5433_v18 = vcombine.low %v484_v6, %v488_v7  ;;  %p3417_p10 = scmp.lt.s32.totalorder (%p6518_p8), %s3416_s24, 4 }
  0xcd   : > { %v496_v15 = vld [vmem:[#allocation6 + $0xa0] sm:$0xff]  ;;  %v497_v17 = vld [vmem:[#allocation6 + $0xa8] sm:$0xff]  ;;  %1299 = vmatpush1.bf16.msra.mxu0 %v5420_v5  ;;  %1352 = vmatpush1.bf16.msra.mxu1 %v5424_v9  ;;  %v5437_v19 = vcombine.low %v485_v11, %v489_v12 }
  0xce   : > { %1300 = vmatprep.subr.bf16.mxu0 %v5426_v10  ;;  %v5439_v20 = vcombine.high %v492_v13, %v496_v15  ;;  %1353 = vmatprep.subr.bf16.mxu1 %v5429_v14  ;;  %v5442_v21 = vcombine.high %v493_v16, %v497_v17  ;;  %v500_v22 = vld [vmem:[#allocation6 + $0xc0] sm:$0xff]  ;;  %v501_v24 = vld [vmem:[#allocation6 + $0xc8] sm:$0xff]  ;;  %v5445_v26 = vcombine.low %v492_v13, %v496_v15 }
  0xcf   : > { %v504_v23 = vld [vmem:[#allocation6 + $0xe0] sm:$0xff]  ;;  %v505_v25 = vld [vmem:[#allocation6 + $0xe8] sm:$0xff]  ;;  %v5449_v27 = vcombine.low %v493_v16, %v497_v17 }
  0xd0   : > { %v5451_v28 = vcombine.high %v500_v22, %v504_v23  ;;  %v5454_v29 = vcombine.high %v501_v24, %v505_v25  ;;  %v508_v30 = vld [vmem:[#allocation6 + $0x100] sm:$0xff]  ;;  %v509_v32 = vld [vmem:[#allocation6 + $0x108] sm:$0xff]  ;;  %v5457_v34 = vcombine.low %v500_v22, %v504_v23  ;;  %v5461_v35 = vcombine.low %v501_v24, %v505_v25 }
  0xd1   : > { %1301 = vmatpush1.bf16.msra.mxu0 %v5433_v18  ;;  %1354 = vmatpush1.bf16.msra.mxu1 %v5437_v19  ;;  %v512_v31 = vld [vmem:[#allocation6 + $0x120] sm:$0xff]  ;;  %v513_v33 = vld [vmem:[#allocation6 + $0x128] sm:$0xff]  ;;  %s6159_s25 = scalar_lea.vmem (%p6518_p8), %s6519_s26, %s4225_s17  }
  0xd2   : > { %1302 = vmatprep.subr.bf16.mxu0 %v5439_v20  ;;  %1355 = vmatprep.subr.bf16.mxu1 %v5442_v21  ;;  %v5463_v36 = vcombine.high %v508_v30, %v512_v31  ;;  %v5466_v37 = vcombine.high %v509_v32, %v513_v33  ;;  %v516_v38 = vld [vmem:[#allocation6 + $0x140] sm:$0xff]  ;;  %v517_v40 = vld [vmem:[#allocation6 + $0x148] sm:$0xff]  ;;  %v5469_v42 = vcombine.low %v508_v30, %v512_v31 }
  0xd3   : > { %v520_v39 = vld [vmem:[#allocation6 + $0x160] sm:$0xff]  ;;  %v521_v41 = vld [vmem:[#allocation6 + $0x168] sm:$0xff]  ;;  %v5473_v43 = vcombine.low %v509_v32, %v513_v33 }
  0xd4   : > { %v5475_v44 = vcombine.high %v516_v38, %v520_v39  ;;  %v5478_v45 = vcombine.high %v517_v40, %v521_v41  ;;  %v524_v46 = vld [vmem:[#allocation6 + $0x180] sm:$0xff]  ;;  %v525_v48 = vld [vmem:[#allocation6 + $0x188] sm:$0xff]  ;;  %v5481_v50 = vcombine.low %v516_v38, %v520_v39  ;;  %v5485_v51 = vcombine.low %v517_v40, %v521_v41 }
  0xd5   : > { %1303 = vmatpush1.bf16.msra.mxu0 %v5445_v26  ;;  %1356 = vmatpush1.bf16.msra.mxu1 %v5449_v27  ;;  %v528_v47 = vld [vmem:[#allocation6 + $0x1a0] sm:$0xff]  ;;  %v529_v49 = vld [vmem:[#allocation6 + $0x1a8] sm:$0xff] }
  0xd6   : > { %1304 = vmatprep.subr.bf16.mxu0 %v5451_v28  ;;  %1357 = vmatprep.subr.bf16.mxu1 %v5454_v29  ;;  %v5487_v52 = vcombine.high %v524_v46, %v528_v47  ;;  %v605_v53 = vld [vmem:[%s5397_s27 + $0x8] sm:$0xff]  ;;  %v5492_v55 = vcombine.high %v525_v48, %v529_v49  ;;  %v532_v56 = vld [vmem:[#allocation6 + $0x1c0] sm:$0xff]  ;;  %v5497_v61 = vcombine.low %v524_v46, %v528_v47 }
  0xd7   : > { %v536_v57 = vld [vmem:[#allocation6 + $0x1e0] sm:$0xff]  ;;  %v5494_v58 = vpack.c.bf16 %v607_v54, %v605_v53  ;;  %v533_v59 = vld [vmem:[#allocation6 + $0x1c8] sm:$0xff]  ;;  %v5502_v62 = vcombine.low %v525_v48, %v529_v49 }
  0xd8   : > { %v537_v60 = vld [vmem:[#allocation6 + $0x1e8] sm:$0xff]  ;;  %v5504_v63 = vcombine.high %v532_v56, %v536_v57  ;;  %v540_v1 = vld [vmem:[#allocation6 + $0x200] sm:$0xff]  ;;  %v5511_v7 = vcombine.low %v532_v56, %v536_v57 }
  0xd9   : > { %1305 = vmatpush1.bf16.msra.mxu0 %v5457_v34  ;;  %1358 = vmatpush1.bf16.msra.mxu1 %v5461_v35  ;;  %v5507_v0 = vcombine.high %v533_v59, %v537_v60  ;;  %v544_v2 = vld [vmem:[#allocation6 + $0x220] sm:$0xff]  ;;  %v541_v4 = vld [vmem:[#allocation6 + $0x208] sm:$0xff]  ;;  %v5515_v11 = vcombine.low %v533_v59, %v537_v60 }
  0xda   : > { %1306 = vmatprep.subr.bf16.mxu0 %v5463_v36  ;;  %1359 = vmatprep.subr.bf16.mxu1 %v5466_v37  ;;  %v545_v6 = vld [vmem:[#allocation6 + $0x228] sm:$0xff]  ;;  %v5517_v12 = vcombine.high %v540_v1, %v544_v2  ;;  %v548_v15 = vld [vmem:[#allocation6 + $0x240] sm:$0xff]  ;;  %v5523_v23 = vcombine.low %v540_v1, %v544_v2 }
  0xdb   : > { %1330 = vmatprep.mubr.bf16.mxu0 %v5494_v58  ;;  %1383 = vmatprep.mubr.bf16.mxu1 %v5494_v58  ;;  %v5520_v13 = vcombine.high %v541_v4, %v545_v6  ;;  %v552_v16 = vld [vmem:[#allocation6 + $0x260] sm:$0xff]  ;;  %v549_v17 = vld [vmem:[#allocation6 + $0x248] sm:$0xff]  ;;  %v5527_v24 = vcombine.low %v541_v4, %v545_v6 }
  0xdc   : > { %v553_v22 = vld [vmem:[#allocation6 + $0x268] sm:$0xff]  ;;  %v5529_v25 = vcombine.high %v548_v15, %v552_v16  ;;  %v556_v31 = vld [vmem:[#allocation6 + $0x280] sm:$0xff]  ;;  %v5535_v39 = vcombine.low %v548_v15, %v552_v16 }
  0xdd   : > { %1307 = vmatpush1.bf16.msra.mxu0 %v5469_v42  ;;  %1360 = vmatpush1.bf16.msra.mxu1 %v5473_v43  ;;  %v5532_v30 = vcombine.high %v549_v17, %v553_v22  ;;  %v560_v32 = vld [vmem:[#allocation6 + $0x2a0] sm:$0xff]  ;;  %v557_v33 = vld [vmem:[#allocation6 + $0x288] sm:$0xff]  ;;  %v5539_v40 = vcombine.low %v549_v17, %v553_v22 }
  0xde   : > { %1308 = vmatprep.subr.bf16.mxu0 %v5475_v44  ;;  %1361 = vmatprep.subr.bf16.mxu1 %v5478_v45  ;;  %v561_v38 = vld [vmem:[#allocation6 + $0x2a8] sm:$0xff]  ;;  %v5541_v41 = vcombine.high %v556_v31, %v560_v32  ;;  %v564_v47 = vld [vmem:[#allocation6 + $0x2c0] sm:$0xff]  ;;  %v5547_v54 = vcombine.low %v556_v31, %v560_v32 }
  0xdf   : > { %6370 = vst [vmem:[#allocation18_spill] sm:$0xff] %v5539_v40  ;;  %v5544_v46 = vcombine.high %v557_v33, %v561_v38  ;;  %v568_v48 = vld [vmem:[#allocation6 + $0x2e0] sm:$0xff]  ;;  %v565_v49 = vld [vmem:[#allocation6 + $0x2c8] sm:$0xff]  ;;  %v5551_v56 = vcombine.low %v557_v33, %v561_v38 }
  0xe0   : > { %6371 = vst [vmem:[#allocation19_spill] sm:$0xff] %v5541_v41  ;;  %v569_v53 = vld [vmem:[#allocation6 + $0x2e8] sm:$0xff]  ;;  %6373 = vst [vmem:[#allocation21_spill] sm:$0xff] %v5547_v54  ;;  %v5553_v57 = vcombine.high %v564_v47, %v568_v48  ;;  %v572_v60 = vld [vmem:[#allocation6 + $0x300] sm:$0xff]  ;;  %v5559_v6 = vcombine.low %v564_v47, %v568_v48 }
  0xe1   : > { %1309 = vmatpush1.bf16.msra.mxu0 %v5481_v50  ;;  %1362 = vmatpush1.bf16.msra.mxu1 %v5485_v51  ;;  %6372 = vst [vmem:[#allocation20_spill] sm:$0xff] %v5544_v46  ;;  %6374 = vst [vmem:[#allocation22_spill] sm:$0xff] %v5551_v56  ;;  %v5556_v59 = vcombine.high %v565_v49, %v569_v53  ;;  %v576_v1 = vld [vmem:[#allocation6 + $0x320] sm:$0xff]  ;;  %v573_v2 = vld [vmem:[#allocation6 + $0x308] sm:$0xff]  ;;  %v5563_v17 = vcombine.low %v565_v49, %v569_v53 }
  0xe2   : > { %1310 = vmatprep.subr.bf16.mxu0 %v5487_v52  ;;  %1363 = vmatprep.subr.bf16.mxu1 %v5492_v55  ;;  %6375 = vst [vmem:[#allocation23_spill] sm:$0xff] %v5553_v57  ;;  %v577_v4 = vld [vmem:[#allocation6 + $0x328] sm:$0xff]  ;;  %6377 = vst [vmem:[#allocation25_spill] sm:$0xff] %v5559_v6  ;;  %v580_v15 = vld [vmem:[#allocation6 + $0x340] sm:$0xff]  ;;  %v5565_v22 = vcombine.high %v572_v60, %v576_v1  ;;  %v5571_v38 = vcombine.low %v572_v60, %v576_v1 }
  0xe3   : > { %6376 = vst [vmem:[#allocation24_spill] sm:$0xff] %v5556_v59  ;;  %v584_v16 = vld [vmem:[#allocation6 + $0x360] sm:$0xff]  ;;  %6378 = vst [vmem:[#allocation26_spill] sm:$0xff] %v5563_v17  ;;  %v581_v31 = vld [vmem:[#allocation6 + $0x348] sm:$0xff]  ;;  %v5568_v33 = vcombine.high %v573_v2, %v577_v4  ;;  %v5575_v49 = vcombine.low %v573_v2, %v577_v4 }
  0xe4   : > { %6379 = vst [vmem:[#allocation27_spill] sm:$0xff] %v5565_v22  ;;  %v585_v32 = vld [vmem:[#allocation6 + $0x368] sm:$0xff]  ;;  %6381 = vst [vmem:[#allocation29_spill] sm:$0xff] %v5571_v38  ;;  %v588_v47 = vld [vmem:[#allocation6 + $0x380] sm:$0xff]  ;;  %v5577_v53 = vcombine.high %v580_v15, %v584_v16  ;;  %v5583_v60 = vcombine.low %v580_v15, %v584_v16 }
  0xe5   : > { %1311 = vmatpush1.bf16.msra.mxu0 %v5497_v61  ;;  %1364 = vmatpush1.bf16.msra.mxu1 %v5502_v62  ;;  %6380 = vst [vmem:[#allocation28_spill] sm:$0xff] %v5568_v33  ;;  %v592_v48 = vld [vmem:[#allocation6 + $0x3a0] sm:$0xff]  ;;  %6382 = vst [vmem:[#allocation30_spill] sm:$0xff] %v5575_v49  ;;  %v5587_v2 = vcombine.low %v581_v31, %v585_v32  ;;  %v478_v16 = vld [vmem:[#allocation6 + $0x10] sm:$0xff] }
  0xe6   : > { %1312 = vmatprep.subr.bf16.mxu0 %v5504_v63  ;;  %1365 = vmatprep.subr.bf16.mxu1 %v5507_v0  ;;  %6383 = vst [vmem:[#allocation31_spill] sm:$0xff] %v5577_v53  ;;  %6385 = vst [vmem:[#allocation33_spill] sm:$0xff] %v5583_v60  ;;  %v596_v1 = vld [vmem:[#allocation6 + $0x3c0] sm:$0xff]  ;;  %v5589_v4 = vcombine.high %v588_v47, %v592_v48  ;;  %v5595_v15 = vcombine.low %v588_v47, %v592_v48  ;;  %v606_v48 = vld [vmem:[%s5397_s27 + $0x10] sm:$0xff] }
  0xe7   : > { %6386 = vst [vmem:[#allocation34_spill] sm:$0xff] %v5587_v2  ;;  %v604_v47 = vld [vmem:[%s5397_s27] sm:$0xff] }
  0xe8   : > { %6387 = vst [vmem:[#allocation35_spill] sm:$0xff] %v5589_v4  ;;  %6389 = vst [vmem:[#allocation37_spill] sm:$0xff] %v5595_v15 }
  0xe9   : > { %1313 = vmatpush1.bf16.msra.mxu0 %v5511_v7  ;;  %1366 = vmatpush1.bf16.msra.mxu1 %v5515_v11 }
  0xea   : > { %1314 = vmatprep.subr.bf16.mxu0 %v5517_v12  ;;  %1367 = vmatprep.subr.bf16.mxu1 %v5520_v13 }
  0xed   : > { %1315 = vmatpush1.bf16.msra.mxu0 %v5523_v23  ;;  %1368 = vmatpush1.bf16.msra.mxu1 %v5527_v24 }
  0xee   : > { %1316 = vmatprep.subr.bf16.mxu0 %v5529_v25  ;;  %1369 = vmatprep.subr.bf16.mxu1 %v5532_v30 }
  0xf1   : > { %1317 = vmatpush1.bf16.msra.mxu0 %v5535_v39  ;;  %1370 = vmatpush1.bf16.msra.mxu1 %v5539_v40  ;;  %v499_v40 = vld [vmem:[#allocation6 + $0xb8] sm:$0xff] }
  0xf2   : > { %1318 = vmatprep.subr.bf16.mxu0 %v5541_v41  ;;  %1371 = vmatprep.subr.bf16.mxu1 %v5544_v46  ;;  %v609_v46 = vld [vmem:[%s5397_s27 + $0x28] sm:$0xff]  ;;  %v611_v41 = vld [vmem:[%s5397_s27 + $0x38] sm:$0xff] }
  0xf5   : > { %1319 = vmatpush1.bf16.msra.mxu0 %v5547_v54  ;;  %1372 = vmatpush1.bf16.msra.mxu1 %v5551_v56  ;;  %v593_v56 = vld [vmem:[#allocation6 + $0x3a8] sm:$0xff]  ;;  %v487_v54 = vld [vmem:[#allocation6 + $0x58] sm:$0xff] }
  0xf6   : > { %1320 = vmatprep.subr.bf16.mxu0 %v5553_v57  ;;  %1373 = vmatprep.subr.bf16.mxu1 %v5556_v59  ;;  %v589_v57 = vld [vmem:[#allocation6 + $0x388] sm:$0xff]  ;;  %v5580_v59 = vcombine.high %v581_v31, %v585_v32 }
  0xf7   : > { %v5599_v31 = vcombine.low %v589_v57, %v593_v56 }
  0xf8   : > { %6384 = vst [vmem:[#allocation32_spill] sm:$0xff] %v5580_v59 }
  0xf9   : > { %1321 = vmatpush1.bf16.msra.mxu0 %v5559_v6  ;;  %1374 = vmatpush1.bf16.msra.mxu1 %v5563_v17  ;;  %v600_v6 = vld [vmem:[#allocation6 + $0x3e0] sm:$0xff]  ;;  %v601_v17 = vld [vmem:[#allocation6 + $0x3e8] sm:$0xff]  ;;  %6390 = vst [vmem:[#allocation38_spill] sm:$0xff] %v5599_v31 }
  0xfa   : > { %1322 = vmatprep.subr.bf16.mxu0 %v5565_v22  ;;  %1375 = vmatprep.subr.bf16.mxu1 %v5568_v33  ;;  %v597_v22 = vld [vmem:[#allocation6 + $0x3c8] sm:$0xff]  ;;  %v5592_v33 = vcombine.high %v589_v57, %v593_v56  ;;  %v5601_v32 = vcombine.high %v596_v1, %v600_v6 }
  0xfb   : > { %v5613_v56 = vcombine.low %v597_v22, %v601_v17 }
  0xfc   : > { %6388 = vst [vmem:[#allocation36_spill] sm:$0xff] %v5592_v33  ;;  %6391 = vst [vmem:[#allocation39_spill] sm:$0xff] %v5601_v32 }
  0xfd   : > { %1323 = vmatpush1.bf16.msra.mxu0 %v5571_v38  ;;  %1376 = vmatpush1.bf16.msra.mxu1 %v5575_v49  ;;  %v482_v49 = vld [vmem:[#allocation6 + $0x30] sm:$0xff]  ;;  %v483_v38 = vld [vmem:[#allocation6 + $0x38] sm:$0xff]  ;;  %6394 = vst [vmem:[#allocation42_spill] sm:$0xff] %v5613_v56 }
  0xfe   : > { %1324 = vmatprep.subr.bf16.mxu0 %v5577_v53  ;;  %1377 = vmatprep.subr.bf16.mxu1 %v5580_v59  ;;  %v479_v53 = vld [vmem:[#allocation6 + $0x18] sm:$0xff]  ;;  %v5604_v59 = vcombine.high %v597_v22, %v601_v17  ;;  %v5615_v57 = vcombine.high %v478_v16, %v482_v49  ;;  %v494_v17 = vld [vmem:[#allocation6 + $0x90] sm:$0xff] }
  0xff   : > { %v498_v22 = vld [vmem:[#allocation6 + $0xb0] sm:$0xff] }
 0x100   : > { %6392 = vst [vmem:[#allocation40_spill] sm:$0xff] %v5604_v59  ;;  %6395 = vst [vmem:[#allocation43_spill] sm:$0xff] %v5615_v57 }
 0x101   : > { %1325 = vmatpush1.bf16.msra.mxu0 %v5583_v60  ;;  %1378 = vmatpush1.bf16.msra.mxu1 %v5587_v2  ;;  %v5609_v60 = vcombine.low %v596_v1, %v600_v6  ;;  %v486_v2 = vld [vmem:[#allocation6 + $0x50] sm:$0xff]  ;;  %v5622_v6 = vpack.c.bf16 %v606_v48, %v604_v47  ;;  %v5625_v1 = vcombine.low %v478_v16, %v482_v49  ;;  %v608_v49 = vld [vmem:[%s5397_s27 + $0x20] sm:$0xff] }
 0x102   : > { %1326 = vmatprep.subr.bf16.mxu0 %v5589_v4  ;;  %1379 = vmatprep.subr.bf16.mxu1 %v5592_v33  ;;  %v490_v4 = vld [vmem:[#allocation6 + $0x70] sm:$0xff]  ;;  %v491_v33 = vld [vmem:[#allocation6 + $0x78] sm:$0xff]  ;;  %v5636_v48 = vpack.c.bf16 %v611_v41, %v609_v46  ;;  %v5649_v41 = vcombine.high %v494_v17, %v498_v22 }
 0x103   : > { %6393 = vst [vmem:[#allocation41_spill] sm:$0xff] %v5609_v60  ;;  %6397 = vst [vmem:[#allocation45_spill] sm:$0xff] %v5625_v1  ;;  %v5634_v47 = vcombine.high %v487_v54, %v491_v33  ;;  %v610_v16 = vld [vmem:[%s5397_s27 + $0x30] sm:$0xff]  ;;  %v503_v46 = vld [vmem:[#allocation6 + $0xd8] sm:$0xff] }
 0x104   : > { %6402 = vst [vmem:[#allocation50_spill] sm:$0xff] %v5649_v41 }
 0x105   : > { %1327 = vmatpush1.bf16.msra.mxu0 %v5595_v15  ;;  %1380 = vmatpush1.bf16.msra.mxu1 %v5599_v31  ;;  %v5620_v15 = vcombine.high %v479_v53, %v483_v38  ;;  %v5631_v31 = vcombine.high %v486_v2, %v490_v4  ;;  %6400 = vst [vmem:[#allocation48_spill] sm:$0xff] %v5634_v47 }
 0x106   : > { %1328 = vmatprep.subr.bf16.mxu0 %v5601_v32  ;;  %1381 = vmatprep.subr.bf16.mxu1 %v5604_v59  ;;  %v5629_v32 = vcombine.low %v479_v53, %v483_v38  ;;  %v495_v59 = vld [vmem:[#allocation6 + $0x98] sm:$0xff]  ;;  %v5643_v38 = vcombine.low %v486_v2, %v490_v4  ;;  %v502_v53 = vld [vmem:[#allocation6 + $0xd0] sm:$0xff]  ;;  %v5655_v2 = vpack.c.bf16 %v610_v16, %v608_v49 }
 0x107   : > { %6396 = vst [vmem:[#allocation44_spill] sm:$0xff] %v5620_v15  ;;  %6399 = vst [vmem:[#allocation47_spill] sm:$0xff] %v5631_v31  ;;  %v5659_v4 = vcombine.low %v494_v17, %v498_v22  ;;  %v518_v22 = vld [vmem:[#allocation6 + $0x150] sm:$0xff] }
 0x108   : > { %6398 = vst [vmem:[#allocation46_spill] sm:$0xff] %v5629_v32  ;;  %v522_v16 = vld [vmem:[#allocation6 + $0x170] sm:$0xff] }
 0x109   : > { %1329 = vmatpush1.bf16.msra.mxu0 %v5609_v60  ;;  %1382 = vmatpush1.bf16.msra.mxu1 %v5613_v56  ;;  %v507_v56 = vld [vmem:[#allocation6 + $0xf8] sm:$0xff]  ;;  %v5652_v60 = vcombine.high %v495_v59, %v499_v40  ;;  %6404 = vst [vmem:[#allocation52_spill] sm:$0xff] %v5659_v4 }
 0x10a   : > { %1404 = vmatprep.subr.bf16.mxu0 %v5615_v57  ;;  %1457 = vmatprep.subr.bf16.mxu1 %v5620_v15  ;;  %v506_v57 = vld [vmem:[#allocation6 + $0xf0] sm:$0xff]  ;;  %v5647_v15 = vcombine.low %v487_v54, %v491_v33  ;;  %v5668_v49 = vcombine.high %v503_v46, %v507_v56 }
 0x10b   : > { %6403 = vst [vmem:[#allocation51_spill] sm:$0xff] %v5652_v60  ;;  %v510_v54 = vld [vmem:[#allocation6 + $0x110] sm:$0xff]  ;;  %v5672_v17 = vcombine.low %v502_v53, %v506_v57 }
 0x10c   : > { %1331 = vmatmul.mubr.bf16.vlgmr.msra.gmra.mrb[0].mxu0 %v5622_v6  ;;  %1384 = vmatmul.mubr.bf16.vlgmr.msra.gmra.mrb[0].mxu1 %v5622_v6  ;;  %6401 = vst [vmem:[#allocation49_spill] sm:$0xff] %v5647_v15  ;;  %v514_v33 = vld [vmem:[#allocation6 + $0x130] sm:$0xff]  ;;  %6407 = vst [vmem:[#allocation55_spill] sm:$0xff] %v5668_v49 }
 0x10d   : > { %1405 = vmatpush1.bf16.msra.mxu0 %v5625_v1  ;;  %1458 = vmatpush1.bf16.msra.mxu1 %v5629_v32  ;;  %v511_v32 = vld [vmem:[#allocation6 + $0x118] sm:$0xff] }
 0x10e   : > { %1406 = vmatprep.subr.bf16.mxu0 %v5631_v31  ;;  %1459 = vmatprep.subr.bf16.mxu1 %v5634_v47  ;;  %v5663_v31 = vcombine.low %v495_v59, %v499_v40  ;;  %v5665_v47 = vcombine.high %v502_v53, %v506_v57  ;;  %v515_v1 = vld [vmem:[#allocation6 + $0x138] sm:$0xff]  ;;  %v5677_v40 = vcombine.low %v503_v46, %v507_v56  ;;  %v526_v53 = vld [vmem:[#allocation6 + $0x190] sm:$0xff] }
 0x10f   : > { %1340 = vmatprep.mubr.bf16.mxu0 %v5636_v48  ;;  %1393 = vmatprep.mubr.bf16.mxu1 %v5636_v48  ;;  %v5679_v59 = vcombine.high %v510_v54, %v514_v33  ;;  %v5687_v57 = vcombine.low %v510_v54, %v514_v33  ;;  %v5691_v56 = vcombine.low %v511_v32, %v515_v1  ;;  %v534_v54 = vld [vmem:[#allocation6 + $0x1d0] sm:$0xff] }
 0x110   : > { %6405 = vst [vmem:[#allocation53_spill] sm:$0xff] %v5663_v31  ;;  %6406 = vst [vmem:[#allocation54_spill] sm:$0xff] %v5665_v47  ;;  %v5693_v46 = vcombine.high %v518_v22, %v522_v16  ;;  %v538_v33 = vld [vmem:[#allocation6 + $0x1f0] sm:$0xff] }
 0x111   : > { %1407 = vmatpush1.bf16.msra.mxu0 %v5643_v38  ;;  %1460 = vmatpush1.bf16.msra.mxu1 %v5647_v15  ;;  %6408 = vst [vmem:[#allocation56_spill] sm:$0xff] %v5677_v40  ;;  %6409 = vst [vmem:[#allocation57_spill] sm:$0xff] %v5679_v59  ;;  %v5682_v15 = vcombine.high %v511_v32, %v515_v1 }
 0x112   : > { %1408 = vmatprep.subr.bf16.mxu0 %v5649_v41  ;;  %1461 = vmatprep.subr.bf16.mxu1 %v5652_v60  ;;  %v519_v60 = vld [vmem:[#allocation6 + $0x158] sm:$0xff]  ;;  %6411 = vst [vmem:[#allocation59_spill] sm:$0xff] %v5687_v57  ;;  %6412 = vst [vmem:[#allocation60_spill] sm:$0xff] %v5691_v56 }
 0x113   : > { %v523_v41 = vld [vmem:[#allocation6 + $0x178] sm:$0xff]  ;;  %6410 = vst [vmem:[#allocation58_spill] sm:$0xff] %v5682_v15  ;;  %6413 = vst [vmem:[#allocation61_spill] sm:$0xff] %v5693_v46 }
 0x114   : > { %1341 = vmatmul.mubr.bf16.gmra.mrb[4].mxu0 %v5655_v2  ;;  %1394 = vmatmul.mubr.bf16.gmra.mrb[4].mxu1 %v5655_v2  ;;  %v5703_v32 = vcombine.low %v519_v60, %v523_v41 }
 0x115   : > { %1409 = vmatpush1.bf16.msra.mxu0 %v5659_v4  ;;  %1462 = vmatpush1.bf16.msra.mxu1 %v5663_v31  ;;  %v531_v31 = vld [vmem:[#allocation6 + $0x1b8] sm:$0xff]  ;;  %v5696_v4 = vcombine.high %v519_v60, %v523_v41  ;;  %v5717_v41 = vcombine.high %v534_v54, %v538_v33 }
 0x116   : > { %1410 = vmatprep.subr.bf16.mxu0 %v5665_v47  ;;  %1463 = vmatprep.subr.bf16.mxu1 %v5668_v49  ;;  %v530_v47 = vld [vmem:[#allocation6 + $0x1b0] sm:$0xff]  ;;  %v527_v49 = vld [vmem:[#allocation6 + $0x198] sm:$0xff]  ;;  %6416 = vst [vmem:[#allocation64_spill] sm:$0xff] %v5703_v32 }
 0x117   : > { %1436 = vmatprep.mubr.bf16.mxu0 %v5494_v58  ;;  %1489 = vmatprep.mubr.bf16.mxu1 %v5494_v58  ;;  %6414 = vst [vmem:[#allocation62_spill] sm:$0xff] %v5696_v4  ;;  %v5699_v58 = vcombine.low %v518_v22, %v522_v16  ;;  %v5705_v1 = vcombine.high %v526_v53, %v530_v47  ;;  %v542_v16 = vld [vmem:[#allocation6 + $0x210] sm:$0xff]  ;;  %6421 = vst [vmem:[#allocation69_spill] sm:$0xff] %v5717_v41 }
 0x118   : > { %v5711_v22 = vcombine.low %v526_v53, %v530_v47  ;;  %v5715_v60 = vcombine.low %v527_v49, %v531_v31  ;;  %v5723_v47 = vcombine.low %v534_v54, %v538_v33  ;;  %v550_v53 = vld [vmem:[#allocation6 + $0x250] sm:$0xff] }
 0x119   : > { %1411 = vmatpush1.bf16.msra.mxu0 %v5672_v17  ;;  %1464 = vmatpush1.bf16.msra.mxu1 %v5677_v40  ;;  %6415 = vst [vmem:[#allocation63_spill] sm:$0xff] %v5699_v58  ;;  %6417 = vst [vmem:[#allocation65_spill] sm:$0xff] %v5705_v1  ;;  %v539_v40 = vld [vmem:[#allocation6 + $0x1f8] sm:$0xff]  ;;  %v558_v33 = vld [vmem:[#allocation6 + $0x290] sm:$0xff] }
 0x11a   : > { %1412 = vmatprep.subr.bf16.mxu0 %v5679_v59  ;;  %1465 = vmatprep.subr.bf16.mxu1 %v5682_v15  ;;  %v535_v59 = vld [vmem:[#allocation6 + $0x1d8] sm:$0xff]  ;;  %v5708_v15 = vcombine.high %v527_v49, %v531_v31  ;;  %6419 = vst [vmem:[#allocation67_spill] sm:$0xff] %v5711_v22  ;;  %6420 = vst [vmem:[#allocation68_spill] sm:$0xff] %v5715_v60 }
 0x11b   : > { %6423 = vst [vmem:[#allocation71_spill] sm:$0xff] %v5723_v47  ;;  %v5727_v31 = vcombine.low %v535_v59, %v539_v40 }
 0x11c   : > { %6418 = vst [vmem:[#allocation66_spill] sm:$0xff] %v5708_v15 }
 0x11d   : > { %1413 = vmatpush1.bf16.msra.mxu0 %v5687_v57  ;;  %1466 = vmatpush1.bf16.msra.mxu1 %v5691_v56  ;;  %v546_v57 = vld [vmem:[#allocation6 + $0x230] sm:$0xff]  ;;  %v547_v56 = vld [vmem:[#allocation6 + $0x238] sm:$0xff]  ;;  %6424 = vst [vmem:[#allocation72_spill] sm:$0xff] %v5727_v31 }
 0x11e   : > { %1414 = vmatprep.subr.bf16.mxu0 %v5693_v46  ;;  %1467 = vmatprep.subr.bf16.mxu1 %v5696_v4  ;;  %v543_v46 = vld [vmem:[#allocation6 + $0x218] sm:$0xff]  ;;  %v5720_v4 = vcombine.high %v535_v59, %v539_v40  ;;  %v5729_v49 = vcombine.high %v542_v16, %v546_v57  ;;  %v5735_v54 = vcombine.low %v542_v16, %v546_v57  ;;  %v566_v16 = vld [vmem:[#allocation6 + $0x2d0] sm:$0xff] }
 0x11f   : > { %v5739_v40 = vcombine.low %v543_v46, %v547_v56 }
 0x120   : > { %6422 = vst [vmem:[#allocation70_spill] sm:$0xff] %v5720_v4  ;;  %6425 = vst [vmem:[#allocation73_spill] sm:$0xff] %v5729_v49 }
 0x121   : > { %1415 = vmatpush1.bf16.msra.mxu0 %v5699_v58  ;;  %1468 = vmatpush1.bf16.msra.mxu1 %v5703_v32  ;;  %v554_v58 = vld [vmem:[#allocation6 + $0x270] sm:$0xff]  ;;  %v555_v32 = vld [vmem:[#allocation6 + $0x278] sm:$0xff]  ;;  %6427 = vst [vmem:[#allocation75_spill] sm:$0xff] %v5735_v54  ;;  %6428 = vst [vmem:[#allocation76_spill] sm:$0xff] %v5739_v40 }
 0x122   : > { %1416 = vmatprep.subr.bf16.mxu0 %v5705_v1  ;;  %1469 = vmatprep.subr.bf16.mxu1 %v5708_v15  ;;  %v551_v1 = vld [vmem:[#allocation6 + $0x258] sm:$0xff]  ;;  %v5732_v15 = vcombine.high %v543_v46, %v547_v56  ;;  %v5741_v59 = vcombine.high %v550_v53, %v554_v58  ;;  %v5747_v57 = vcombine.low %v550_v53, %v554_v58  ;;  %v574_v53 = vld [vmem:[#allocation6 + $0x310] sm:$0xff] }
 0x123   : > { %v5751_v56 = vcombine.low %v551_v1, %v555_v32 }
 0x124   : > { %6426 = vst [vmem:[#allocation74_spill] sm:$0xff] %v5732_v15  ;;  %6429 = vst [vmem:[#allocation77_spill] sm:$0xff] %v5741_v59 }
 0x125   : > { %1417 = vmatpush1.bf16.msra.mxu0 %v5711_v22  ;;  %1470 = vmatpush1.bf16.msra.mxu1 %v5715_v60  ;;  %v562_v22 = vld [vmem:[#allocation6 + $0x2b0] sm:$0xff]  ;;  %v563_v60 = vld [vmem:[#allocation6 + $0x2b8] sm:$0xff]  ;;  %6431 = vst [vmem:[#allocation79_spill] sm:$0xff] %v5747_v57  ;;  %6432 = vst [vmem:[#allocation80_spill] sm:$0xff] %v5751_v56 }
 0x126   : > { %1418 = vmatprep.subr.bf16.mxu0 %v5717_v41  ;;  %1471 = vmatprep.subr.bf16.mxu1 %v5720_v4  ;;  %v559_v41 = vld [vmem:[#allocation6 + $0x298] sm:$0xff]  ;;  %v5744_v4 = vcombine.high %v551_v1, %v555_v32  ;;  %v5753_v46 = vcombine.high %v558_v33, %v562_v22  ;;  %v5759_v58 = vcombine.low %v558_v33, %v562_v22  ;;  %v582_v33 = vld [vmem:[#allocation6 + $0x350] sm:$0xff] }
 0x127   : > { %v5763_v32 = vcombine.low %v559_v41, %v563_v60 }
 0x128   : > { %6430 = vst [vmem:[#allocation78_spill] sm:$0xff] %v5744_v4  ;;  %6433 = vst [vmem:[#allocation81_spill] sm:$0xff] %v5753_v46 }
 0x129   : > { %1419 = vmatpush1.bf16.msra.mxu0 %v5723_v47  ;;  %1472 = vmatpush1.bf16.msra.mxu1 %v5727_v31  ;;  %v570_v47 = vld [vmem:[#allocation6 + $0x2f0] sm:$0xff]  ;;  %v571_v31 = vld [vmem:[#allocation6 + $0x2f8] sm:$0xff]  ;;  %6435 = vst [vmem:[#allocation83_spill] sm:$0xff] %v5759_v58  ;;  %6436 = vst [vmem:[#allocation84_spill] sm:$0xff] %v5763_v32 }
 0x12a   : > { %1420 = vmatprep.subr.bf16.mxu0 %v5729_v49  ;;  %1473 = vmatprep.subr.bf16.mxu1 %v5732_v15  ;;  %v567_v49 = vld [vmem:[#allocation6 + $0x2d8] sm:$0xff]  ;;  %v5756_v15 = vcombine.high %v559_v41, %v563_v60  ;;  %v5765_v1 = vcombine.high %v566_v16, %v570_v47  ;;  %v5771_v22 = vcombine.low %v566_v16, %v570_v47  ;;  %v590_v16 = vld [vmem:[#allocation6 + $0x390] sm:$0xff] }
 0x12b   : > { %v5775_v60 = vcombine.low %v567_v49, %v571_v31 }
 0x12c   : > { %6434 = vst [vmem:[#allocation82_spill] sm:$0xff] %v5756_v15  ;;  %6437 = vst [vmem:[#allocation85_spill] sm:$0xff] %v5765_v1 }
 0x12d   : > { %1421 = vmatpush1.bf16.msra.mxu0 %v5735_v54  ;;  %1474 = vmatpush1.bf16.msra.mxu1 %v5739_v40  ;;  %v578_v54 = vld [vmem:[#allocation6 + $0x330] sm:$0xff]  ;;  %v579_v40 = vld [vmem:[#allocation6 + $0x338] sm:$0xff]  ;;  %6439 = vst [vmem:[#allocation87_spill] sm:$0xff] %v5771_v22  ;;  %6440 = vst [vmem:[#allocation88_spill] sm:$0xff] %v5775_v60 }
 0x12e   : > { %1422 = vmatprep.subr.bf16.mxu0 %v5741_v59  ;;  %1475 = vmatprep.subr.bf16.mxu1 %v5744_v4  ;;  %v575_v59 = vld [vmem:[#allocation6 + $0x318] sm:$0xff]  ;;  %v5768_v4 = vcombine.high %v567_v49, %v571_v31  ;;  %v5777_v41 = vcombine.high %v574_v53, %v578_v54  ;;  %v5783_v47 = vcombine.low %v574_v53, %v578_v54  ;;  %v598_v53 = vld [vmem:[#allocation6 + $0x3d0] sm:$0xff] }
 0x12f   : > { %v5787_v31 = vcombine.low %v575_v59, %v579_v40 }
 0x130   : > { %6438 = vst [vmem:[#allocation86_spill] sm:$0xff] %v5768_v4  ;;  %6441 = vst [vmem:[#allocation89_spill] sm:$0xff] %v5777_v41 }
 0x131   : > { %1423 = vmatpush1.bf16.msra.mxu0 %v5747_v57  ;;  %1476 = vmatpush1.bf16.msra.mxu1 %v5751_v56  ;;  %v586_v57 = vld [vmem:[#allocation6 + $0x370] sm:$0xff]  ;;  %v587_v56 = vld [vmem:[#allocation6 + $0x378] sm:$0xff] }
 0x132   : > { %1424 = vmatprep.subr.bf16.mxu0 %v5753_v46  ;;  %1477 = vmatprep.subr.bf16.mxu1 %v5756_v15  ;;  %v5780_v46 = vcombine.high %v575_v59, %v579_v40  ;;  %v583_v15 = vld [vmem:[#allocation6 + $0x358] sm:$0xff]  ;;  %v5789_v49 = vcombine.high %v582_v33, %v586_v57  ;;  %v5795_v54 = vcombine.low %v582_v33, %v586_v57 }
 0x133   : > { %v5799_v40 = vcombine.low %v583_v15, %v587_v56 }
 0x134   : > { %6442 = vst [vmem:[#allocation90_spill] sm:$0xff] %v5780_v46 }
 0x135   : > { %1425 = vmatpush1.bf16.msra.mxu0 %v5759_v58  ;;  %1478 = vmatpush1.bf16.msra.mxu1 %v5763_v32  ;;  %v594_v58 = vld [vmem:[#allocation6 + $0x3b0] sm:$0xff]  ;;  %v5792_v32 = vcombine.high %v583_v15, %v587_v56 }
 0x136   : > { %1426 = vmatprep.subr.bf16.mxu0 %v5765_v1  ;;  %1479 = vmatprep.subr.bf16.mxu1 %v5768_v4  ;;  %v591_v1 = vld [vmem:[#allocation6 + $0x398] sm:$0xff]  ;;  %v5801_v59 = vcombine.high %v590_v16, %v594_v58  ;;  %v5807_v57 = vcombine.low %v590_v16, %v594_v58 }
 0x137   : > { %v595_v4 = vld [vmem:[#allocation6 + $0x3b8] sm:$0xff]  ;;  %6443 = vst [vmem:[#allocation91_spill] sm:$0xff] %v5792_v32 }
 0x138   : > { %v5811_v33 = vcombine.low %v591_v1, %v595_v4  ;;  %v6479_v16 = vld [vmem:[#allocation53_spill] sm:$0xff] }
 0x139   : > { %1427 = vmatpush1.bf16.msra.mxu0 %v5771_v22  ;;  %1480 = vmatpush1.bf16.msra.mxu1 %v5775_v60  ;;  %v602_v22 = vld [vmem:[#allocation6 + $0x3f0] sm:$0xff]  ;;  %v603_v60 = vld [vmem:[#allocation6 + $0x3f8] sm:$0xff] }
 0x13a   : > { %1428 = vmatprep.subr.bf16.mxu0 %v5777_v41  ;;  %1481 = vmatprep.subr.bf16.mxu1 %v5780_v46  ;;  %v599_v41 = vld [vmem:[#allocation6 + $0x3d8] sm:$0xff]  ;;  %v5804_v46 = vcombine.high %v591_v1, %v595_v4  ;;  %v5813_v15 = vcombine.high %v598_v53, %v602_v22  ;;  %v1511_v4 = vld [vmem:[%s5404_s29 + $0x8] sm:$0xff] }
 0x13b   : > { %v5816_v56 = vcombine.high %v599_v41, %v603_v60  ;;  %v5823_v58 = vcombine.low %v599_v41, %v603_v60  ;;  %v6475_v1 = vld [vmem:[#allocation49_spill] sm:$0xff]  ;;  %v6477_v60 = vld [vmem:[#allocation51_spill] sm:$0xff]  ;;  %v6478_v41 = vld [vmem:[#allocation52_spill] sm:$0xff] }
 0x13d   : > { %1429 = vmatpush1.bf16.msra.mxu0 %v5783_v47  ;;  %1482 = vmatpush1.bf16.msra.mxu1 %v5787_v31 }
 0x13e   : > { %1430 = vmatprep.subr.bf16.mxu0 %v5789_v49  ;;  %1483 = vmatprep.subr.bf16.mxu1 %v5792_v32  ;;  %v5819_v32 = vcombine.low %v598_v53, %v602_v22  ;;  %v6476_v22 = vld [vmem:[#allocation50_spill] sm:$0xff] }
 0x13f   : > { %v6480_v53 = vld [vmem:[#allocation54_spill] sm:$0xff] }
 0x141   : > { %1431 = vmatpush1.bf16.msra.mxu0 %v5795_v54  ;;  %1484 = vmatpush1.bf16.msra.mxu1 %v5799_v40 }
 0x142   : > { %1432 = vmatprep.subr.bf16.mxu0 %v5801_v59  ;;  %1485 = vmatprep.subr.bf16.mxu1 %v5804_v46 }
 0x145   : > { %1433 = vmatpush1.bf16.msra.mxu0 %v5807_v57  ;;  %1486 = vmatpush1.bf16.msra.mxu1 %v5811_v33 }
 0x146   : > { %1434 = vmatprep.subr.bf16.mxu0 %v5813_v15  ;;  %1487 = vmatprep.subr.bf16.mxu1 %v5816_v56 }
 0x149   : > { %1435 = vmatpush1.bf16.msra.mxu0 %v5819_v32  ;;  %1488 = vmatpush1.bf16.msra.mxu1 %v5823_v58 }
 0x14a   : > { %1522 = vmatprep.subr.bf16.mxu0 %v5418_v3  ;;  %1575 = vmatprep.subr.bf16.mxu1 %v5422_v8  ;;  %v1513_v3 = vld [vmem:[%s5404_s29 + $0x18] sm:$0xff]  ;;  %v6444_v8 = vld [vmem:[#allocation18_spill] sm:$0xff] }
 0x14c   : > { %1437 = vmatmul.mubr.bf16.vlgmr.msra.gmra.mrb[8].mxu0 %v5622_v6  ;;  %1490 = vmatmul.mubr.bf16.vlgmr.msra.gmra.mrb[8].mxu1 %v5622_v6  ;;  %v6473_v6 = vld [vmem:[#allocation47_spill] sm:$0xff] }
 0x14d   : > { %1523 = vmatpush1.bf16.msra.mxu0 %v5420_v5  ;;  %1576 = vmatpush1.bf16.msra.mxu1 %v5424_v9  ;;  %v5844_v5 = vpack.c.bf16 %v1513_v3, %v1511_v4  ;;  %v6445_v9 = vld [vmem:[#allocation19_spill] sm:$0xff]  ;;  %v6483_v3 = vld [vmem:[#allocation57_spill] sm:$0xff] }
 0x14e   : > { %1524 = vmatprep.subr.bf16.mxu0 %v5426_v10  ;;  %1577 = vmatprep.subr.bf16.mxu1 %v5429_v14  ;;  %v6446_v10 = vld [vmem:[#allocation20_spill] sm:$0xff]  ;;  %v6447_v14 = vld [vmem:[#allocation21_spill] sm:$0xff]  ;;  %v6481_v4 = vld [vmem:[#allocation55_spill] sm:$0xff] }
 0x14f   : > { %1446 = vmatprep.mubr.bf16.mxu0 %v5636_v48  ;;  %1499 = vmatprep.mubr.bf16.mxu1 %v5636_v48  ;;  %v6474_v48 = vld [vmem:[#allocation48_spill] sm:$0xff] }
 0x151   : > { %1525 = vmatpush1.bf16.msra.mxu0 %v5433_v18  ;;  %1578 = vmatpush1.bf16.msra.mxu1 %v5437_v19  ;;  %v6448_v18 = vld [vmem:[#allocation22_spill] sm:$0xff]  ;;  %v6449_v19 = vld [vmem:[#allocation23_spill] sm:$0xff] }
 0x152   : > { %1526 = vmatprep.subr.bf16.mxu0 %v5439_v20  ;;  %1579 = vmatprep.subr.bf16.mxu1 %v5442_v21  ;;  %v6450_v20 = vld [vmem:[#allocation24_spill] sm:$0xff]  ;;  %v6451_v21 = vld [vmem:[#allocation25_spill] sm:$0xff] }
 0x154   : > { %1447 = vmatmul.mubr.bf16.gmra.mrb[12].mxu0 %v5655_v2  ;;  %1500 = vmatmul.mubr.bf16.gmra.mrb[12].mxu1 %v5655_v2 }
 0x155   : > { %1527 = vmatpush1.bf16.msra.mxu0 %v5445_v26  ;;  %1580 = vmatpush1.bf16.msra.mxu1 %v5449_v27  ;;  %v6452_v26 = vld [vmem:[#allocation26_spill] sm:$0xff]  ;;  %v6453_v27 = vld [vmem:[#allocation27_spill] sm:$0xff] }
 0x156   : > { %1528 = vmatprep.subr.bf16.mxu0 %v5451_v28  ;;  %1581 = vmatprep.subr.bf16.mxu1 %v5454_v29  ;;  %v6454_v28 = vld [vmem:[#allocation28_spill] sm:$0xff]  ;;  %v6455_v29 = vld [vmem:[#allocation29_spill] sm:$0xff] }
 0x157   : > { %1554 = vmatprep.mubr.bf16.mxu0 %v5844_v5  ;;  %1607 = vmatprep.mubr.bf16.mxu1 %v5844_v5 }
 0x159   : > { %1529 = vmatpush1.bf16.msra.mxu0 %v5457_v34  ;;  %1582 = vmatpush1.bf16.msra.mxu1 %v5461_v35  ;;  %v6456_v34 = vld [vmem:[#allocation30_spill] sm:$0xff]  ;;  %v6457_v35 = vld [vmem:[#allocation31_spill] sm:$0xff] }
 0x15a   : > { %1530 = vmatprep.subr.bf16.mxu0 %v5463_v36  ;;  %1583 = vmatprep.subr.bf16.mxu1 %v5466_v37  ;;  %v6458_v36 = vld [vmem:[#allocation32_spill] sm:$0xff]  ;;  %v6459_v37 = vld [vmem:[#allocation33_spill] sm:$0xff] }
 0x15d   : > { %1531 = vmatpush1.bf16.msra.mxu0 %v5469_v42  ;;  %1584 = vmatpush1.bf16.msra.mxu1 %v5473_v43  ;;  %v6460_v42 = vld [vmem:[#allocation34_spill] sm:$0xff]  ;;  %v6461_v43 = vld [vmem:[#allocation35_spill] sm:$0xff] }
 0x15e   : > { %1532 = vmatprep.subr.bf16.mxu0 %v5475_v44  ;;  %1585 = vmatprep.subr.bf16.mxu1 %v5478_v45  ;;  %v6462_v44 = vld [vmem:[#allocation36_spill] sm:$0xff]  ;;  %v6463_v45 = vld [vmem:[#allocation37_spill] sm:$0xff] }
 0x161   : > { %1533 = vmatpush1.bf16.msra.mxu0 %v5481_v50  ;;  %1586 = vmatpush1.bf16.msra.mxu1 %v5485_v51  ;;  %v1510_v50 = vld [vmem:[%s5404_s29] sm:$0xff]  ;;  %v1512_v51 = vld [vmem:[%s5404_s29 + $0x10] sm:$0xff] }
 0x162   : > { %1534 = vmatprep.subr.bf16.mxu0 %v5487_v52  ;;  %1587 = vmatprep.subr.bf16.mxu1 %v5492_v55  ;;  %v6464_v52 = vld [vmem:[#allocation38_spill] sm:$0xff]  ;;  %v6465_v55 = vld [vmem:[#allocation39_spill] sm:$0xff] }
 0x165   : > { %1535 = vmatpush1.bf16.msra.mxu0 %v5497_v61  ;;  %1588 = vmatpush1.bf16.msra.mxu1 %v5502_v62  ;;  %v6466_v61 = vld [vmem:[#allocation40_spill] sm:$0xff]  ;;  %v5904_v62 = vpack.c.bf16 %v1512_v51, %v1510_v50  ;;  %v6507_v51 = vld [vmem:[#allocation81_spill] sm:$0xff] }
 0x166   : > { %1536 = vmatprep.subr.bf16.mxu0 %v5504_v63  ;;  %1589 = vmatprep.subr.bf16.mxu1 %v5507_v0  ;;  %v1515_v63 = vld [vmem:[%s5404_s29 + $0x28] sm:$0xff]  ;;  %v1517_v0 = vld [vmem:[%s5404_s29 + $0x38] sm:$0xff]  ;;  %v6506_v50 = vld [vmem:[#allocation80_spill] sm:$0xff] }
 0x169   : > { %1537 = vmatpush1.bf16.msra.mxu0 %v5511_v7  ;;  %1590 = vmatpush1.bf16.msra.mxu1 %v5515_v11  ;;  %v6467_v7 = vld [vmem:[#allocation41_spill] sm:$0xff]  ;;  %v6468_v11 = vld [vmem:[#allocation42_spill] sm:$0xff] }
 0x16a   : > { %1538 = vmatprep.subr.bf16.mxu0 %v5517_v12  ;;  %1591 = vmatprep.subr.bf16.mxu1 %v5520_v13  ;;  %v6469_v12 = vld [vmem:[#allocation43_spill] sm:$0xff]  ;;  %v6470_v13 = vld [vmem:[#allocation44_spill] sm:$0xff] }
 0x16d   : > { %1539 = vmatpush1.bf16.msra.mxu0 %v5523_v23  ;;  %1592 = vmatpush1.bf16.msra.mxu1 %v5527_v24  ;;  %v5912_v23 = vpack.c.bf16 %v1517_v0, %v1515_v63  ;;  %v6471_v24 = vld [vmem:[#allocation45_spill] sm:$0xff]  ;;  %v6512_v0 = vld [vmem:[#allocation86_spill] sm:$0xff] }
 0x16e   : > { %1540 = vmatprep.subr.bf16.mxu0 %v5529_v25  ;;  %1593 = vmatprep.subr.bf16.mxu1 %v5532_v30  ;;  %v1514_v25 = vld [vmem:[%s5404_s29 + $0x20] sm:$0xff]  ;;  %v1516_v30 = vld [vmem:[%s5404_s29 + $0x30] sm:$0xff]  ;;  %v6511_v63 = vld [vmem:[#allocation85_spill] sm:$0xff] }
 0x16f   : > { %v5923_v2 = vpack.c.bf16 %v1516_v30, %v1514_v25  ;;  %v4668_v25 = vld [vmem:[#allocation7 + $0x58] sm:$0xff]  }
 0x171   : > { %1541 = vmatpush1.bf16.msra.mxu0 %v5535_v39  ;;  %1594 = vmatpush1.bf16.msra.mxu1 %v6444_v8  ;;  %v6472_v39 = vld [vmem:[#allocation46_spill] sm:$0xff] }
 0x172   : > { %1542 = vmatprep.subr.bf16.mxu0 %v6445_v9  ;;  %1595 = vmatprep.subr.bf16.mxu1 %v6446_v10  ;;  %v6484_v8 = vld [vmem:[#allocation58_spill] sm:$0xff]  ;;  %v6485_v9 = vld [vmem:[#allocation59_spill] sm:$0xff]  ;;  %v6486_v10 = vld [vmem:[#allocation60_spill] sm:$0xff] }
 0x175   : > { %1543 = vmatpush1.bf16.msra.mxu0 %v6447_v14  ;;  %1596 = vmatpush1.bf16.msra.mxu1 %v6448_v18  ;;  %v6487_v14 = vld [vmem:[#allocation61_spill] sm:$0xff]  ;;  %v6488_v18 = vld [vmem:[#allocation62_spill] sm:$0xff] }
 0x176   : > { %1544 = vmatprep.subr.bf16.mxu0 %v6449_v19  ;;  %1597 = vmatprep.subr.bf16.mxu1 %v6450_v20  ;;  %v6489_v19 = vld [vmem:[#allocation63_spill] sm:$0xff]  ;;  %v6490_v20 = vld [vmem:[#allocation64_spill] sm:$0xff] }
 0x179   : > { %1545 = vmatpush1.bf16.msra.mxu0 %v6451_v21  ;;  %1598 = vmatpush1.bf16.msra.mxu1 %v6452_v26  ;;  %v6493_v21 = vld [vmem:[#allocation67_spill] sm:$0xff]  ;;  %v6494_v26 = vld [vmem:[#allocation68_spill] sm:$0xff] }
 0x17a   : > { %1546 = vmatprep.subr.bf16.mxu0 %v6453_v27  ;;  %1599 = vmatprep.subr.bf16.mxu1 %v6454_v28  ;;  %v6495_v27 = vld [vmem:[#allocation69_spill] sm:$0xff]  ;;  %v6496_v28 = vld [vmem:[#allocation70_spill] sm:$0xff] }
 0x17d   : > { %1547 = vmatpush1.bf16.msra.mxu0 %v6455_v29  ;;  %1600 = vmatpush1.bf16.msra.mxu1 %v6456_v34  ;;  %v6497_v29 = vld [vmem:[#allocation71_spill] sm:$0xff]  ;;  %v6498_v34 = vld [vmem:[#allocation72_spill] sm:$0xff] }
 0x17e   : > { %1548 = vmatprep.subr.bf16.mxu0 %v6457_v35  ;;  %1601 = vmatprep.subr.bf16.mxu1 %v6458_v36  ;;  %v6499_v35 = vld [vmem:[#allocation73_spill] sm:$0xff]  ;;  %v6500_v36 = vld [vmem:[#allocation74_spill] sm:$0xff] }
 0x181   : > { %1549 = vmatpush1.bf16.msra.mxu0 %v6459_v37  ;;  %1602 = vmatpush1.bf16.msra.mxu1 %v6460_v42  ;;  %v6501_v37 = vld [vmem:[#allocation75_spill] sm:$0xff]  ;;  %v6502_v42 = vld [vmem:[#allocation76_spill] sm:$0xff] }
 0x182   : > { %1550 = vmatprep.subr.bf16.mxu0 %v6461_v43  ;;  %1603 = vmatprep.subr.bf16.mxu1 %v6462_v44  ;;  %v6503_v43 = vld [vmem:[#allocation77_spill] sm:$0xff]  ;;  %v6504_v44 = vld [vmem:[#allocation78_spill] sm:$0xff] }
 0x185   : > { %1551 = vmatpush1.bf16.msra.mxu0 %v6463_v45  ;;  %1604 = vmatpush1.bf16.msra.mxu1 %v6464_v52  ;;  %v6505_v45 = vld [vmem:[#allocation79_spill] sm:$0xff]  ;;  %v6508_v52 = vld [vmem:[#allocation82_spill] sm:$0xff] }
 0x186   : > { %1552 = vmatprep.subr.bf16.mxu0 %v6465_v55  ;;  %1605 = vmatprep.subr.bf16.mxu1 %v6466_v61  ;;  %v6509_v55 = vld [vmem:[#allocation83_spill] sm:$0xff]  ;;  %v6510_v61 = vld [vmem:[#allocation84_spill] sm:$0xff] }
 0x189   : > { %1553 = vmatpush1.bf16.msra.mxu0 %v6467_v7  ;;  %1606 = vmatpush1.bf16.msra.mxu1 %v6468_v11  ;;  %v6513_v7 = vld [vmem:[#allocation87_spill] sm:$0xff]  ;;  %v6514_v11 = vld [vmem:[#allocation88_spill] sm:$0xff] }
 0x18a   : > { %1628 = vmatprep.subr.bf16.mxu0 %v6469_v12  ;;  %1681 = vmatprep.subr.bf16.mxu1 %v6470_v13  ;;  %v6515_v12 = vld [vmem:[#allocation89_spill] sm:$0xff]  ;;  %v6516_v13 = vld [vmem:[#allocation90_spill] sm:$0xff] }
 0x18c   : > { %1555 = vmatmul.mubr.bf16.vlgmr.msra.gmra.mrb[16].mxu0 %v5904_v62  ;;  %1608 = vmatmul.mubr.bf16.vlgmr.msra.gmra.mrb[16].mxu1 %v5904_v62 }
 0x18d   : > { %1629 = vmatpush1.bf16.msra.mxu0 %v6471_v24  ;;  %1682 = vmatpush1.bf16.msra.mxu1 %v6472_v39  ;;  %v6517_v24 = vld [vmem:[#allocation91_spill] sm:$0xff]  ;;  %v4670_v39 = vld [vmem:[#allocation7 + $0x18] sm:$0xff]  }
 0x18e   : > { %1630 = vmatprep.subr.bf16.mxu0 %v6473_v6  ;;  %1683 = vmatprep.subr.bf16.mxu1 %v6474_v48  ;;  %v4672_v6 = vld [vmem:[#allocation7 + $0x60] sm:$0xff]  }
 0x18f   : > { %1564 = vmatprep.mubr.bf16.mxu0 %v5912_v23  ;;  %1617 = vmatprep.mubr.bf16.mxu1 %v5912_v23  ;;  %v4673_v48 = vld [vmem:[#allocation7 + $0xe0] sm:$0xff]  }
 0x191   : > { %1631 = vmatpush1.bf16.msra.mxu0 %v5643_v38  ;;  %1684 = vmatpush1.bf16.msra.mxu1 %v6475_v1  ;;  %v6482_v38 = vld [vmem:[#allocation56_spill] sm:$0xff] }
 0x192   : > { %1632 = vmatprep.subr.bf16.mxu0 %v6476_v22  ;;  %1685 = vmatprep.subr.bf16.mxu1 %v6477_v60  ;;  %v4674_v22 = vld [vmem:[#allocation7 + $0x20] sm:$0xff]  }
 0x193   : > { %v6000_v60 = vld [vmem:[%s6260_s3] sm:$0xff] }
 0x194   : > { %1565 = vmatmul.mubr.bf16.gmra.mrb[20].mxu0 %v5923_v2  ;;  %1618 = vmatmul.mubr.bf16.gmra.mrb[20].mxu1 %v5923_v2 }
 0x195   : > { %1633 = vmatpush1.bf16.msra.mxu0 %v6478_v41  ;;  %1686 = vmatpush1.bf16.msra.mxu1 %v6479_v16  ;;  %v4675_v16 = vld [vmem:[#allocation7 + $0xa0] sm:$0xff]  }
 0x196   : > { %1634 = vmatprep.subr.bf16.mxu0 %v6480_v53  ;;  %1687 = vmatprep.subr.bf16.mxu1 %v6481_v4  ;;  %v4676_v4 = vld [vmem:[#allocation7 + $0x68] sm:$0xff]  }
 0x197   : > { %1660 = vmatprep.mubr.bf16.mxu0 %v5844_v5  ;;  %1713 = vmatprep.mubr.bf16.mxu1 %v5844_v5  ;;  %v6491_v5 = vld [vmem:[#allocation65_spill] sm:$0xff] }
 0x199   : > { %1635 = vmatpush1.bf16.msra.mxu0 %v5672_v17  ;;  %1688 = vmatpush1.bf16.msra.mxu1 %v6482_v38  ;;  %v6492_v17 = vld [vmem:[#allocation66_spill] sm:$0xff]  ;;  %v4677_v38 = vld [vmem:[#allocation7 + $0xe8] sm:$0xff]  }
 0x19a   : > { %1636 = vmatprep.subr.bf16.mxu0 %v6483_v3  ;;  %1689 = vmatprep.subr.bf16.mxu1 %v6484_v8 }
 0x19d   : > { %1637 = vmatpush1.bf16.msra.mxu0 %v6485_v9  ;;  %1690 = vmatpush1.bf16.msra.mxu1 %v6486_v10  ;;  %v4678_v10 = vld [vmem:[#allocation7 + $0x28] sm:$0xff]  }
 0x19e   : > { %1638 = vmatprep.subr.bf16.mxu0 %v6487_v14  ;;  %1691 = vmatprep.subr.bf16.mxu1 %v6488_v18  ;;  %v4679_v18 = vld [vmem:[#allocation7 + $0xa8] sm:$0xff]  }
 0x1a1   : > { %1639 = vmatpush1.bf16.msra.mxu0 %v6489_v19  ;;  %1692 = vmatpush1.bf16.msra.mxu1 %v6490_v20  ;;  %v4680_v19 = vld [vmem:[#allocation7 + $0x70] sm:$0xff]  }
 0x1a2   : > { %1640 = vmatprep.subr.bf16.mxu0 %v6491_v5  ;;  %1693 = vmatprep.subr.bf16.mxu1 %v6492_v17  ;;  %v4681_v5 = vld [vmem:[#allocation7 + $0xf0] sm:$0xff]  }
 0x1a5   : > { %1641 = vmatpush1.bf16.msra.mxu0 %v6493_v21  ;;  %1694 = vmatpush1.bf16.msra.mxu1 %v6494_v26 }
 0x1a6   : > { %1642 = vmatprep.subr.bf16.mxu0 %v6495_v27  ;;  %1695 = vmatprep.subr.bf16.mxu1 %v6496_v28 }
 0x1a9   : > { %1643 = vmatpush1.bf16.msra.mxu0 %v6497_v29  ;;  %1696 = vmatpush1.bf16.msra.mxu1 %v6498_v34 }
 0x1aa   : > { %1644 = vmatprep.subr.bf16.mxu0 %v6499_v35  ;;  %1697 = vmatprep.subr.bf16.mxu1 %v6500_v36  ;;  %v4682_v35 = vld [vmem:[#allocation7 + $0x30] sm:$0xff]  }
 0x1ab   : > { %v4683_v36 = vld [vmem:[#allocation7 + $0xb0] sm:$0xff]  }
 0x1ad   : > { %1645 = vmatpush1.bf16.msra.mxu0 %v6501_v37  ;;  %1698 = vmatpush1.bf16.msra.mxu1 %v6502_v42  ;;  %v4684_v37 = vld [vmem:[#allocation7 + $0x78] sm:$0xff]  }
 0x1ae   : > { %1646 = vmatprep.subr.bf16.mxu0 %v6503_v43  ;;  %1699 = vmatprep.subr.bf16.mxu1 %v6504_v44 }
 0x1b1   : > { %1647 = vmatpush1.bf16.msra.mxu0 %v6505_v45  ;;  %1700 = vmatpush1.bf16.msra.mxu1 %v6506_v50 }
 0x1b2   : > { %1648 = vmatprep.subr.bf16.mxu0 %v6507_v51  ;;  %1701 = vmatprep.subr.bf16.mxu1 %v6508_v52  ;;  %v4685_v51 = vld [vmem:[#allocation7 + $0xf8] sm:$0xff]  }
 0x1b5   : > { %1649 = vmatpush1.bf16.msra.mxu0 %v6509_v55  ;;  %1702 = vmatpush1.bf16.msra.mxu1 %v6510_v61 }
 0x1b6   : > { %1650 = vmatprep.subr.bf16.mxu0 %v6511_v63  ;;  %1703 = vmatprep.subr.bf16.mxu1 %v6512_v0 }
 0x1b9   : > { %1651 = vmatpush1.bf16.msra.mxu0 %v6513_v7  ;;  %1704 = vmatpush1.bf16.msra.mxu1 %v6514_v11 }
 0x1ba   : > { %1652 = vmatprep.subr.bf16.mxu0 %v6515_v12  ;;  %1705 = vmatprep.subr.bf16.mxu1 %v6516_v13  ;;  %v4686_v13 = vld [vmem:[#allocation7 + $0x38] sm:$0xff]  }
 0x1bd   : > { %1653 = vmatpush1.bf16.msra.mxu0 %v5783_v47  ;;  %1706 = vmatpush1.bf16.msra.mxu1 %v5787_v31  ;;  %v4656_v47 = vld [vmem:[#allocation7 + $0x40] sm:$0xff]  }
 0x1be   : > { %1654 = vmatprep.subr.bf16.mxu0 %v5789_v49  ;;  %1707 = vmatprep.subr.bf16.mxu1 %v6517_v24  ;;  %v4657_v31 = vld [vmem:[#allocation7 + $0xc0] sm:$0xff]  }
 0x1bf   : > { %v4658_v49 = vld [vmem:[#allocation7] sm:$0xff]  }
 0x1c1   : > { %1655 = vmatpush1.bf16.msra.mxu0 %v5795_v54  ;;  %1708 = vmatpush1.bf16.msra.mxu1 %v5799_v40  ;;  %v4659_v54 = vld [vmem:[#allocation7 + $0x80] sm:$0xff]   ;;  %v4660_v40 = vld [vmem:[#allocation7 + $0x48] sm:$0xff]  }
 0x1c2   : > { %1656 = vmatprep.subr.bf16.mxu0 %v5801_v59  ;;  %1709 = vmatprep.subr.bf16.mxu1 %v5804_v46  ;;  %v4661_v46 = vld [vmem:[#allocation7 + $0xc8] sm:$0xff]  }
 0x1c3   : > { %v4662_v59 = vld [vmem:[#allocation7 + $0x8] sm:$0xff]  }
 0x1c5   : > { %1657 = vmatpush1.bf16.msra.mxu0 %v5807_v57  ;;  %1710 = vmatpush1.bf16.msra.mxu1 %v5811_v33  ;;  %v4663_v57 = vld [vmem:[#allocation7 + $0x88] sm:$0xff]   ;;  %v4664_v33 = vld [vmem:[#allocation7 + $0x50] sm:$0xff]  }
 0x1c6   : > { %1658 = vmatprep.subr.bf16.mxu0 %v5813_v15  ;;  %1711 = vmatprep.subr.bf16.mxu1 %v5816_v56  ;;  %v618_v15 = vlaneseq  ;;  %v4666_v56 = vld [vmem:[#allocation7 + $0x10] sm:$0xff]  }
 0x1c8   : > { %v5993_v30 = vshrl.u32 %v618_v15, 7 }
 0x1c9   : > { %1659 = vmatpush1.bf16.msra.mxu0 %v5819_v32  ;;  %1712 = vmatpush1.bf16.msra.mxu1 %v5823_v58  ;;  %v4665_v32 = vld [vmem:[#allocation7 + $0xd0] sm:$0xff]  }
 0x1ca   : > { %4231 = vmatprep.subr.bf16.mxu0 %v4656_v47  ;;  %4259 = vmatprep.subr.bf16.mxu1 %v4657_v31  ;;  %v4667_v58 = vld [vmem:[#allocation7 + $0x90] sm:$0xff]   ;;  %v620_v1 = vsub.s32 0, %v5993_v30  ;;  %v628_v41 = vsub.s32 2, %v5993_v30  ;;  %v632_v53 = vsub.s32 3, %v5993_v30  ;;  %v4687_v31 = vld [vmem:[#allocation7 + $0xb8] sm:$0xff]  }
 0x1cc   : > { %1661 = vmatmul.mubr.bf16.vlgmr.msra.gmra.mrb[24].mxu0 %v5904_v62  ;;  %1714 = vmatmul.mubr.bf16.vlgmr.msra.gmra.mrb[24].mxu1 %v5904_v62  ;;  %v4669_v62 = vld [vmem:[#allocation7 + $0xd8] sm:$0xff]   ;;  %v6006_v3 = vrot.slane %v6000_v60, %v620_v1  ;;  %v6009_v8 = vrot.slane %v6000_v60, %v628_v41  ;;  %v6015_v14 = vrot.slane %v6000_v60, %v632_v53 }
 0x1cd   : > { %4232 = vmatpush3.bf16.msra.mxu0 %v4658_v49  ;;  %4260 = vmatpush3.bf16.msra.mxu1 %v4659_v54  ;;  %v4688_v54 = vld [vmem:[#allocation7 + $0x140] sm:$0xff]  }
 0x1ce   : > { %4233 = vmatprep.subr.bf16.mxu0 %v4660_v40  ;;  %4261 = vmatprep.subr.bf16.mxu1 %v4661_v46 }
 0x1cf   : > { %1670 = vmatprep.mubr.bf16.mxu0 %v5912_v23  ;;  %1723 = vmatprep.mubr.bf16.mxu1 %v5912_v23  ;;  %v4671_v23 = vld [vmem:[#allocation7 + $0x98] sm:$0xff]  }
 0x1d1   : > { %4234 = vmatpush3.bf16.msra.mxu0 %v4662_v59  ;;  %4262 = vmatpush3.bf16.msra.mxu1 %v4663_v57  ;;  %v4689_v59 = vld [vmem:[#allocation7 + $0x1c0] sm:$0xff]  }
 0x1d2   : > { %4235 = vmatprep.subr.bf16.mxu0 %v4664_v33  ;;  %4263 = vmatprep.subr.bf16.mxu1 %v4665_v32 }
 0x1d4   : > { %1671 = vmatmul.mubr.bf16.gmra.mrb[28].mxu0 %v5923_v2  ;;  %1724 = vmatmul.mubr.bf16.gmra.mrb[28].mxu1 %v5923_v2  ;;  %v624_v2 = vsub.s32 1, %v5993_v30 }
 0x1d5   : > { %4236 = vmatpush3.bf16.msra.mxu0 %v4666_v56  ;;  %4264 = vmatpush3.bf16.msra.mxu1 %v4667_v58 }
 0x1d6   : > { %4237 = vmatprep.subr.bf16.mxu0 %v4668_v25  ;;  %4265 = vmatprep.subr.bf16.mxu1 %v4669_v62  ;;  %v6012_v9 = vrot.slane %v6000_v60, %v624_v2 }
 0x1d9   : > { %4238 = vmatpush3.bf16.msra.mxu0 %v4670_v39  ;;  %4266 = vmatpush3.bf16.msra.mxu1 %v4671_v23 }
 0x1da   : > { %4239 = vmatprep.subr.bf16.mxu0 %v4672_v6  ;;  %4267 = vmatprep.subr.bf16.mxu1 %v4673_v48 }
 0x1dd   : > { %4240 = vmatpush3.bf16.msra.mxu0 %v4674_v22  ;;  %4268 = vmatpush3.bf16.msra.mxu1 %v4675_v16 }
 0x1de   : > { %4241 = vmatprep.subr.bf16.mxu0 %v4676_v4  ;;  %4269 = vmatprep.subr.bf16.mxu1 %v4677_v38  ;;  %v4690_v4 = vld [vmem:[#allocation7 + $0x100] sm:$0xff]  }
 0x1df   : > { %v1332_v20 = vpop.f32.mrb[0].mxu0  ;;  %v1385_v21 = vpop.f32.mrb[0].mxu1  ;;  %v4691_v38 = vld [vmem:[#allocation7 + $0x180] sm:$0xff]  }
 0x1e0   : > { %v1333_v17 = vadd.f32 %v1332_v20, %v6006_v3  ;;  %v1334_v26 = vpop.f32.mrb[1].mxu0  ;;  %v1386_v27 = vadd.f32 %v1385_v21, %v6009_v8  ;;  %v1387_v29 = vpop.f32.mrb[1].mxu1  ;;  %v4693_v20 = vld [vmem:[#allocation7 + $0x1c8] sm:$0xff]  }
 0x1e1   : > { %v1335_v28 = vadd.f32 %v1334_v26, %v6012_v9  ;;  %v1336_v34 = vpop.f32.mrb[2].mxu0  ;;  %4242 = vmatpush3.bf16.msra.mxu0 %v4678_v10  ;;  %v1388_v43 = vadd.f32 %v1387_v29, %v6015_v14  ;;  %v1389_v45 = vpop.f32.mrb[2].mxu1  ;;  %4270 = vmatpush3.bf16.msra.mxu1 %v4679_v18  ;;  %v4692_v10 = vld [vmem:[#allocation7 + $0x148] sm:$0xff]  }
 0x1e2   : > { %vm1734_vm0 = vcmp.gt.f32.partialorder %v1333_v17, 0.0  ;;  %v1766_v42 = vmul.f32 0.2, %v1333_v17  ;;  %v1337_v44 = vadd.f32 %v1336_v34, %v6006_v3  ;;  %v1338_v50 = vpop.f32.mrb[3].mxu0  ;;  %4243 = vmatprep.subr.bf16.mxu0 %v4680_v19  ;;  %vm1736_vm1 = vcmp.gt.f32.partialorder %v1386_v27, 0.0  ;;  %4271 = vmatprep.subr.bf16.mxu1 %v4681_v5  ;;  %v1391_v63 = vpop.f32.mrb[3].mxu1 }
 0x1e3   : > { %v1768_v52 = vmul.f32 0.2, %v1386_v27  ;;  %vm1735_vm2 = vcmp.gt.f32.partialorder %v1335_v28, 0.0  ;;  %v1767_v55 = vmul.f32 0.2, %v1335_v28  ;;  %v1390_v11 = vadd.f32 %v1389_v45, %v6009_v8  ;;  %v4696_v45 = vld [vmem:[#allocation7 + $0x150] sm:$0xff]  }
 0x1e4   : > { %v6022_v61 = vsel %vm1734_vm0, %v1333_v17, %v1766_v42  ;;  %vm1742_vm3 = vcmp.gt.f32.partialorder %v1337_v44, 0.0  ;;  %v1769_v0 = vmul.f32 0.2, %v1388_v43  ;;  %v1774_v7 = vmul.f32 0.2, %v1337_v44 }
 0x1e5   : > { %v1339_v12 = vadd.f32 %v1338_v50, %v6012_v9  ;;  %4244 = vmatpush3.bf16.msra.mxu0 %v4682_v35  ;;  %v1800_v24 = vsel %vm1736_vm1, %v1386_v27, %v1768_v52  ;;  %vm1737_vm4 = vcmp.gt.f32.partialorder %v1388_v43, 0.0  ;;  %v1392_v47 = vadd.f32 %v1391_v63, %v6015_v14  ;;  %4272 = vmatpush3.bf16.msra.mxu1 %v4683_v36  ;;  %v4694_v27 = vld [vmem:[#allocation7 + $0x108] sm:$0xff]   ;;  %v4697_v50 = vld [vmem:[#allocation7 + $0x1d0] sm:$0xff]  }
 0x1e6   : > { %4245 = vmatprep.subr.bf16.mxu0 %v4684_v37  ;;  %v1799_v49 = vsel %vm1735_vm2, %v1335_v28, %v1767_v55  ;;  %v1806_v40 = vsel %vm1742_vm3, %v1337_v44, %v1774_v7  ;;  %vm1744_vm5 = vcmp.gt.f32.partialorder %v1390_v11, 0.0  ;;  %v1776_v46 = vmul.f32 0.2, %v1390_v11  ;;  %4273 = vmatprep.subr.bf16.mxu1 %v4685_v51  ;;  %v4695_v28 = vld [vmem:[#allocation7 + $0x188] sm:$0xff]  }
 0x1e7   : > { %vm1743_vm6 = vcmp.gt.f32.partialorder %v1339_v12, 0.0  ;;  %v1342_v57 = vpop.f32.mrb[4].mxu0  ;;  %v1926_v33 = vpack.c.bf16 %v1806_v40, %v6022_v61  ;;  %v1775_v32 = vmul.f32 0.2, %v1339_v12  ;;  %vm1745_vm7 = vcmp.gt.f32.partialorder %v1392_v47, 0.0  ;;  %v1395_v6 = vpop.f32.mrb[4].mxu1 }
 0x1e8   : > { %v1777_v15 = vmul.f32 0.2, %v1392_v47  ;;  %v1344_v56 = vpop.f32.mrb[5].mxu0  ;;  %v1808_v58 = vsel %vm1744_vm5, %v1390_v11, %v1776_v46  ;;  %v1801_v25 = vsel %vm1737_vm4, %v1388_v43, %v1769_v0  ;;  %v1343_v62 = vadd.f32 %v1342_v57, %v6006_v3  ;;  %v1397_v2 = vpop.f32.mrb[5].mxu1  ;;  %v4702_v57 = vld [vmem:[#allocation7 + $0x118] sm:$0xff]  }
 0x1e9   : > { %4246 = vmatpush3.bf16.msra.mxu0 %v4686_v13  ;;  %v1345_v39 = vadd.f32 %v1344_v56, %v6012_v9  ;;  %v1346_v23 = vpop.f32.mrb[6].mxu0  ;;  %v1928_v48 = vpack.c.bf16 %v1808_v58, %v1800_v24  ;;  %4274 = vmatpush3.bf16.msra.mxu1 %v4687_v31  ;;  %v1807_v1 = vsel %vm1743_vm6, %v1339_v12, %v1775_v32  ;;  %v1399_v18 = vpop.f32.mrb[6].mxu1  ;;  %v4698_v13 = vld [vmem:[#allocation7 + $0x110] sm:$0xff]   ;;  %v4704_v32 = vld [vmem:[#allocation7 + $0x160] sm:$0xff]  }
 0x1ea   : > { %v1809_v22 = vsel %vm1745_vm7, %v1392_v47, %v1777_v15  ;;  %4287 = vmatprep.subr.bf16.mxu0 %v4688_v54  ;;  %v1348_v41 = vpop.f32.mrb[7].mxu0  ;;  %v1927_v16 = vpack.c.bf16 %v1807_v1, %v1799_v49  ;;  %4315 = vmatprep.subr.bf16.mxu1 %v4689_v59  ;;  %vm1750_vm8 = vcmp.gt.f32.partialorder %v1343_v62, 0.0  ;;  %v1782_v19 = vmul.f32 0.2, %v1343_v62  ;;  %v1401_v26 = vpop.f32.mrb[7].mxu1  ;;  %v4699_v24 = vld [vmem:[#allocation7 + $0x190] sm:$0xff]  }
 0x1eb   : > { %v1929_v53 = vpack.c.bf16 %v1809_v22, %v1801_v25  ;;  %v1783_v5 = vmul.f32 0.2, %v1345_v39  ;;  %v1347_v17 = vadd.f32 %v1346_v23, %v6006_v3  ;;  %v1396_v21 = vadd.f32 %v1395_v6, %v6009_v8  ;;  %v4700_v49 = vld [vmem:[#allocation7 + $0x158] sm:$0xff]   ;;  %v4705_v15 = vld [vmem:[#allocation7 + $0x1e0] sm:$0xff]   ;;  %v4708_v25 = vld [vmem:[#allocation7 + $0x168] sm:$0xff]  }
 0x1ec   : > { %2493 = vmatprep.mubr.bf16.mxu0 %v1927_v16  ;;  %vm1751_vm9 = vcmp.gt.f32.partialorder %v1345_v39, 0.0  ;;  %v1349_v29 = vadd.f32 %v1348_v41, %v6012_v9  ;;  %v1398_v34 = vadd.f32 %v1397_v2, %v6015_v14  ;;  %v1400_v35 = vadd.f32 %v1399_v18, %v6009_v8  ;;  %v4701_v54 = vld [vmem:[#allocation7 + $0x1d8] sm:$0xff]   ;;  %v4706_v56 = vld [vmem:[#allocation7 + $0x120] sm:$0xff]   ;;  %v4711_v23 = vld [vmem:[#allocation7 + $0x1a8] sm:$0xff]  }
 0x1ed   : > { %2542 = vmatprep.mubr.bf16.mxu1 %v1929_v53  ;;  %2494 = vmatmul.mubr.bf16.vlgmr.msra.gmra.mrb[32].mxu0 %v1926_v33  ;;  %vm1758_vm10 = vcmp.gt.f32.partialorder %v1347_v17, 0.0  ;;  %v1790_v36 = vmul.f32 0.2, %v1347_v17  ;;  %vm1752_vm11 = vcmp.gt.f32.partialorder %v1396_v21, 0.0  ;;  %v1784_v37 = vmul.f32 0.2, %v1396_v21 }
 0x1ee   : > { %2543 = vmatmul.mubr.bf16.vlgmr.msra.gmra.mrb[32].mxu1 %v1928_v48  ;;  %4288 = vmatpush3.bf16.msra.mxu0 %v4690_v4  ;;  %vm1759_vm12 = vcmp.gt.f32.partialorder %v1349_v29, 0.0  ;;  %v1791_v42 = vmul.f32 0.2, %v1349_v29  ;;  %vm1753_vm13 = vcmp.gt.f32.partialorder %v1398_v34, 0.0  ;;  %v1785_v43 = vmul.f32 0.2, %v1398_v34 }
 0x1ef   : > { %4316 = vmatpush3.bf16.msra.mxu1 %v4691_v38  ;;  %4289 = vmatprep.subr.bf16.mxu0 %v4692_v10  ;;  %vm1760_vm14 = vcmp.gt.f32.partialorder %v1400_v35, 0.0  ;;  %v1792_v44 = vmul.f32 0.2, %v1400_v35  ;;  %v1402_v51 = vadd.f32 %v1401_v26, %v6015_v14  ;;  %v1815_v52 = vsel %vm1751_vm9, %v1345_v39, %v1783_v5  ;;  %v4703_v33 = vld [vmem:[#allocation7 + $0x198] sm:$0xff]   ;;  %v4707_v58 = vld [vmem:[#allocation7 + $0x1a0] sm:$0xff]   ;;  %v4710_v39 = vld [vmem:[#allocation7 + $0x128] sm:$0xff]  }
 0x1f0   : > { %4317 = vmatprep.subr.bf16.mxu1 %v4693_v20  ;;  %v1823_v55 = vsel %vm1759_vm12, %v1349_v29, %v1791_v42  ;;  %v1814_v61 = vsel %vm1750_vm8, %v1343_v62, %v1782_v19  ;;  %v1822_v63 = vsel %vm1758_vm10, %v1347_v17, %v1790_v36  ;;  %v1817_v0 = vsel %vm1753_vm13, %v1398_v34, %v1785_v43  ;;  %v4709_v62 = vld [vmem:[#allocation7 + $0x1e8] sm:$0xff]   ;;  %v4712_v6 = vld [vmem:[#allocation7 + $0x170] sm:$0xff]   ;;  %v4716_v41 = vld [vmem:[#allocation7 + $0x178] sm:$0xff]  }
 0x1f1   : > { %vm1761_vm15 = vcmp.gt.f32.partialorder %v1402_v51, 0.0  ;;  %v1793_v7 = vmul.f32 0.2, %v1402_v51  ;;  %v1935_v11 = vpack.c.bf16 %v1823_v55, %v1815_v52  ;;  %v1934_v12 = vpack.c.bf16 %v1822_v63, %v1814_v61  ;;  %v4713_v48 = vld [vmem:[#allocation7 + $0x1f0] sm:$0xff]   ;;  %v4717_v2 = vld [vmem:[#allocation7 + $0x1f8] sm:$0xff]   ;;  %v4720_v4 = vld [vmem:[#allocation9 + $0x40] sm:$0xff]  }
 0x1f2   : > { %4290 = vmatpush3.bf16.msra.mxu0 %v4694_v27  ;;  %v1816_v47 = vsel %vm1752_vm11, %v1396_v21, %v1784_v37  ;;  %v1824_v31 = vsel %vm1760_vm14, %v1400_v35, %v1792_v44  ;;  %v4714_v1 = vld [vmem:[#allocation7 + $0x130] sm:$0xff]   ;;  %v4718_v16 = vld [vmem:[#allocation7 + $0x138] sm:$0xff]   ;;  %v4721_v38 = vld [vmem:[#allocation9 + $0xc0] sm:$0xff]   ;;  %v636_v10 = vsub.s32 4, %v5993_v30  ;;  %v644_v18 = vsub.s32 6, %v5993_v30 }
 0x1f3   : > { %4318 = vmatpush3.bf16.msra.mxu1 %v4695_v28  ;;  %4291 = vmatprep.subr.bf16.mxu0 %v4696_v45  ;;  %v1825_v40 = vsel %vm1761_vm15, %v1402_v51, %v1793_v7  ;;  %v1936_v46 = vpack.c.bf16 %v1824_v31, %v1816_v47  ;;  %v4715_v22 = vld [vmem:[#allocation7 + $0x1b0] sm:$0xff]   ;;  %v4719_v53 = vld [vmem:[#allocation7 + $0x1b8] sm:$0xff]   ;;  %v640_v19 = vsub.s32 5, %v5993_v30  ;;  %v648_v20 = vsub.s32 7, %v5993_v30 }
 0x1f4   : > { %4319 = vmatprep.subr.bf16.mxu1 %v4697_v50  ;;  %2501 = vmatprep.mubr.bf16.mxu0 %v1935_v11  ;;  %v1937_v59 = vpack.c.bf16 %v1825_v40, %v1817_v0  ;;  %v6050_v5 = vrot.slane %v6000_v60, %v636_v10  ;;  %v6053_v17 = vrot.slane %v6000_v60, %v644_v18  ;;  %v4722_v10 = vld [vmem:[#allocation9] sm:$0xff]  }
 0x1f5   : > { %2502 = vmatmul.mubr.bf16.gmra.mrb[36].mxu0 %v1934_v12  ;;  %v6056_v21 = vrot.slane %v6000_v60, %v640_v19  ;;  %v6059_v26 = vrot.slane %v6000_v60, %v648_v20 }
 0x1f6   : > { %4292 = vmatpush3.bf16.msra.mxu0 %v4698_v13  ;;  %2550 = vmatprep.mubr.bf16.mxu1 %v1937_v59 }
 0x1f7   : > { %4320 = vmatpush3.bf16.msra.mxu1 %v4699_v24  ;;  %4293 = vmatprep.subr.bf16.mxu0 %v4700_v49 }
 0x1f8   : > { %4321 = vmatprep.subr.bf16.mxu1 %v4701_v54  ;;  %2551 = vmatmul.mubr.bf16.gmra.mrb[36].mxu1 %v1936_v46 }
 0x1fa   : > { %4294 = vmatpush3.bf16.msra.mxu0 %v4702_v57 }
 0x1fb   : > { %4322 = vmatpush3.bf16.msra.mxu1 %v4703_v33  ;;  %4295 = vmatprep.subr.bf16.mxu0 %v4704_v32 }
 0x1fc   : > { %4323 = vmatprep.subr.bf16.mxu1 %v4705_v15 }
 0x1fe   : > { %4296 = vmatpush3.bf16.msra.mxu0 %v4706_v56 }
 0x1ff   : > { %4324 = vmatpush3.bf16.msra.mxu1 %v4707_v58  ;;  %4297 = vmatprep.subr.bf16.mxu0 %v4708_v25 }
 0x200   : > { %4325 = vmatprep.subr.bf16.mxu1 %v4709_v62 }
 0x202   : > { %4298 = vmatpush3.bf16.msra.mxu0 %v4710_v39 }
 0x203   : > { %4326 = vmatpush3.bf16.msra.mxu1 %v4711_v23  ;;  %4299 = vmatprep.subr.bf16.mxu0 %v4712_v6 }
 0x204   : > { %4327 = vmatprep.subr.bf16.mxu1 %v4713_v48 }
 0x206   : > { %4300 = vmatpush3.bf16.msra.mxu0 %v4714_v1 }
 0x207   : > { %4328 = vmatpush3.bf16.msra.mxu1 %v4715_v22  ;;  %4301 = vmatprep.subr.bf16.mxu0 %v4716_v41 }
 0x208   : > { %4329 = vmatprep.subr.bf16.mxu1 %v4717_v2 }
 0x20a   : > { %4302 = vmatpush3.bf16.msra.mxu0 %v4718_v16 }
 0x20b   : > { %4330 = vmatpush3.bf16.msra.mxu1 %v4719_v53  ;;  %4343 = vmatprep.subr.bf16.mxu0 %v4720_v4 }
 0x20c   : > { %4371 = vmatprep.subr.bf16.mxu1 %v4721_v38 }
 0x21f   : > { %v1438_v27 = vpop.f32.mrb[8].mxu0  ;;  %v1491_v29 = vpop.f32.mrb[8].mxu1 }
 0x220   : > { %v1439_v28 = vadd.f32 %v1438_v27, %v6050_v5  ;;  %v1440_v34 = vpop.f32.mrb[9].mxu0  ;;  %v1492_v35 = vadd.f32 %v1491_v29, %v6053_v17  ;;  %v1493_v36 = vpop.f32.mrb[9].mxu1  ;;  %v4723_v29 = vld [vmem:[#allocation9 + $0x80] sm:$0xff]  }
 0x221   : > { %v1441_v30 = vadd.f32 %v1440_v34, %v6056_v21  ;;  %v1442_v37 = vpop.f32.mrb[10].mxu0  ;;  %v1494_v43 = vadd.f32 %v1493_v36, %v6059_v26  ;;  %v1495_v45 = vpop.f32.mrb[10].mxu1  ;;  %v4724_v34 = vld [vmem:[#allocation9 + $0x48] sm:$0xff]  }
 0x222   : > { %vm1738_vm0 = vcmp.gt.f32.partialorder %v1439_v28, 0.0  ;;  %v1770_v42 = vmul.f32 0.2, %v1439_v28  ;;  %v1443_v44 = vadd.f32 %v1442_v37, %v6050_v5  ;;  %v1444_v60 = vpop.f32.mrb[11].mxu0  ;;  %vm1740_vm1 = vcmp.gt.f32.partialorder %v1492_v35, 0.0  ;;  %v1497_v55 = vpop.f32.mrb[11].mxu1 }
 0x223   : > { %v1772_v50 = vmul.f32 0.2, %v1492_v35  ;;  %vm1739_vm2 = vcmp.gt.f32.partialorder %v1441_v30, 0.0  ;;  %v1771_v51 = vmul.f32 0.2, %v1441_v30  ;;  %vm1741_vm4 = vcmp.gt.f32.partialorder %v1494_v43, 0.0 }
 0x224   : > { %v1773_v52 = vmul.f32 0.2, %v1494_v43  ;;  %vm1746_vm3 = vcmp.gt.f32.partialorder %v1443_v44, 0.0  ;;  %v1778_v61 = vmul.f32 0.2, %v1443_v44  ;;  %v1496_v63 = vadd.f32 %v1495_v45, %v6053_v17 }
 0x225   : > { %v1445_v0 = vadd.f32 %v1444_v60, %v6056_v21  ;;  %v1802_v7 = vsel %vm1738_vm0, %v1439_v28, %v1770_v42  ;;  %v1804_v11 = vsel %vm1740_vm1, %v1492_v35, %v1772_v50  ;;  %v1498_v12 = vadd.f32 %v1497_v55, %v6059_v26  ;;  %v4725_v35 = vld [vmem:[#allocation9 + $0xc8] sm:$0xff]  }
 0x226   : > { %v1803_v13 = vsel %vm1739_vm2, %v1441_v30, %v1771_v51  ;;  %v1810_v24 = vsel %vm1746_vm3, %v1443_v44, %v1778_v61  ;;  %vm1748_vm5 = vcmp.gt.f32.partialorder %v1496_v63, 0.0  ;;  %v1780_v47 = vmul.f32 0.2, %v1496_v63  ;;  %v4726_v61 = vld [vmem:[#allocation9 + $0x8] sm:$0xff]  }
 0x227   : > { %vm1747_vm6 = vcmp.gt.f32.partialorder %v1445_v0, 0.0  ;;  %v1448_v31 = vpop.f32.mrb[12].mxu0  ;;  %v1930_v49 = vpack.c.bf16 %v1810_v24, %v1802_v7  ;;  %v1779_v54 = vmul.f32 0.2, %v1445_v0  ;;  %vm1749_vm7 = vcmp.gt.f32.partialorder %v1498_v12, 0.0  ;;  %v1501_v56 = vpop.f32.mrb[12].mxu1 }
 0x228   : > { %v1450_v40 = vpop.f32.mrb[13].mxu0  ;;  %v1805_v46 = vsel %vm1741_vm4, %v1494_v43, %v1773_v52  ;;  %v1812_v59 = vsel %vm1748_vm5, %v1496_v63, %v1780_v47  ;;  %v1781_v57 = vmul.f32 0.2, %v1498_v12  ;;  %v1449_v33 = vadd.f32 %v1448_v31, %v6050_v5  ;;  %v1503_v23 = vpop.f32.mrb[13].mxu1  ;;  %v4727_v63 = vld [vmem:[#allocation9 + $0x88] sm:$0xff]   ;;  %v4728_v7 = vld [vmem:[#allocation9 + $0x50] sm:$0xff]  }
 0x229   : > { %v1451_v32 = vadd.f32 %v1450_v40, %v6056_v21  ;;  %v1452_v15 = vpop.f32.mrb[14].mxu0  ;;  %v1932_v58 = vpack.c.bf16 %v1812_v59, %v1804_v11  ;;  %v1502_v62 = vadd.f32 %v1501_v56, %v6053_v17  ;;  %v1811_v6 = vsel %vm1747_vm6, %v1445_v0, %v1779_v54  ;;  %v1505_v38 = vpop.f32.mrb[14].mxu1  ;;  %v4730_v24 = vld [vmem:[#allocation9 + $0x10] sm:$0xff]   ;;  %v4732_v31 = vld [vmem:[#allocation9 + $0x58] sm:$0xff]   ;;  %v4737_v59 = vld [vmem:[#allocation9 + $0xe0] sm:$0xff]  }
 0x22a   : > { %v1453_v25 = vadd.f32 %v1452_v15, %v6050_v5  ;;  %v1454_v39 = vpop.f32.mrb[15].mxu0  ;;  %vm1754_vm8 = vcmp.gt.f32.partialorder %v1449_v33, 0.0  ;;  %v1786_v48 = vmul.f32 0.2, %v1449_v33  ;;  %v1504_v16 = vadd.f32 %v1503_v23, %v6059_v26  ;;  %v1507_v20 = vpop.f32.mrb[15].mxu1  ;;  %v4731_v47 = vld [vmem:[#allocation9 + $0x90] sm:$0xff]  }
 0x22b   : > { %vm1755_vm9 = vcmp.gt.f32.partialorder %v1451_v32, 0.0  ;;  %v1787_v1 = vmul.f32 0.2, %v1451_v32  ;;  %vm1756_vm11 = vcmp.gt.f32.partialorder %v1502_v62, 0.0  ;;  %v1788_v41 = vmul.f32 0.2, %v1502_v62 }
 0x22c   : > { %vm1762_vm10 = vcmp.gt.f32.partialorder %v1453_v25, 0.0  ;;  %v1794_v22 = vmul.f32 0.2, %v1453_v25  ;;  %v1455_v2 = vadd.f32 %v1454_v39, %v6056_v21  ;;  %v1931_v53 = vpack.c.bf16 %v1811_v6, %v1803_v13  ;;  %v4734_v54 = vld [vmem:[#allocation9 + $0x18] sm:$0xff]   ;;  %v4741_v15 = vld [vmem:[#allocation9 + $0xe8] sm:$0xff]   ;;  %v4746_v39 = vld [vmem:[#allocation9 + $0x30] sm:$0xff]  }
 0x22d   : > { %v1813_v4 = vsel %vm1749_vm7, %v1498_v12, %v1781_v57  ;;  %v1506_v19 = vadd.f32 %v1505_v38, %v6053_v17  ;;  %v1819_v27 = vsel %vm1755_vm9, %v1451_v32, %v1787_v1  ;;  %v1818_v28 = vsel %vm1754_vm8, %v1449_v33, %v1786_v48  ;;  %v4729_v12 = vld [vmem:[#allocation9 + $0xd0] sm:$0xff]   ;;  %v4735_v40 = vld [vmem:[#allocation9 + $0x98] sm:$0xff]   ;;  %v4738_v57 = vld [vmem:[#allocation9 + $0x20] sm:$0xff]  }
 0x22e   : > { %v1933_v18 = vpack.c.bf16 %v1813_v4, %v1805_v46  ;;  %vm1763_vm12 = vcmp.gt.f32.partialorder %v1455_v2, 0.0  ;;  %v1795_v30 = vmul.f32 0.2, %v1455_v2  ;;  %vm1757_vm13 = vcmp.gt.f32.partialorder %v1504_v16, 0.0  ;;  %2591 = vmatprep.mubr.bf16.mxu0 %v1931_v53  ;;  %v4736_v46 = vld [vmem:[#allocation9 + $0x60] sm:$0xff]   ;;  %v4740_v32 = vld [vmem:[#allocation9 + $0x68] sm:$0xff]  }
 0x22f   : > { %v1789_v36 = vmul.f32 0.2, %v1504_v16  ;;  %vm1764_vm14 = vcmp.gt.f32.partialorder %v1506_v19, 0.0  ;;  %v1796_v37 = vmul.f32 0.2, %v1506_v19  ;;  %2592 = vmatmul.mubr.bf16.vlgmr.msra.gmra.mrb[40].mxu0 %v1930_v49  ;;  %v1508_v42 = vadd.f32 %v1507_v20, %v6059_v26  ;;  %v4733_v49 = vld [vmem:[#allocation9 + $0xd8] sm:$0xff]  }
 0x230   : > { %2640 = vmatprep.mubr.bf16.mxu1 %v1933_v18  ;;  %v1826_v43 = vsel %vm1762_vm10, %v1453_v25, %v1794_v22  ;;  %v1827_v44 = vsel %vm1763_vm12, %v1455_v2, %v1795_v30  ;;  %v1820_v50 = vsel %vm1756_vm11, %v1502_v62, %v1788_v41  ;;  %4344 = vmatpush3.bf16.msra.mxu0 %v4722_v10  ;;  %v4739_v33 = vld [vmem:[#allocation9 + $0xa0] sm:$0xff]   ;;  %v4742_v56 = vld [vmem:[#allocation9 + $0x28] sm:$0xff]   ;;  %v4744_v25 = vld [vmem:[#allocation9 + $0x70] sm:$0xff]  }
 0x231   : > { %2641 = vmatmul.mubr.bf16.vlgmr.msra.gmra.mrb[40].mxu1 %v1932_v58  ;;  %v1938_v45 = vpack.c.bf16 %v1826_v43, %v1818_v28  ;;  %v1821_v60 = vsel %vm1757_vm13, %v1504_v16, %v1789_v36  ;;  %vm1765_vm15 = vcmp.gt.f32.partialorder %v1508_v42, 0.0  ;;  %v1797_v51 = vmul.f32 0.2, %v1508_v42  ;;  %4345 = vmatprep.subr.bf16.mxu0 %v4724_v34  ;;  %v4743_v58 = vld [vmem:[#allocation9 + $0xa8] sm:$0xff]   ;;  %v4745_v62 = vld [vmem:[#allocation9 + $0xf0] sm:$0xff]   ;;  %v4748_v6 = vld [vmem:[#allocation9 + $0x78] sm:$0xff]  }
 0x232   : > { %v1939_v52 = vpack.c.bf16 %v1827_v44, %v1819_v27  ;;  %v1828_v55 = vsel %vm1764_vm14, %v1506_v19, %v1796_v37  ;;  %4372 = vmatpush3.bf16.msra.mxu1 %v4723_v29  ;;  %v4747_v23 = vld [vmem:[#allocation9 + $0xb0] sm:$0xff]   ;;  %v4749_v48 = vld [vmem:[#allocation9 + $0xf8] sm:$0xff]   ;;  %v4752_v41 = vld [vmem:[#allocation9 + $0x140] sm:$0xff]  }
 0x233   : > { %v1940_v0 = vpack.c.bf16 %v1828_v55, %v1820_v50  ;;  %4373 = vmatprep.subr.bf16.mxu1 %v4725_v35  ;;  %v1829_v11 = vsel %vm1765_vm15, %v1508_v42, %v1797_v51  ;;  %v4750_v1 = vld [vmem:[#allocation9 + $0x38] sm:$0xff]   ;;  %v4753_v2 = vld [vmem:[#allocation9 + $0x1c0] sm:$0xff]  }
 0x234   : > { %2599 = vmatprep.mubr.bf16.mxu0 %v1939_v52  ;;  %v1941_v13 = vpack.c.bf16 %v1829_v11, %v1821_v60  ;;  %4346 = vmatpush3.bf16.msra.mxu0 %v4726_v61  ;;  %v4751_v22 = vld [vmem:[#allocation9 + $0xb8] sm:$0xff]  }
 0x235   : > { %4347 = vmatprep.subr.bf16.mxu0 %v4728_v7 }
 0x236   : > { %4374 = vmatpush3.bf16.msra.mxu1 %v4727_v63  ;;  %2648 = vmatprep.mubr.bf16.mxu1 %v1941_v13 }
 0x237   : > { %2600 = vmatmul.mubr.bf16.gmra.mrb[44].mxu0 %v1938_v45  ;;  %4375 = vmatprep.subr.bf16.mxu1 %v4729_v12 }
 0x238   : > { %4348 = vmatpush3.bf16.msra.mxu0 %v4730_v24 }
 0x239   : > { %2649 = vmatmul.mubr.bf16.gmra.mrb[44].mxu1 %v1940_v0  ;;  %4349 = vmatprep.subr.bf16.mxu0 %v4732_v31 }
 0x23a   : > { %4376 = vmatpush3.bf16.msra.mxu1 %v4731_v47 }
 0x23b   : > { %4377 = vmatprep.subr.bf16.mxu1 %v4733_v49 }
 0x23c   : > { %4350 = vmatpush3.bf16.msra.mxu0 %v4734_v54 }
 0x23d   : > { %4351 = vmatprep.subr.bf16.mxu0 %v4736_v46 }
 0x23e   : > { %4378 = vmatpush3.bf16.msra.mxu1 %v4735_v40 }
 0x23f   : > { %4379 = vmatprep.subr.bf16.mxu1 %v4737_v59 }
 0x240   : > { %4352 = vmatpush3.bf16.msra.mxu0 %v4738_v57  ;;  %v4754_v57 = vld [vmem:[#allocation9 + $0x100] sm:$0xff]  }
 0x241   : > { %4353 = vmatprep.subr.bf16.mxu0 %v4740_v32 }
 0x242   : > { %4380 = vmatpush3.bf16.msra.mxu1 %v4739_v33 }
 0x243   : > { %4381 = vmatprep.subr.bf16.mxu1 %v4741_v15 }
 0x244   : > { %4354 = vmatpush3.bf16.msra.mxu0 %v4742_v56 }
 0x245   : > { %4355 = vmatprep.subr.bf16.mxu0 %v4744_v25  ;;  %v4755_v25 = vld [vmem:[#allocation9 + $0x180] sm:$0xff]  }
 0x246   : > { %4382 = vmatpush3.bf16.msra.mxu1 %v4743_v58 }
 0x247   : > { %4383 = vmatprep.subr.bf16.mxu1 %v4745_v62  ;;  %v4756_v62 = vld [vmem:[#allocation9 + $0x148] sm:$0xff]  }
 0x248   : > { %4356 = vmatpush3.bf16.msra.mxu0 %v4746_v39  ;;  %v4757_v39 = vld [vmem:[#allocation9 + $0x1c8] sm:$0xff]  }
 0x249   : > { %4357 = vmatprep.subr.bf16.mxu0 %v4748_v6 }
 0x24a   : > { %4384 = vmatpush3.bf16.msra.mxu1 %v4747_v23 }
 0x24b   : > { %4385 = vmatprep.subr.bf16.mxu1 %v4749_v48 }
 0x24c   : > { %4358 = vmatpush3.bf16.msra.mxu0 %v4750_v1 }
 0x24d   : > { %4399 = vmatprep.subr.bf16.mxu0 %v4752_v41 }
 0x24e   : > { %4386 = vmatpush3.bf16.msra.mxu1 %v4751_v22  ;;  %v4758_v22 = vld [vmem:[#allocation9 + $0x108] sm:$0xff]  }
 0x24f   : > { %4427 = vmatprep.subr.bf16.mxu1 %v4753_v2 }
 0x25f   : > { %v1556_v16 = vpop.f32.mrb[16].mxu0  ;;  %v1609_v4 = vpop.f32.mrb[16].mxu1 }
 0x260   : > { %v1557_v53 = vadd.f32 %v1556_v16, %v6006_v3  ;;  %v1558_v38 = vpop.f32.mrb[17].mxu0  ;;  %v1610_v10 = vadd.f32 %v1609_v4, %v6009_v8  ;;  %v1611_v19 = vpop.f32.mrb[17].mxu1 }
 0x261   : > { %v1559_v18 = vadd.f32 %v1558_v38, %v6012_v9  ;;  %v1560_v20 = vpop.f32.mrb[18].mxu0  ;;  %v1612_v28 = vadd.f32 %v1611_v19, %v6015_v14  ;;  %v1613_v34 = vpop.f32.mrb[18].mxu1 }
 0x262   : > { %vm1830_vm0 = vcmp.gt.f32.partialorder %v1557_v53, 0.0  ;;  %v1862_v27 = vmul.f32 0.2, %v1557_v53  ;;  %v1561_v29 = vadd.f32 %v1560_v20, %v6006_v3  ;;  %v1562_v35 = vpop.f32.mrb[19].mxu0  ;;  %vm1832_vm1 = vcmp.gt.f32.partialorder %v1610_v10, 0.0  ;;  %v1615_v42 = vpop.f32.mrb[19].mxu1 }
 0x263   : > { %v1864_v30 = vmul.f32 0.2, %v1610_v10  ;;  %vm1831_vm2 = vcmp.gt.f32.partialorder %v1559_v18, 0.0  ;;  %v1863_v36 = vmul.f32 0.2, %v1559_v18  ;;  %v1614_v45 = vadd.f32 %v1613_v34, %v6009_v8 }
 0x264   : > { %v1894_v37 = vsel %vm1830_vm0, %v1557_v53, %v1862_v27  ;;  %vm1838_vm3 = vcmp.gt.f32.partialorder %v1561_v29, 0.0  ;;  %v1865_v43 = vmul.f32 0.2, %v1612_v28  ;;  %v1870_v44 = vmul.f32 0.2, %v1561_v29  ;;  %v4759_v53 = vld [vmem:[#allocation9 + $0x188] sm:$0xff]  }
 0x265   : > { %v1563_v60 = vadd.f32 %v1562_v35, %v6012_v9  ;;  %v1896_v50 = vsel %vm1832_vm1, %v1610_v10, %v1864_v30  ;;  %vm1833_vm4 = vcmp.gt.f32.partialorder %v1612_v28, 0.0  ;;  %v1616_v51 = vadd.f32 %v1615_v42, %v6015_v14  ;;  %v4760_v10 = vld [vmem:[#allocation9 + $0x150] sm:$0xff]  }
 0x266   : > { %v1895_v52 = vsel %vm1831_vm2, %v1559_v18, %v1863_v36  ;;  %v1902_v55 = vsel %vm1838_vm3, %v1561_v29, %v1870_v44  ;;  %vm1840_vm5 = vcmp.gt.f32.partialorder %v1614_v45, 0.0  ;;  %v1872_v61 = vmul.f32 0.2, %v1614_v45  ;;  %v4761_v18 = vld [vmem:[#allocation9 + $0x1d0] sm:$0xff]  }
 0x267   : > { %vm1839_vm6 = vcmp.gt.f32.partialorder %v1563_v60, 0.0  ;;  %v1566_v63 = vpop.f32.mrb[20].mxu0  ;;  %v2657_v0 = vpack.c.bf16 %v1902_v55, %v1894_v37  ;;  %v1871_v7 = vmul.f32 0.2, %v1563_v60  ;;  %vm1841_vm7 = vcmp.gt.f32.partialorder %v1616_v51, 0.0  ;;  %v1619_v54 = vpop.f32.mrb[20].mxu1 }
 0x268   : > { %v1873_v11 = vmul.f32 0.2, %v1616_v51  ;;  %v1568_v12 = vpop.f32.mrb[21].mxu0  ;;  %v1904_v13 = vsel %vm1840_vm5, %v1614_v45, %v1872_v61  ;;  %v1897_v24 = vsel %vm1833_vm4, %v1612_v28, %v1865_v43  ;;  %v1567_v47 = vadd.f32 %v1566_v63, %v6006_v3  ;;  %v1621_v15 = vpop.f32.mrb[21].mxu1  ;;  %v4762_v37 = vld [vmem:[#allocation9 + $0x110] sm:$0xff]   ;;  %v4766_v55 = vld [vmem:[#allocation9 + $0x118] sm:$0xff]  }
 0x269   : > { %v1569_v31 = vadd.f32 %v1568_v12, %v6012_v9  ;;  %v1570_v49 = vpop.f32.mrb[22].mxu0  ;;  %v2659_v40 = vpack.c.bf16 %v1904_v13, %v1896_v50  ;;  %v1903_v46 = vsel %vm1839_vm6, %v1563_v60, %v1871_v7  ;;  %v1623_v23 = vpop.f32.mrb[22].mxu1  ;;  %v1620_v1 = vadd.f32 %v1619_v54, %v6009_v8  ;;  %v4763_v42 = vld [vmem:[#allocation9 + $0x190] sm:$0xff]   ;;  %v4764_v60 = vld [vmem:[#allocation9 + $0x158] sm:$0xff]   ;;  %v4768_v63 = vld [vmem:[#allocation9 + $0x160] sm:$0xff]  }
 0x26a   : > { %v1905_v59 = vsel %vm1841_vm7, %v1616_v51, %v1873_v11  ;;  %v1571_v33 = vadd.f32 %v1570_v49, %v6006_v3  ;;  %v1572_v32 = vpop.f32.mrb[23].mxu0  ;;  %v2658_v56 = vpack.c.bf16 %v1903_v46, %v1895_v52  ;;  %vm1846_vm8 = vcmp.gt.f32.partialorder %v1567_v47, 0.0  ;;  %v1625_v2 = vpop.f32.mrb[23].mxu1  ;;  %v4765_v50 = vld [vmem:[#allocation9 + $0x1d8] sm:$0xff]   ;;  %v4770_v7 = vld [vmem:[#allocation9 + $0x120] sm:$0xff]   ;;  %v4772_v12 = vld [vmem:[#allocation9 + $0x168] sm:$0xff]  }
 0x26b   : > { %v2660_v58 = vpack.c.bf16 %v1905_v59, %v1897_v24  ;;  %v1878_v6 = vmul.f32 0.2, %v1567_v47  ;;  %vm1847_vm9 = vcmp.gt.f32.partialorder %v1569_v31, 0.0  ;;  %v1879_v48 = vmul.f32 0.2, %v1569_v31  ;;  %v4767_v61 = vld [vmem:[#allocation9 + $0x198] sm:$0xff]  }
 0x26c   : > { %3224 = vmatprep.mubr.bf16.mxu0 %v2658_v56  ;;  %vm1854_vm10 = vcmp.gt.f32.partialorder %v1571_v33, 0.0  ;;  %v1573_v3 = vadd.f32 %v1572_v32, %v6012_v9  ;;  %v1622_v41 = vadd.f32 %v1621_v15, %v6015_v14  ;;  %v1886_v16 = vmul.f32 0.2, %v1571_v33  ;;  %v4771_v11 = vld [vmem:[#allocation9 + $0x1a0] sm:$0xff]   ;;  %v4773_v13 = vld [vmem:[#allocation9 + $0x1e8] sm:$0xff]   ;;  %v4777_v49 = vld [vmem:[#allocation9 + $0x1f0] sm:$0xff]  }
 0x26d   : > { %3273 = vmatprep.mubr.bf16.mxu1 %v2660_v58  ;;  %3225 = vmatmul.mubr.bf16.vlgmr.msra.gmra.mrb[48].mxu0 %v2657_v0  ;;  %v1624_v4 = vadd.f32 %v1623_v23, %v6009_v8  ;;  %v1626_v38 = vadd.f32 %v1625_v2, %v6015_v14  ;;  %v1911_v19 = vsel %vm1847_vm9, %v1569_v31, %v1879_v48  ;;  %vm1848_vm11 = vcmp.gt.f32.partialorder %v1620_v1, 0.0  ;;  %v4769_v0 = vld [vmem:[#allocation9 + $0x1e0] sm:$0xff]   ;;  %v4774_v24 = vld [vmem:[#allocation9 + $0x128] sm:$0xff]   ;;  %v4776_v31 = vld [vmem:[#allocation9 + $0x170] sm:$0xff]  }
 0x26e   : > { %3274 = vmatmul.mubr.bf16.vlgmr.msra.gmra.mrb[48].mxu1 %v2659_v40  ;;  %4400 = vmatpush3.bf16.msra.mxu0 %v4754_v57  ;;  %v1880_v20 = vmul.f32 0.2, %v1620_v1  ;;  %vm1855_vm12 = vcmp.gt.f32.partialorder %v1573_v3, 0.0  ;;  %v1887_v9 = vmul.f32 0.2, %v1573_v3  ;;  %vm1849_vm13 = vcmp.gt.f32.partialorder %v1622_v41, 0.0 }
 0x26f   : > { %4428 = vmatpush3.bf16.msra.mxu1 %v4755_v25  ;;  %4401 = vmatprep.subr.bf16.mxu0 %v4756_v62  ;;  %v1881_v27 = vmul.f32 0.2, %v1622_v41  ;;  %vm1856_vm14 = vcmp.gt.f32.partialorder %v1624_v4, 0.0  ;;  %v1888_v28 = vmul.f32 0.2, %v1624_v4  ;;  %vm1857_vm15 = vcmp.gt.f32.partialorder %v1626_v38, 0.0 }
 0x270   : > { %4429 = vmatprep.subr.bf16.mxu1 %v4757_v39  ;;  %v1889_v8 = vmul.f32 0.2, %v1626_v38  ;;  %v1919_v29 = vsel %vm1855_vm12, %v1573_v3, %v1887_v9  ;;  %v1910_v14 = vsel %vm1846_vm8, %v1567_v47, %v1878_v6  ;;  %v1918_v35 = vsel %vm1854_vm10, %v1571_v33, %v1886_v16  ;;  %v4775_v47 = vld [vmem:[#allocation9 + $0x1a8] sm:$0xff]   ;;  %v4778_v54 = vld [vmem:[#allocation9 + $0x130] sm:$0xff]   ;;  %v4780_v46 = vld [vmem:[#allocation9 + $0x178] sm:$0xff]  }
 0x271   : > { %v2666_v34 = vpack.c.bf16 %v1919_v29, %v1911_v19  ;;  %v1913_v30 = vsel %vm1849_vm13, %v1622_v41, %v1881_v27  ;;  %v1912_v36 = vsel %vm1848_vm11, %v1620_v1, %v1880_v20  ;;  %v2665_v43 = vpack.c.bf16 %v1918_v35, %v1910_v14  ;;  %v4779_v40 = vld [vmem:[#allocation9 + $0x1b0] sm:$0xff]   ;;  %v4781_v59 = vld [vmem:[#allocation9 + $0x1f8] sm:$0xff]  }
 0x272   : > { %4402 = vmatpush3.bf16.msra.mxu0 %v4758_v22  ;;  %v1921_v44 = vsel %vm1857_vm15, %v1626_v38, %v1889_v8  ;;  %v1920_v45 = vsel %vm1856_vm14, %v1624_v4, %v1888_v28  ;;  %v4782_v57 = vld [vmem:[#allocation9 + $0x138] sm:$0xff]  }
 0x273   : > { %4430 = vmatpush3.bf16.msra.mxu1 %v4759_v53  ;;  %4403 = vmatprep.subr.bf16.mxu0 %v4760_v10  ;;  %v2668_v51 = vpack.c.bf16 %v1921_v44, %v1913_v30  ;;  %v2667_v52 = vpack.c.bf16 %v1920_v45, %v1912_v36  ;;  %v4783_v33 = vld [vmem:[#allocation9 + $0x1b8] sm:$0xff]  }
 0x274   : > { %4431 = vmatprep.subr.bf16.mxu1 %v4761_v18  ;;  %3232 = vmatprep.mubr.bf16.mxu0 %v2666_v34 }
 0x275   : > { %3233 = vmatmul.mubr.bf16.gmra.mrb[52].mxu0 %v2665_v43  ;;  %3281 = vmatprep.mubr.bf16.mxu1 %v2668_v51 }
 0x276   : > { %4404 = vmatpush3.bf16.msra.mxu0 %v4762_v37  ;;  %3282 = vmatmul.mubr.bf16.gmra.mrb[52].mxu1 %v2667_v52 }
 0x277   : > { %4432 = vmatpush3.bf16.msra.mxu1 %v4763_v42  ;;  %4405 = vmatprep.subr.bf16.mxu0 %v4764_v60 }
 0x278   : > { %4433 = vmatprep.subr.bf16.mxu1 %v4765_v50 }
 0x27a   : > { %4406 = vmatpush3.bf16.msra.mxu0 %v4766_v55 }
 0x27b   : > { %4434 = vmatpush3.bf16.msra.mxu1 %v4767_v61  ;;  %4407 = vmatprep.subr.bf16.mxu0 %v4768_v63 }
 0x27c   : > { %4435 = vmatprep.subr.bf16.mxu1 %v4769_v0 }
 0x27e   : > { %4408 = vmatpush3.bf16.msra.mxu0 %v4770_v7 }
 0x27f   : > { %4436 = vmatpush3.bf16.msra.mxu1 %v4771_v11  ;;  %4409 = vmatprep.subr.bf16.mxu0 %v4772_v12 }
 0x280   : > { %4437 = vmatprep.subr.bf16.mxu1 %v4773_v13 }
 0x282   : > { %4410 = vmatpush3.bf16.msra.mxu0 %v4774_v24 }
 0x283   : > { %4438 = vmatpush3.bf16.msra.mxu1 %v4775_v47  ;;  %4411 = vmatprep.subr.bf16.mxu0 %v4776_v31 }
 0x284   : > { %4439 = vmatprep.subr.bf16.mxu1 %v4777_v49 }
 0x286   : > { %4412 = vmatpush3.bf16.msra.mxu0 %v4778_v54 }
 0x287   : > { %4440 = vmatpush3.bf16.msra.mxu1 %v4779_v40  ;;  %4413 = vmatprep.subr.bf16.mxu0 %v4780_v46 }
 0x288   : > { %4441 = vmatprep.subr.bf16.mxu1 %v4781_v59 }
 0x28a   : > { %4414 = vmatpush3.bf16.msra.mxu0 %v4782_v57 }
 0x28b   : > { %4442 = vmatpush3.bf16.msra.mxu1 %v4783_v33 }
 0x29f   : > { %v1662_v32 = vpop.f32.mrb[24].mxu0  ;;  %v1715_v56 = vpop.f32.mrb[24].mxu1 }
 0x2a0   : > { %v1663_v15 = vadd.f32 %v1662_v32, %v6050_v5  ;;  %v1664_v58 = vpop.f32.mrb[25].mxu0  ;;  %v1716_v25 = vadd.f32 %v1715_v56, %v6053_v17  ;;  %v1717_v39 = vpop.f32.mrb[25].mxu1 }
 0x2a1   : > { %v1665_v62 = vadd.f32 %v1664_v58, %v6056_v21  ;;  %v1666_v23 = vpop.f32.mrb[26].mxu0  ;;  %v1718_v48 = vadd.f32 %v1717_v39, %v6059_v26  ;;  %v1719_v22 = vpop.f32.mrb[26].mxu1 }
 0x2a2   : > { %vm1834_vm0 = vcmp.gt.f32.partialorder %v1663_v15, 0.0  ;;  %v1866_v6 = vmul.f32 0.2, %v1663_v15  ;;  %v1667_v1 = vadd.f32 %v1666_v23, %v6050_v5  ;;  %v1668_v3 = vpop.f32.mrb[27].mxu0  ;;  %vm1836_vm1 = vcmp.gt.f32.partialorder %v1716_v25, 0.0  ;;  %v1721_v53 = vpop.f32.mrb[27].mxu1 }
 0x2a3   : > { %v1868_v41 = vmul.f32 0.2, %v1716_v25  ;;  %vm1835_vm2 = vcmp.gt.f32.partialorder %v1665_v62, 0.0  ;;  %v1867_v2 = vmul.f32 0.2, %v1665_v62  ;;  %vm1837_vm4 = vcmp.gt.f32.partialorder %v1718_v48, 0.0 }
 0x2a4   : > { %v1869_v16 = vmul.f32 0.2, %v1718_v48  ;;  %vm1842_vm3 = vcmp.gt.f32.partialorder %v1667_v1, 0.0  ;;  %v1874_v4 = vmul.f32 0.2, %v1667_v1  ;;  %v1720_v38 = vadd.f32 %v1719_v22, %v6053_v17 }
 0x2a5   : > { %v1669_v10 = vadd.f32 %v1668_v3, %v6056_v21  ;;  %v1898_v18 = vsel %vm1834_vm0, %v1663_v15, %v1866_v6  ;;  %v1900_v19 = vsel %vm1836_vm1, %v1716_v25, %v1868_v41  ;;  %v1722_v20 = vadd.f32 %v1721_v53, %v6059_v26 }
 0x2a6   : > { %v1899_v9 = vsel %vm1835_vm2, %v1665_v62, %v1867_v2  ;;  %v1906_v27 = vsel %vm1842_vm3, %v1667_v1, %v1874_v4  ;;  %vm1844_vm5 = vcmp.gt.f32.partialorder %v1720_v38, 0.0  ;;  %v1876_v28 = vmul.f32 0.2, %v1720_v38  ;;  %v4057_v1 = vld [vmem:[%s6262_s5] ss:$0 sm:$0xff] }
 0x2a7   : > { %vm1843_vm6 = vcmp.gt.f32.partialorder %v1669_v10, 0.0  ;;  %v1672_v8 = vpop.f32.mrb[28].mxu0  ;;  %v2661_v29 = vpack.c.bf16 %v1906_v27, %v1898_v18  ;;  %v1875_v14 = vmul.f32 0.2, %v1669_v10  ;;  %vm1845_vm7 = vcmp.gt.f32.partialorder %v1722_v20, 0.0  ;;  %v1725_v34 = vpop.f32.mrb[28].mxu1 }
 0x2a8   : > { %v1901_v35 = vsel %vm1837_vm4, %v1718_v48, %v1869_v16  ;;  %v1908_v30 = vsel %vm1844_vm5, %v1720_v38, %v1876_v28  ;;  %v1877_v36 = vmul.f32 0.2, %v1722_v20  ;;  %v1673_v37 = vadd.f32 %v1672_v8, %v6050_v5  ;;  %v1674_v43 = vpop.f32.mrb[29].mxu0  ;;  %v1727_v44 = vpop.f32.mrb[29].mxu1 }
 0x2a9   : > { %v1726_v42 = vadd.f32 %v1725_v34, %v6053_v17  ;;  %v2663_v45 = vpack.c.bf16 %v1908_v30, %v1900_v19  ;;  %v1675_v60 = vadd.f32 %v1674_v43, %v6056_v21  ;;  %v1728_v50 = vadd.f32 %v1727_v44, %v6059_v26  ;;  %v1676_v51 = vpop.f32.mrb[30].mxu0  ;;  %v1729_v52 = vpop.f32.mrb[30].mxu1 }
 0x2aa   : > { %v1907_v55 = vsel %vm1843_vm6, %v1669_v10, %v1875_v14  ;;  %vm1850_vm8 = vcmp.gt.f32.partialorder %v1673_v37, 0.0  ;;  %v1882_v61 = vmul.f32 0.2, %v1673_v37  ;;  %v1677_v11 = vadd.f32 %v1676_v51, %v6050_v5  ;;  %v1678_v13 = vpop.f32.mrb[31].mxu0  ;;  %v1731_v24 = vpop.f32.mrb[31].mxu1 }
 0x2ab   : > { %vm1852_vm9 = vcmp.gt.f32.partialorder %v1726_v42, 0.0  ;;  %v1884_v63 = vmul.f32 0.2, %v1726_v42  ;;  %vm1851_vm10 = vcmp.gt.f32.partialorder %v1675_v60, 0.0  ;;  %v1883_v0 = vmul.f32 0.2, %v1675_v60 }
 0x2ac   : > { %vm1853_vm11 = vcmp.gt.f32.partialorder %v1728_v50, 0.0  ;;  %v1885_v7 = vmul.f32 0.2, %v1728_v50  ;;  %v1730_v12 = vadd.f32 %v1729_v52, %v6053_v17  ;;  %v2662_v47 = vpack.c.bf16 %v1907_v55, %v1899_v9 }
 0x2ad   : > { %v1909_v31 = vsel %vm1845_vm7, %v1722_v20, %v1877_v36  ;;  %v1679_v49 = vadd.f32 %v1678_v13, %v6056_v21  ;;  %v1732_v54 = vadd.f32 %v1731_v24, %v6059_v26  ;;  %v1915_v46 = vsel %vm1851_vm10, %v1675_v60, %v1883_v0 }
 0x2ae   : > { %v2664_v40 = vpack.c.bf16 %v1909_v31, %v1901_v35  ;;  %vm1858_vm12 = vcmp.gt.f32.partialorder %v1677_v11, 0.0  ;;  %v1890_v59 = vmul.f32 0.2, %v1677_v11  ;;  %vm1860_vm13 = vcmp.gt.f32.partialorder %v1730_v12, 0.0  ;;  %3322 = vmatprep.mubr.bf16.mxu0 %v2662_v47 }
 0x2af   : > { %v1892_v57 = vmul.f32 0.2, %v1730_v12  ;;  %vm1859_vm14 = vcmp.gt.f32.partialorder %v1679_v49, 0.0  ;;  %v1891_v5 = vmul.f32 0.2, %v1679_v49  ;;  %vm1861_vm15 = vcmp.gt.f32.partialorder %v1732_v54, 0.0  ;;  %3323 = vmatmul.mubr.bf16.vlgmr.msra.gmra.mrb[56].mxu0 %v2661_v29 }
 0x2b0   : > { %v1893_v17 = vmul.f32 0.2, %v1732_v54  ;;  %3371 = vmatprep.mubr.bf16.mxu1 %v2664_v40  ;;  %v1917_v33 = vsel %vm1853_vm11, %v1728_v50, %v1885_v7  ;;  %v1914_v21 = vsel %vm1850_vm8, %v1673_v37, %v1882_v61  ;;  %v1922_v32 = vsel %vm1858_vm12, %v1677_v11, %v1890_v59 }
 0x2b1   : > { %3372 = vmatmul.mubr.bf16.vlgmr.msra.gmra.mrb[56].mxu1 %v2663_v45  ;;  %v1916_v26 = vsel %vm1852_vm9, %v1726_v42, %v1884_v63  ;;  %v1923_v15 = vsel %vm1859_vm14, %v1679_v49, %v1891_v5  ;;  %v2669_v58 = vpack.c.bf16 %v1922_v32, %v1914_v21  ;;  %v1924_v25 = vsel %vm1860_vm13, %v1730_v12, %v1892_v57 }
 0x2b2   : > { %v1925_v56 = vsel %vm1861_vm15, %v1732_v54, %v1893_v17  ;;  %v2670_v62 = vpack.c.bf16 %v1923_v15, %v1915_v46  ;;  %v2671_v23 = vpack.c.bf16 %v1924_v25, %v1916_v26 }
 0x2b3   : > { %v2672_v39 = vpack.c.bf16 %v1925_v56, %v1917_v33 }
 0x2b4   : > { %3330 = vmatprep.mubr.bf16.mxu0 %v2670_v62 }
 0x2b5   : > { %3379 = vmatprep.mubr.bf16.mxu1 %v2672_v39 }
 0x2b7   : > { %3331 = vmatmul.mubr.bf16.gmra.mrb[60].mxu0 %v2669_v58 }
 0x2b9   : > { %3380 = vmatmul.mubr.bf16.gmra.mrb[60].mxu1 %v2671_v23 }
 0x2c0   : > { %v4247_v6 = vpop.f32.mrb[32].mxu0 }
 0x2c1   : > { %v4275_v48 = vpop.f32.mrb[32].mxu1  ;;  %v4248_v22 = vpop.f32.mrb[33].mxu0 }
 0x2c2   : > { %v4276_v3 = vpop.f32.mrb[33].mxu1  ;;  %v4249_v41 = vadd.f32 %v4248_v22, %v4247_v6  ;;  %v4250_v16 = vpop.f32.mrb[34].mxu0 }
 0x2c3   : > { %v4277_v2 = vadd.f32 %v4276_v3, %v4275_v48  ;;  %v4278_v53 = vpop.f32.mrb[34].mxu1  ;;  %v4251_v4 = vpop.f32.mrb[35].mxu0 }
 0x2c4   : > { %v4279_v38 = vpop.f32.mrb[35].mxu1  ;;  %v2496_v10 = vadd.f32 %v4249_v41, %v4057_v1  ;;  %v4252_v18 = vadd.f32 %v4251_v4, %v4250_v16  ;;  %v4122_v16 = vld [vmem:[%s6264_s7] ss:$0 sm:$0xff] }
 0x2c5   : > { %v4280_v19 = vadd.f32 %v4279_v38, %v4278_v53 }
 0x2c6   : > { %v2545_v20 = vadd.f32 %v4277_v2, %v2496_v10  ;;  %v2499_v9 = vadd.f32 %v4252_v18, %v4057_v1 }
 0x2c8   : > { %v2548_v27 = vadd.f32 %v4280_v19, %v2499_v9  ;;  %v4253_v28 = vpop.f32.mrb[36].mxu0 }
 0x2c9   : > { %v4254_v8 = vpop.f32.mrb[37].mxu0 }
 0x2ca   : > { %v4255_v29 = vadd.f32 %v4254_v8, %v4253_v28  ;;  %v4256_v14 = vpop.f32.mrb[38].mxu0 }
 0x2cb   : > { %v4257_v34 = vpop.f32.mrb[39].mxu0  ;;  %v4281_v30 = vpop.f32.mrb[36].mxu1 }
 0x2cc   : > { %v2504_v35 = vadd.f32 %v4255_v29, %v4057_v1  ;;  %v4258_v36 = vadd.f32 %v4257_v34, %v4256_v14  ;;  %v4282_v37 = vpop.f32.mrb[37].mxu1 }
 0x2cd   : > { %v4283_v43 = vadd.f32 %v4282_v37, %v4281_v30  ;;  %v4284_v44 = vpop.f32.mrb[38].mxu1 }
 0x2ce   : > { %v2507_v42 = vadd.f32 %v4258_v36, %v4057_v1  ;;  %v4285_v45 = vpop.f32.mrb[39].mxu1 }
 0x2cf   : > { %v2553_v60 = vadd.f32 %v4283_v43, %v2504_v35  ;;  %v4286_v50 = vadd.f32 %v4285_v45, %v4284_v44 }
 0x2d1   : > { %v2556_v51 = vadd.f32 %v4286_v50, %v2507_v42 }
 0x302   : > { %v4303_v52 = vpop.f32.mrb[40].mxu0 }
 0x303   : > { %v4304_v61 = vpop.f32.mrb[41].mxu0 }
 0x304   : > { %v4331_v55 = vpop.f32.mrb[40].mxu1  ;;  %v4305_v63 = vadd.f32 %v4304_v61, %v4303_v52  ;;  %v4306_v7 = vpop.f32.mrb[42].mxu0 }
 0x305   : > { %v4332_v0 = vpop.f32.mrb[41].mxu1  ;;  %v4307_v13 = vpop.f32.mrb[43].mxu0 }
 0x306   : > { %v4333_v11 = vadd.f32 %v4332_v0, %v4331_v55  ;;  %v4334_v12 = vpop.f32.mrb[42].mxu1  ;;  %v2594_v24 = vadd.f32 %v4305_v63, %v2545_v20  ;;  %v4308_v47 = vadd.f32 %v4307_v13, %v4306_v7 }
 0x307   : > { %v4335_v31 = vpop.f32.mrb[43].mxu1 }
 0x308   : > { %v4336_v49 = vadd.f32 %v4335_v31, %v4334_v12  ;;  %v2643_v54 = vadd.f32 %v4333_v11, %v2594_v24  ;;  %v2597_v40 = vadd.f32 %v4308_v47, %v2548_v27 }
 0x30a   : > { %v3388_v46 = vmax.f32 %v2643_v54, 0.0  ;;  %v2646_v59 = vadd.f32 %v4336_v49, %v2597_v40  ;;  %v4309_v57 = vpop.f32.mrb[44].mxu0 }
 0x30b   : > { %v4310_v5 = vpop.f32.mrb[45].mxu0 }
 0x30c   : > { %v4337_v17 = vpop.f32.mrb[44].mxu1  ;;  %3392 = vst [vmem:[%s6135_s14] sm:$0xff] %v3388_v46  ;;  %v3389_v33 = vmax.f32 %v2646_v59, 0.0  ;;  %v4311_v21 = vadd.f32 %v4310_v5, %v4309_v57  ;;  %v4312_v32 = vpop.f32.mrb[46].mxu0 }
 0x30d   : > { %v4338_v26 = vpop.f32.mrb[45].mxu1  ;;  %v4313_v15 = vpop.f32.mrb[47].mxu0 }
 0x30e   : > { %v4339_v56 = vadd.f32 %v4338_v26, %v4337_v17  ;;  %v4340_v58 = vpop.f32.mrb[46].mxu1  ;;  %3393 = vst [vmem:[%s6135_s14 + $0x8] sm:$0xff] %v3389_v33  ;;  %v2602_v25 = vadd.f32 %v4311_v21, %v2553_v60  ;;  %v4314_v62 = vadd.f32 %v4313_v15, %v4312_v32 }
 0x30f   : > { %v4341_v39 = vpop.f32.mrb[47].mxu1 }
 0x310   : > { %v4342_v23 = vadd.f32 %v4341_v39, %v4340_v58  ;;  %v2605_v6 = vadd.f32 %v4314_v62, %v2556_v51  ;;  %v2651_v48 = vadd.f32 %v4339_v56, %v2602_v25 }
 0x312   : > { %v3390_v1 = vmax.f32 %v2651_v48, 0.0  ;;  %v2654_v22 = vadd.f32 %v4342_v23, %v2605_v6 }
 0x314   : > { %3394 = vst [vmem:[%s6135_s14 + $0x10] sm:$0xff] %v3390_v1  ;;  %v3391_v3 = vmax.f32 %v2654_v22, 0.0 }
 0x316   : > { %3395 = vst [vmem:[%s6135_s14 + $0x18] sm:$0xff] %v3391_v3 }
 0x340   : > { %v4359_v41 = vpop.f32.mrb[48].mxu0 }
 0x341   : > { %v4387_v2 = vpop.f32.mrb[48].mxu1  ;;  %v4360_v53 = vpop.f32.mrb[49].mxu0 }
 0x342   : > { %v4388_v4 = vpop.f32.mrb[49].mxu1  ;;  %v4361_v38 = vadd.f32 %v4360_v53, %v4359_v41  ;;  %v4362_v18 = vpop.f32.mrb[50].mxu0 }
 0x343   : > { %v4389_v10 = vadd.f32 %v4388_v4, %v4387_v2  ;;  %v4390_v19 = vpop.f32.mrb[50].mxu1  ;;  %v4363_v20 = vpop.f32.mrb[51].mxu0 }
 0x344   : > { %v4391_v9 = vpop.f32.mrb[51].mxu1  ;;  %v3227_v27 = vadd.f32 %v4361_v38, %v4122_v16  ;;  %v4364_v28 = vadd.f32 %v4363_v20, %v4362_v18 }
 0x345   : > { %v4392_v8 = vadd.f32 %v4391_v9, %v4390_v19 }
 0x346   : > { %v3276_v29 = vadd.f32 %v4389_v10, %v3227_v27  ;;  %v3230_v14 = vadd.f32 %v4364_v28, %v4122_v16 }
 0x348   : > { %v3279_v34 = vadd.f32 %v4392_v8, %v3230_v14  ;;  %v4365_v35 = vpop.f32.mrb[52].mxu0 }
 0x349   : > { %v4366_v30 = vpop.f32.mrb[53].mxu0  ;;  %v4393_v42 = vpop.f32.mrb[52].mxu1 }
 0x34a   : > { %v4367_v36 = vadd.f32 %v4366_v30, %v4365_v35  ;;  %v4368_v37 = vpop.f32.mrb[54].mxu0  ;;  %v4394_v60 = vpop.f32.mrb[53].mxu1 }
 0x34b   : > { %v4369_v43 = vpop.f32.mrb[55].mxu0  ;;  %v4395_v50 = vadd.f32 %v4394_v60, %v4393_v42  ;;  %v4396_v51 = vpop.f32.mrb[54].mxu1 }
 0x34c   : > { %v3235_v44 = vadd.f32 %v4367_v36, %v4122_v16  ;;  %v4370_v45 = vadd.f32 %v4369_v43, %v4368_v37  ;;  %v4397_v55 = vpop.f32.mrb[55].mxu1 }
 0x34d   : > { %v4398_v63 = vadd.f32 %v4397_v55, %v4396_v51 }
 0x34e   : > { %v3238_v52 = vadd.f32 %v4370_v45, %v4122_v16  ;;  %v3284_v61 = vadd.f32 %v4395_v50, %v3235_v44 }
 0x350   : > { %v3287_v0 = vadd.f32 %v4398_v63, %v3238_v52 }
 0x382   : > { %v4415_v7 = vpop.f32.mrb[56].mxu0 }
 0x383   : > { %v4416_v12 = vpop.f32.mrb[57].mxu0 }
 0x384   : > { %v4443_v11 = vpop.f32.mrb[56].mxu1  ;;  %v4417_v13 = vadd.f32 %v4416_v12, %v4415_v7  ;;  %v4418_v47 = vpop.f32.mrb[58].mxu0 }
 0x385   : > { %v4444_v24 = vpop.f32.mrb[57].mxu1  ;;  %v4419_v54 = vpop.f32.mrb[59].mxu0 }
 0x386   : > { %v4445_v31 = vadd.f32 %v4444_v24, %v4443_v11  ;;  %v4446_v49 = vpop.f32.mrb[58].mxu1  ;;  %v3325_v40 = vadd.f32 %v4417_v13, %v3276_v29  ;;  %v4420_v46 = vadd.f32 %v4419_v54, %v4418_v47 }
 0x387   : > { %v4447_v59 = vpop.f32.mrb[59].mxu1 }
 0x388   : > { %v4448_v57 = vadd.f32 %v4447_v59, %v4446_v49  ;;  %v3374_v5 = vadd.f32 %v4445_v31, %v3325_v40  ;;  %v3328_v17 = vadd.f32 %v4420_v46, %v3279_v34 }
 0x38a   : > { %v3396_v33 = vmax.f32 %v3374_v5, 0.0  ;;  %v3377_v21 = vadd.f32 %v4448_v57, %v3328_v17  ;;  %v4421_v32 = vpop.f32.mrb[60].mxu0 }
 0x38b   : > { %v4422_v15 = vpop.f32.mrb[61].mxu0 }
 0x38c   : > { %v4449_v26 = vpop.f32.mrb[60].mxu1  ;;  %3400 = vst [vmem:[%s6146_s16] sm:$0xff] %v3396_v33  ;;  %v3397_v56 = vmax.f32 %v3377_v21, 0.0  ;;  %v4423_v58 = vadd.f32 %v4422_v15, %v4421_v32  ;;  %v4424_v62 = vpop.f32.mrb[62].mxu0 }
 0x38d   : > { %v4450_v25 = vpop.f32.mrb[61].mxu1  ;;  %v4425_v6 = vpop.f32.mrb[63].mxu0 }
 0x38e   : > { %v4451_v39 = vadd.f32 %v4450_v25, %v4449_v26  ;;  %v4452_v23 = vpop.f32.mrb[62].mxu1  ;;  %3401 = vst [vmem:[%s6146_s16 + $0x8] sm:$0xff] %v3397_v56  ;;  %v3333_v48 = vadd.f32 %v4423_v58, %v3284_v61  ;;  %v4426_v1 = vadd.f32 %v4425_v6, %v4424_v62 }
 0x38f   : > { %v4453_v22 = vpop.f32.mrb[63].mxu1 }
 0x390   : > { %v4454_v3 = vadd.f32 %v4453_v22, %v4452_v23  ;;  %v3382_v41 = vadd.f32 %v4451_v39, %v3333_v48  ;;  %v3336_v2 = vadd.f32 %v4426_v1, %v3287_v0  ;;  %3414 = sbr.rel (!%p6518_p8) target bundleno = 968 (0x3c8), region = 76 }
 0x392   : > { %v3398_v16 = vmax.f32 %v3382_v41, 0.0  ;;  %v3385_v53 = vadd.f32 %v4454_v3, %v3336_v2 }
 0x394   : > { %3402 = vst [vmem:[%s6146_s16 + $0x10] sm:$0xff] %v3398_v16  ;;  %v3399_v4 = vmax.f32 %v3385_v53, 0.0 }
 0x396   : > { %3403 = vst [vmem:[%s6146_s16 + $0x18] sm:$0xff] %v3399_v4 }
 0x397   : > { %s6538_s24 = smov (!%p3417_p10, %s3416_s24), 4 }
 0x398   : > { %s4190_s27 = sshll.u32 %s6538_s24, 7 }
 0x399   : > { %p4193_p0 = scmp.eq.s32.totalorder %s4190_s27, 0 }
 0x39a   : > { %s6165_s9 = sshrl.u32 (!%p4193_p0), %s6538_s24, 2 }
 0x39b   : > { %3425 = sbr.rel (%p4193_p0) target bundleno = 968 (0x3c8), region = 80  ;;  %p4194_p11 = scmp.le.s32.totalorder (!%p4193_p0), %s6165_s9, 0 }
 0x3a2   : > { %3777 = sbr.rel (%p4194_p11) target bundleno = 947 (0x3b3), region = 243  ;;  %s6520_s21 = smov (!%p4194_p11), %s6159_s25 }
 0x3a3   : > { %s6521_s29 = smov (!%p4194_p11), %s6135_s14  ;;  %s6174_s19 = smov (!%p4194_p11), 0  }
 0x3a4   : > { %s5048_s28 = smov (!%p4194_p11), 0  }
 0x3a9 LB: >> { %v3493_v38 = vld [vmem:[%s5042_s29] sm:$0xff]  ;;  %v3495_v10 = vld [vmem:[%s5042_s29 + $0x8] sm:$0xff]  ;;  %v3497_v18 = vld [vmem:[%s5042_s29 + $0x10] sm:$0xff]  ;;  %s3501_s15 = sadd.s32 1, %s5046_s19  ;;  %s3487_s28 = sadd.s32 1, %s5050_s28   ;;  %s5050_s28 = sphi %s5048_s28, %s3487_s28   ;;  %s5046_s19 = sphi %s6174_s19, %s6522_s19   ;;  %s5042_s29 = sphi %s6521_s29, %s3506_s29   ;;  %s5038_s21 = sphi %s6520_s21, %s3507_s21  }
 0x3aa   : >> { %3494 = vst [vmem:[%s5038_s21] sm:$0xff] %v3493_v38  ;;  %3496 = vst [vmem:[%s5038_s21 + $0x8] sm:$0xff] %v3495_v10  ;;  %v3499_v19 = vld [vmem:[%s5042_s29 + $0x18] sm:$0xff]  ;;  %p3502_p2 = scmp.ge.s32.totalorder %s3501_s15, %s6165_s9  ;;  %p3486_p3 = scmp.ge.s32.totalorder %s3487_s28, %s6165_s9 }
 0x3ab   : >> { %3498 = vst [vmem:[%s5038_s21 + $0x10] sm:$0xff] %v3497_v18  ;;  %3500 = vst [vmem:[%s5038_s21 + $0x18] sm:$0xff] %v3499_v19 }
 0x3ac   : >> { %s6540_s15 = smov (%p3502_p2, %s3501_s15), 0  ;;  %3489 = sbr.rel (!%p3486_p3) target bundleno = 937 (0x3a9), region = 249 }
 0x3ad   : >> { %s4195_s23 = sshll.u32 %s6540_s15, 5  ;;  %s6522_s19 = smov %s6540_s15 }
 0x3ae   : >> { %s3506_s29 = scalar_lea.vmem %s6135_s14, %s4195_s23 [#allocation10]   ;;  %s3507_s21 = scalar_lea.vmem %s6159_s25, %s4195_s23  }
 0x3b3 PF: > { %s6190_s12 = sand.u32 3, %s6538_s24   ;;  %s4226_s4 = sshll.u32 %s6165_s9, 5 }
 0x3b4   : > { %s3512_s30 = scalar_lea.vmem %s6135_s14, %s4226_s4 [#allocation10]   ;;  %s3514_s8 = scalar_lea.vmem %s6159_s25, %s4226_s4  }
 0x3b5   : > { %p4200_p6 = scmp.le.s32.totalorder %s6190_s12, 0 }
 0x3b6   : > { %s5052_s17 = smov (!%p4200_p6), %s3514_s8   ;;  %s5056_s18 = smov (!%p4200_p6), %s3512_s30  }
 0x3b7   : > { %3791 = sbr.rel (%p4200_p6) target bundleno = 968 (0x3c8), region = 254  ;;  %s5060_s22 = smov (!%p4200_p6), 0  }
 0x3b8   : > { %s5064_s26 = smov (!%p4200_p6), 0  }
 0x3be LB: >> { %v3524_v20 = vld [vmem:[%s5058_s18] sm:$0xff]  ;;  %s3526_s24 = sadd.s32 1, %s5062_s22  ;;  %s3518_s26 = sadd.s32 1, %s5066_s26   ;;  %s5066_s26 = sphi %s5064_s26, %s3518_s26   ;;  %s5062_s22 = sphi %s5060_s22, %s5061_s22   ;;  %s5058_s18 = sphi %s5056_s18, %s3531_s18   ;;  %s5054_s17 = sphi %s5052_s17, %s3532_s17  }
 0x3bf   : >> { %3525 = vst [vmem:[%s5054_s17] sm:$0xff] %v3524_v20  ;;  %p3527_p9 = scmp.ge.s32.totalorder %s3526_s24, %s6190_s12  ;;  %p3517_p7 = scmp.ge.s32.totalorder %s3518_s26, %s6190_s12 }
 0x3c1   : >> { %s6542_s24 = smov (%p3527_p9, %s3526_s24), 0  ;;  %3520 = sbr.rel (!%p3517_p7) target bundleno = 958 (0x3be), region = 260 }
 0x3c2   : >> { %s4201_s14 = sshll.u32 %s6542_s24, 3  ;;  %s5061_s22 = smov %s6542_s24  }
 0x3c3   : >> { %s3531_s18 = scalar_lea.vmem %s3512_s30, %s4201_s14 [#allocation10]   ;;  %s3532_s17 = scalar_lea.vmem %s3514_s8, %s4201_s14  }
 0x3c8 PF: > { %p6523_p12 = scmp.ne.s32.totalorder %s6355_s20, 0 }
 0x3c9   : > { %s4203_s25 = sshll.u32 (%p6523_p12), %s5182_s13, 2  ;;  %s4228_s27 = sshll.u32 (%p6523_p12), %s5182_s13, 5 }
 0x3ca   : > { %3538 = sbr.rel (!%p6523_p12) target bundleno = 1026 (0x402), region = 128  ;;  %s3540_s9 = ssub.s32 (%p6523_p12), 6, %s4203_s25 }
 0x3cb   : > { %s6524_s19 = sld [smem:[#allocation94_spill]] (%p6523_p12)  ;;  %p3541_p13 = scmp.lt.s32.totalorder (%p6523_p12), %s3540_s9, 4 }
 0x3d1   : > { %s6205_s28 = scalar_lea.vmem %s6524_s19, %s4228_s27   ;;  %s6544_s9 = smov (!%p3541_p13, %s3540_s9), 4 }
 0x3d2   : > { %s4204_s15 = sshll.u32 %s6544_s9, 7 }
 0x3d3   : > { %p4207_p4 = scmp.eq.s32.totalorder %s4204_s15, 0 }
 0x3d4   : > { %s6211_s20 = sshrl.u32 (!%p4207_p4), %s6544_s9, 2 }
 0x3d5   : > { %3549 = sbr.rel (%p4207_p4) target bundleno = 1026 (0x402), region = 132  ;;  %p4208_p1 = scmp.le.s32.totalorder (!%p4207_p4), %s6211_s20, 0 }
 0x3dc   : > { %3805 = sbr.rel (%p4208_p1) target bundleno = 1005 (0x3ed), region = 265  ;;  %s6525_s13 = smov (!%p4208_p1), %s6205_s28 }
 0x3dd   : > { %s6526_s23 = smov (!%p4208_p1), %s6146_s16  ;;  %s6220_s12 = smov (!%p4208_p1), 0  }
 0x3de   : > { %s5080_s4 = smov (!%p4208_p1), 0  }
 0x3e3 LB: >> { %v3617_v9 = vld [vmem:[%s5074_s23] sm:$0xff]  ;;  %v3619_v27 = vld [vmem:[%s5074_s23 + $0x8] sm:$0xff]  ;;  %v3621_v28 = vld [vmem:[%s5074_s23 + $0x10] sm:$0xff]  ;;  %s3625_s30 = sadd.s32 1, %s5078_s12  ;;  %s3611_s4 = sadd.s32 1, %s5082_s4   ;;  %s5082_s4 = sphi %s5080_s4, %s3611_s4   ;;  %s5078_s12 = sphi %s6220_s12, %s6527_s12   ;;  %s5074_s23 = sphi %s6526_s23, %s3630_s23   ;;  %s5070_s13 = sphi %s6525_s13, %s3631_s13  }
 0x3e4   : >> { %3618 = vst [vmem:[%s5070_s13] sm:$0xff] %v3617_v9  ;;  %3620 = vst [vmem:[%s5070_s13 + $0x8] sm:$0xff] %v3619_v27  ;;  %v3623_v8 = vld [vmem:[%s5074_s23 + $0x18] sm:$0xff]  ;;  %p3626_p5 = scmp.ge.s32.totalorder %s3625_s30, %s6211_s20  ;;  %p3610_p8 = scmp.ge.s32.totalorder %s3611_s4, %s6211_s20 }
 0x3e5   : >> { %3622 = vst [vmem:[%s5070_s13 + $0x10] sm:$0xff] %v3621_v28  ;;  %3624 = vst [vmem:[%s5070_s13 + $0x18] sm:$0xff] %v3623_v8 }
 0x3e6   : >> { %s6546_s30 = smov (%p3626_p5, %s3625_s30), 0  ;;  %3613 = sbr.rel (!%p3610_p8) target bundleno = 995 (0x3e3), region = 271 }
 0x3e7   : >> { %s4209_s8 = sshll.u32 %s6546_s30, 5  ;;  %s6527_s12 = smov %s6546_s30 }
 0x3e8   : >> { %s3630_s23 = scalar_lea.vmem %s6146_s16, %s4209_s8 [#allocation11]   ;;  %s3631_s13 = scalar_lea.vmem %s6205_s28, %s4209_s8  }
 0x3ed PF: > { %s6236_s17 = sand.u32 3, %s6544_s9   ;;  %s4229_s18 = sshll.u32 %s6211_s20, 5 }
 0x3ee   : > { %s3636_s22 = scalar_lea.vmem %s6146_s16, %s4229_s18 [#allocation11]   ;;  %s3638_s26 = scalar_lea.vmem %s6205_s28, %s4229_s18  }
 0x3ef   : > { %p4214_p10 = scmp.le.s32.totalorder %s6236_s17, 0 }
 0x3f0   : > { %s5084_s24 = smov (!%p4214_p10), %s3638_s26   ;;  %s5088_s14 = smov (!%p4214_p10), %s3636_s22  }
 0x3f1   : > { %3819 = sbr.rel (%p4214_p10) target bundleno = 1026 (0x402), region = 276  ;;  %s5092_s25 = smov (!%p4214_p10), 0  }
 0x3f2   : > { %s5096_s27 = smov (!%p4214_p10), 0  }
 0x3f8 LB: >> { %v3648_v29 = vld [vmem:[%s5090_s14] sm:$0xff]  ;;  %s3650_s9 = sadd.s32 1, %s5094_s25  ;;  %s3642_s27 = sadd.s32 1, %s5098_s27   ;;  %s5098_s27 = sphi %s5096_s27, %s3642_s27   ;;  %s5094_s25 = sphi %s5092_s25, %s5093_s25   ;;  %s5090_s14 = sphi %s5088_s14, %s3655_s14   ;;  %s5086_s24 = sphi %s5084_s24, %s3656_s24  }
 0x3f9   : >> { %3649 = vst [vmem:[%s5086_s24] sm:$0xff] %v3648_v29  ;;  %p3651_p0 = scmp.ge.s32.totalorder %s3650_s9, %s6236_s17  ;;  %p3641_p11 = scmp.ge.s32.totalorder %s3642_s27, %s6236_s17 }
 0x3fb   : >> { %s6548_s9 = smov (%p3651_p0, %s3650_s9), 0  ;;  %3644 = sbr.rel (!%p3641_p11) target bundleno = 1016 (0x3f8), region = 282 }
 0x3fc   : >> { %s4215_s16 = sshll.u32 %s6548_s9, 3  ;;  %s5093_s25 = smov %s6548_s9  }
 0x3fd   : >> { %s3655_s14 = scalar_lea.vmem %s3636_s22, %s4215_s16 [#allocation11]   ;;  %s3656_s24 = scalar_lea.vmem %s3638_s26, %s4215_s16  }
 0x402 PF: > { %s6528_s12 = sld [smem:[#allocation16_spill]]  ;;  %s6529_s21 = sld [smem:[#allocation17_spill]] }
 0x403   : > { %s6530_s30 = smov %s5026_s10  ;;  %s6531_s10 = smov %s5030_s11 }
 0x408   : > { %p24_p2 = scmp.ge.s32.totalorder %s6528_s12, 4   ;;  %s6532_s11 = smov %s6529_s21 }
 0x40a   :  { %26 = sbr.rel (!%p24_p2) target bundleno = 10 (0xa), region = 293 }
 0x411   :  { %3679 = vsyncpa [#allocation3], 1 }
 0x412   :  { %3681 = vsyncpa [#allocation3 + $0x1], 1 }
 0x413   :  { %3682 = vsyncpa [#allocation5], 1 }
 0x414   :  { %3684 = vsyncpa [#allocation5 + $0x1], 1 }
 0x415   :  { %3685 = vsyncpa [#allocation8], 1 }

</bundles_post_ra>
